<compile_context>
chip_gen: v7x
topology: tpu7x:2x2x1
jax: 0.10.0
libtpu: 0.0.40
codegen_flags: <defaults>
</compile_context>

<pallas_src>
import jax
import jax.numpy as jnp
import numpy as np
from jax.experimental import pallas as pl
from jax.experimental.pallas import tpu as pltpu


# ============================ fused CAB kernel ==============================

def _cab_kernel(x_ref, w1_ref, b1_ref, w2_ref, b2_ref,
                cw1_ref, cb1_ref, cw2_ref, cb2_ref, alpha_ref,
                o_ref, pad_ref):
    # x_ref:   (1, H, W, C)           input block (one batch element)
    # w*_ref:  (3, 3*C, C)            conv weights, (ky, kx*Cin, Cout)
    # b*_ref:  (1, C)                 conv biases (zeros if bias=False)
    # cw1/cb1: (C, C//r), (1, C//r)   CA squeeze
    # cw2/cb2: (C//r, C), (1, C)      CA excite
    # alpha:   (1,) in SMEM           shared PReLU slope
    # o_ref:   (1, H*W, C)            output block
    # pad_ref: (H+2, W+2, C) VMEM     zero-padded activation scratch
    _, H, W, C = x_ref.shape

    # Zero halo lives only in VMEM (no HBM pad round trip).
    pad_ref[...] = jnp.zeros_like(pad_ref)
    pad_ref[1:H + 1, 1:W + 1, :] = x_ref[0]

    def conv3x3(w_ref, b_ref):
        # im2col along kx -> 3 matmuls with contraction K = 3*C.
        acc = jnp.zeros((H * W, C), jnp.float32)
        for ky in range(3):
            taps = [pad_ref[ky:ky + H, kx:kx + W, :].reshape(H * W, C)
                    for kx in range(3)]
            patch = jnp.concatenate(taps, axis=-1)           # (H*W, 3*C)
            acc = acc + jnp.dot(patch, w_ref[ky],
                                preferred_element_type=jnp.float32)
        return acc + b_ref[...]                              # (1, C) broadcast

    # body: conv -> PReLU -> conv
    r = conv3x3(w1_ref, b1_ref)
    alpha = alpha_ref[0]
    r = jnp.where(r >= 0.0, r, alpha * r)                    # PReLU (VPU)
    pad_ref[1:H + 1, 1:W + 1, :] = r.reshape(H, W, C)        # reuse halo scratch
    r = conv3x3(w2_ref, b2_ref)                              # (H*W, C)

    # CALayer: global average pool -> 1x1 -> ReLU -> 1x1 -> sigmoid -> scale
    m = jnp.mean(r, axis=0, keepdims=True)                   # (1, C)
    y = jnp.maximum(jnp.dot(m, cw1_ref[...],
                            preferred_element_type=jnp.float32)
                    + cb1_ref[...], 0.0)
    y = jnp.dot(y, cw2_ref[...],
                preferred_element_type=jnp.float32) + cb2_ref[...]
    y = 1.0 / (1.0 + jnp.exp(-y))                            # sigmoid (EUP)

    # channel scale + residual
    o_ref[0] = r * y + x_ref[0].reshape(H * W, C)


def cab_forward(params, x_nchw):
    """CAB forward.  x_nchw: (N, C, H, W) float32 (PyTorch layout)."""
    N, C, H, W = x_nchw.shape
    Cr = params['ca_w1'].shape[-1]
    x = jnp.transpose(x_nchw, (0, 2, 3, 1))                  # -> NHWC
    w1 = params['w1'].reshape(3, 3 * C, C)                   # free reshape in HBM
    w2 = params['w2'].reshape(3, 3 * C, C)

    out = pl.pallas_call(
        _cab_kernel,
        out_shape=jax.ShapeDtypeStruct((N, H * W, C), jnp.float32),
        grid=(N,),
        in_specs=[
            pl.BlockSpec((1, H, W, C), lambda n: (n, 0, 0, 0)),
            pl.BlockSpec((3, 3 * C, C), lambda n: (0, 0, 0)),
            pl.BlockSpec((1, C), lambda n: (0, 0)),
            pl.BlockSpec((3, 3 * C, C), lambda n: (0, 0, 0)),
            pl.BlockSpec((1, C), lambda n: (0, 0)),
            pl.BlockSpec((C, Cr), lambda n: (0, 0)),
            pl.BlockSpec((1, Cr), lambda n: (0, 0)),
            pl.BlockSpec((Cr, C), lambda n: (0, 0)),
            pl.BlockSpec((1, C), lambda n: (0, 0)),
            pl.BlockSpec(memory_space=pltpu.MemorySpace.SMEM),   # PReLU alpha
        ],
        out_specs=pl.BlockSpec((1, H * W, C), lambda n: (n, 0, 0)),
        scratch_shapes=[pltpu.VMEM((H + 2, W + 2, C), jnp.float32)],
        compiler_params=pltpu.CompilerParams(
            dimension_semantics=("parallel",)),  # v7x: shard batch over 2 TCs
    )(x, w1, params['b1'].reshape(1, C), w2, params['b2'].reshape(1, C),
      params['ca_w1'], params['ca_b1'].reshape(1, Cr),
      params['ca_w2'], params['ca_b2'].reshape(1, C),
      params['alpha'])

    return jnp.transpose(out.reshape(N, H, W, C), (0, 3, 1, 2))   # back to NCHW


# ============================ pure-JAX reference ============================

def cab_reference(params, x_nchw):
    x = jnp.transpose(x_nchw, (0, 2, 3, 1))                  # NHWC
    hi = jax.lax.Precision.HIGHEST

    def c3(t, w, b):
        y = jax.lax.conv_general_dilated(
            t, w, window_strides=(1, 1), padding='SAME',
            dimension_numbers=('NHWC', 'HWIO', 'NHWC'), precision=hi)
        return y + b.reshape(1, 1, 1, -1)

    r = c3(x, params['w1'], params['b1'])
    a = params['alpha'][0]
    r = jnp.where(r >= 0.0, r, a * r)
    r = c3(r, params['w2'], params['b2'])
    m = jnp.mean(r, axis=(1, 2))                             # (N, C)
    y = jnp.maximum(jnp.dot(m, params['ca_w1'], precision=hi)
                    + params['ca_b1'], 0.0)
    y = jax.nn.sigmoid(jnp.dot(y, params['ca_w2'], precision=hi)
                       + params['ca_b2'])
    out = r * y[:, None, None, :] + x
    return jnp.transpose(out, (0, 3, 1, 2))


# ============================ parameter init ================================

def init_cab_params(key, n_feat, reduction, bias=False):
    k = jax.random.split(key, 4)
    cr = n_feat // reduction
    p = dict(
        w1=0.05 * jax.random.normal(k[0], (3, 3, n_feat, n_feat), jnp.float32),
        w2=0.05 * jax.random.normal(k[1], (3, 3, n_feat, n_feat), jnp.float32),
        ca_w1=0.05 * jax.random.normal(k[2], (n_feat, cr), jnp.float32),
        ca_w2=0.05 * jax.random.normal(k[3], (cr, n_feat), jnp.float32),
        b1=jnp.zeros((n_feat,), jnp.float32),
        b2=jnp.zeros((n_feat,), jnp.float32),
        ca_b1=jnp.zeros((cr,), jnp.float32),
        ca_b2=jnp.zeros((n_feat,), jnp.float32),
        alpha=jnp.full((1,), 0.25, jnp.float32),   # nn.PReLU() shared slope
    )
    # bias=False matches the module's conv() default; the kernel already adds
    # the bias vectors, so bias=True only needs non-zero b1/b2/ca_b1/ca_b2.
    del bias
    return p


# ================================ main ======================================

if __name__ == "__main__":
    n_feat, reduction = 40, 4          # CAB(n_feat=40, kernel_size=3, reduction=4)
    B, H, W = 2, 16, 16

    key = jax.random.PRNGKey(0)
    kp, kx = jax.random.split(key)
    params = init_cab_params(kp, n_feat, reduction, bias=False)
    x = jax.random.normal(kx, (B, n_feat, H, W), jnp.float32)   # NCHW like PyTorch

    fwd = jax.jit(cab_forward)
    out = fwd(params, x)
    jax.block_until_ready(out)
    assert out.shape == (B, n_feat, H, W)

    ref = cab_reference(params, x)
    np.testing.assert_allclose(np.asarray(out), np.asarray(ref),
                               rtol=2e-2, atol=2e-2)
    print("KERNEL_OK")
</pallas_src>

<mosaic_0001>
module attributes {stable_mosaic.version = 11 : i64} {
  func.func @_cab_kernel(%arg0: i32, %arg1: memref<1x16x16x40xf32, #tpu.memory_space<vmem>>, %arg2: memref<3x120x40xf32, #tpu.memory_space<vmem>>, %arg3: memref<1x40xf32, #tpu.memory_space<vmem>>, %arg4: memref<3x120x40xf32, #tpu.memory_space<vmem>>, %arg5: memref<1x40xf32, #tpu.memory_space<vmem>>, %arg6: memref<40x10xf32, #tpu.memory_space<vmem>>, %arg7: memref<1x10xf32, #tpu.memory_space<vmem>>, %arg8: memref<10x40xf32, #tpu.memory_space<vmem>>, %arg9: memref<1x40xf32, #tpu.memory_space<vmem>>, %arg10: memref<1xf32, #tpu.memory_space<smem>>, %arg11: memref<1x256x40xf32, #tpu.memory_space<vmem>>, %arg12: memref<18x18x40xf32, #tpu.memory_space<vmem>>) attributes {dimension_semantics = [#tpu.dimension_semantics<parallel>], iteration_bounds = array<i64: 2>, scalar_prefetch = 0 : i64, scratch_operands = 1 : i64, tpu.core_type = #tpu.core_type<tc>, window_params = [{transform_indices = @transform_0, window_bounds = array<i64: 1, 16, 16, 40>}, {pipeline_mode = #tpu.pipeline_mode<synchronous>, transform_indices = @transform_1, window_bounds = array<i64: 3, 120, 40>}, {pipeline_mode = #tpu.pipeline_mode<synchronous>, transform_indices = @transform_2, window_bounds = array<i64: 1, 40>}, {pipeline_mode = #tpu.pipeline_mode<synchronous>, transform_indices = @transform_3, window_bounds = array<i64: 3, 120, 40>}, {pipeline_mode = #tpu.pipeline_mode<synchronous>, transform_indices = @transform_4, window_bounds = array<i64: 1, 40>}, {pipeline_mode = #tpu.pipeline_mode<synchronous>, transform_indices = @transform_5, window_bounds = array<i64: 40, 10>}, {pipeline_mode = #tpu.pipeline_mode<synchronous>, transform_indices = @transform_6, window_bounds = array<i64: 1, 10>}, {pipeline_mode = #tpu.pipeline_mode<synchronous>, transform_indices = @transform_7, window_bounds = array<i64: 10, 40>}, {pipeline_mode = #tpu.pipeline_mode<synchronous>, transform_indices = @transform_8, window_bounds = array<i64: 1, 40>}, {transform_indices = @transform_9, window_bounds = array<i64: 1>}, {transform_indices = @transform_10, window_bounds = array<i64: 1, 256, 40>}]} {
    %cst = arith.constant 0.000000e+00 : f32
    %0 = vector.broadcast %cst : f32 to vector<18x18x40xf32>
    %c0 = arith.constant 0 : index
    %c0_0 = arith.constant 0 : index
    %c0_1 = arith.constant 0 : index
    %1 = vector.load %arg12[%c0, %c0_0, %c0_1] : memref<18x18x40xf32, #tpu.memory_space<vmem>>, vector<18x18x40xf32>
    tpu.vector_store %arg12[%c0, %c0_0, %c0_1], %0 {strides = array<i32>} : memref<18x18x40xf32, #tpu.memory_space<vmem>>, vector<18x18x40xf32>,
    %c0_2 = arith.constant 0 : index
    %c0_3 = arith.constant 0 : index
    %c0_4 = arith.constant 0 : index
    %c0_5 = arith.constant 0 : index
    %2 = vector.load %arg1[%c0_2, %c0_3, %c0_4, %c0_5] : memref<1x16x16x40xf32, #tpu.memory_space<vmem>>, vector<1x16x16x40xf32>
    %3 = vector.shape_cast %2 : vector<1x16x16x40xf32> to vector<16x16x40xf32>
    %c1 = arith.constant 1 : index
    %c1_6 = arith.constant 1 : index
    %c0_7 = arith.constant 0 : index
    %4 = vector.load %arg12[%c1, %c1_6, %c0_7] : memref<18x18x40xf32, #tpu.memory_space<vmem>>, vector<16x16x40xf32>
    tpu.vector_store %arg12[%c1, %c1_6, %c0_7], %3 {strides = array<i32>} : memref<18x18x40xf32, #tpu.memory_space<vmem>>, vector<16x16x40xf32>,
    %cst_8 = arith.constant 0.000000e+00 : f32
    %5 = vector.broadcast %cst_8 : f32 to vector<256x40xf32>
    %c0_9 = arith.constant 0 : index
    %c0_10 = arith.constant 0 : index
    %c0_11 = arith.constant 0 : index
    %6 = vector.load %arg12[%c0_9, %c0_10, %c0_11] : memref<18x18x40xf32, #tpu.memory_space<vmem>>, vector<16x16x40xf32>
    %7 = vector.shape_cast %6 : vector<16x16x40xf32> to vector<256x40xf32>
    %c0_12 = arith.constant 0 : index
    %c1_13 = arith.constant 1 : index
    %c0_14 = arith.constant 0 : index
    %8 = vector.load %arg12[%c0_12, %c1_13, %c0_14] : memref<18x18x40xf32, #tpu.memory_space<vmem>>, vector<16x16x40xf32>
    %9 = vector.shape_cast %8 : vector<16x16x40xf32> to vector<256x40xf32>
    %c0_15 = arith.constant 0 : index
    %c2 = arith.constant 2 : index
    %c0_16 = arith.constant 0 : index
    %10 = vector.load %arg12[%c0_15, %c2, %c0_16] : memref<18x18x40xf32, #tpu.memory_space<vmem>>, vector<16x16x40xf32>
    %11 = vector.shape_cast %10 : vector<16x16x40xf32> to vector<256x40xf32>
    %12 = tpu.concatenate %7, %9, %11 in 1 : vector<256x40xf32>, vector<256x40xf32>, vector<256x40xf32> -> vector<256x120xf32>
    %c0_17 = arith.constant 0 : index
    %c0_18 = arith.constant 0 : index
    %c0_19 = arith.constant 0 : index
    %13 = vector.load %arg2[%c0_17, %c0_18, %c0_19] : memref<3x120x40xf32, #tpu.memory_space<vmem>>, vector<1x120x40xf32>
    %14 = vector.shape_cast %13 : vector<1x120x40xf32> to vector<120x40xf32>
    %cst_20 = arith.constant dense<0.000000e+00> : vector<256x40xf32>
    %15 = tpu.matmul %12, %14, %cst_20 {dimension_numbers = #tpu.dot_dimension_numbers<[1], [0], [0], [1], [0, 0, 1, 1], [], []>} : vector<256x120xf32>, vector<120x40xf32>, vector<256x40xf32> -> vector<256x40xf32>
    %16 = arith.addf %5, %15 : vector<256x40xf32>
    %c1_21 = arith.constant 1 : index
    %c0_22 = arith.constant 0 : index
    %c0_23 = arith.constant 0 : index
    %17 = vector.load %arg12[%c1_21, %c0_22, %c0_23] : memref<18x18x40xf32, #tpu.memory_space<vmem>>, vector<16x16x40xf32>
    %18 = vector.shape_cast %17 : vector<16x16x40xf32> to vector<256x40xf32>
    %c1_24 = arith.constant 1 : index
    %c1_25 = arith.constant 1 : index
    %c0_26 = arith.constant 0 : index
    %19 = vector.load %arg12[%c1_24, %c1_25, %c0_26] : memref<18x18x40xf32, #tpu.memory_space<vmem>>, vector<16x16x40xf32>
    %20 = vector.shape_cast %19 : vector<16x16x40xf32> to vector<256x40xf32>
    %c1_27 = arith.constant 1 : index
    %c2_28 = arith.constant 2 : index
    %c0_29 = arith.constant 0 : index
    %21 = vector.load %arg12[%c1_27, %c2_28, %c0_29] : memref<18x18x40xf32, #tpu.memory_space<vmem>>, vector<16x16x40xf32>
    %22 = vector.shape_cast %21 : vector<16x16x40xf32> to vector<256x40xf32>
    %23 = tpu.concatenate %18, %20, %22 in 1 : vector<256x40xf32>, vector<256x40xf32>, vector<256x40xf32> -> vector<256x120xf32>
    %c1_30 = arith.constant 1 : index
    %c0_31 = arith.constant 0 : index
    %c0_32 = arith.constant 0 : index
    %24 = vector.load %arg2[%c1_30, %c0_31, %c0_32] : memref<3x120x40xf32, #tpu.memory_space<vmem>>, vector<1x120x40xf32>
    %25 = vector.shape_cast %24 : vector<1x120x40xf32> to vector<120x40xf32>
    %cst_33 = arith.constant dense<0.000000e+00> : vector<256x40xf32>
    %26 = tpu.matmul %23, %25, %cst_33 {dimension_numbers = #tpu.dot_dimension_numbers<[1], [0], [0], [1], [0, 0, 1, 1], [], []>} : vector<256x120xf32>, vector<120x40xf32>, vector<256x40xf32> -> vector<256x40xf32>
    %27 = arith.addf %16, %26 : vector<256x40xf32>
    %c2_34 = arith.constant 2 : index
    %c0_35 = arith.constant 0 : index
    %c0_36 = arith.constant 0 : index
    %28 = vector.load %arg12[%c2_34, %c0_35, %c0_36] : memref<18x18x40xf32, #tpu.memory_space<vmem>>, vector<16x16x40xf32>
    %29 = vector.shape_cast %28 : vector<16x16x40xf32> to vector<256x40xf32>
    %c2_37 = arith.constant 2 : index
    %c1_38 = arith.constant 1 : index
    %c0_39 = arith.constant 0 : index
    %30 = vector.load %arg12[%c2_37, %c1_38, %c0_39] : memref<18x18x40xf32, #tpu.memory_space<vmem>>, vector<16x16x40xf32>
    %31 = vector.shape_cast %30 : vector<16x16x40xf32> to vector<256x40xf32>
    %c2_40 = arith.constant 2 : index
    %c2_41 = arith.constant 2 : index
    %c0_42 = arith.constant 0 : index
    %32 = vector.load %arg12[%c2_40, %c2_41, %c0_42] : memref<18x18x40xf32, #tpu.memory_space<vmem>>, vector<16x16x40xf32>
    %33 = vector.shape_cast %32 : vector<16x16x40xf32> to vector<256x40xf32>
    %34 = tpu.concatenate %29, %31, %33 in 1 : vector<256x40xf32>, vector<256x40xf32>, vector<256x40xf32> -> vector<256x120xf32>
    %c2_43 = arith.constant 2 : index
    %c0_44 = arith.constant 0 : index
    %c0_45 = arith.constant 0 : index
    %35 = vector.load %arg2[%c2_43, %c0_44, %c0_45] : memref<3x120x40xf32, #tpu.memory_space<vmem>>, vector<1x120x40xf32>
    %36 = vector.shape_cast %35 : vector<1x120x40xf32> to vector<120x40xf32>
    %cst_46 = arith.constant dense<0.000000e+00> : vector<256x40xf32>
    %37 = tpu.matmul %34, %36, %cst_46 {dimension_numbers = #tpu.dot_dimension_numbers<[1], [0], [0], [1], [0, 0, 1, 1], [], []>} : vector<256x120xf32>, vector<120x40xf32>, vector<256x40xf32> -> vector<256x40xf32>
    %38 = arith.addf %27, %37 : vector<256x40xf32>
    %c0_47 = arith.constant 0 : index
    %c0_48 = arith.constant 0 : index
    %39 = vector.load %arg3[%c0_47, %c0_48] : memref<1x40xf32, #tpu.memory_space<vmem>>, vector<1x40xf32>
    %40 = vector.broadcast %39 : vector<1x40xf32> to vector<256x40xf32>
    %41 = arith.addf %38, %40 : vector<256x40xf32>
    %c0_49 = arith.constant 0 : index
    %42 = memref.load %arg10[%c0_49] : memref<1xf32, #tpu.memory_space<smem>>
    %cst_50 = arith.constant 0.000000e+00 : f32
    %43 = vector.broadcast %cst_50 : f32 to vector<256x40xf32>
    %44 = arith.cmpf oge, %41, %43 : vector<256x40xf32>
    %45 = vector.broadcast %42 : f32 to vector<256x40xf32>
    %46 = arith.mulf %45, %41 : vector<256x40xf32>
    %47 = arith.select %44, %41, %46 : vector<256x40xi1>, vector<256x40xf32>
    %48 = vector.shape_cast %47 : vector<256x40xf32> to vector<16x16x40xf32>
    %c1_51 = arith.constant 1 : index
    %c1_52 = arith.constant 1 : index
    %c0_53 = arith.constant 0 : index
    %49 = vector.load %arg12[%c1_51, %c1_52, %c0_53] : memref<18x18x40xf32, #tpu.memory_space<vmem>>, vector<16x16x40xf32>
    tpu.vector_store %arg12[%c1_51, %c1_52, %c0_53], %48 {strides = array<i32>} : memref<18x18x40xf32, #tpu.memory_space<vmem>>, vector<16x16x40xf32>,
    %cst_54 = arith.constant 0.000000e+00 : f32
    %50 = vector.broadcast %cst_54 : f32 to vector<256x40xf32>
    %c0_55 = arith.constant 0 : index
    %c0_56 = arith.constant 0 : index
    %c0_57 = arith.constant 0 : index
    %51 = vector.load %arg12[%c0_55, %c0_56, %c0_57] : memref<18x18x40xf32, #tpu.memory_space<vmem>>, vector<16x16x40xf32>
    %52 = vector.shape_cast %51 : vector<16x16x40xf32> to vector<256x40xf32>
    %c0_58 = arith.constant 0 : index
    %c1_59 = arith.constant 1 : index
    %c0_60 = arith.constant 0 : index
    %53 = vector.load %arg12[%c0_58, %c1_59, %c0_60] : memref<18x18x40xf32, #tpu.memory_space<vmem>>, vector<16x16x40xf32>
    %54 = vector.shape_cast %53 : vector<16x16x40xf32> to vector<256x40xf32>
    %c0_61 = arith.constant 0 : index
    %c2_62 = arith.constant 2 : index
    %c0_63 = arith.constant 0 : index
    %55 = vector.load %arg12[%c0_61, %c2_62, %c0_63] : memref<18x18x40xf32, #tpu.memory_space<vmem>>, vector<16x16x40xf32>
    %56 = vector.shape_cast %55 : vector<16x16x40xf32> to vector<256x40xf32>
    %57 = tpu.concatenate %52, %54, %56 in 1 : vector<256x40xf32>, vector<256x40xf32>, vector<256x40xf32> -> vector<256x120xf32>
    %c0_64 = arith.constant 0 : index
    %c0_65 = arith.constant 0 : index
    %c0_66 = arith.constant 0 : index
    %58 = vector.load %arg4[%c0_64, %c0_65, %c0_66] : memref<3x120x40xf32, #tpu.memory_space<vmem>>, vector<1x120x40xf32>
    %59 = vector.shape_cast %58 : vector<1x120x40xf32> to vector<120x40xf32>
    %cst_67 = arith.constant dense<0.000000e+00> : vector<256x40xf32>
    %60 = tpu.matmul %57, %59, %cst_67 {dimension_numbers = #tpu.dot_dimension_numbers<[1], [0], [0], [1], [0, 0, 1, 1], [], []>} : vector<256x120xf32>, vector<120x40xf32>, vector<256x40xf32> -> vector<256x40xf32>
    %61 = arith.addf %50, %60 : vector<256x40xf32>
    %c1_68 = arith.constant 1 : index
    %c0_69 = arith.constant 0 : index
    %c0_70 = arith.constant 0 : index
    %62 = vector.load %arg12[%c1_68, %c0_69, %c0_70] : memref<18x18x40xf32, #tpu.memory_space<vmem>>, vector<16x16x40xf32>
    %63 = vector.shape_cast %62 : vector<16x16x40xf32> to vector<256x40xf32>
    %c1_71 = arith.constant 1 : index
    %c1_72 = arith.constant 1 : index
    %c0_73 = arith.constant 0 : index
    %64 = vector.load %arg12[%c1_71, %c1_72, %c0_73] : memref<18x18x40xf32, #tpu.memory_space<vmem>>, vector<16x16x40xf32>
    %65 = vector.shape_cast %64 : vector<16x16x40xf32> to vector<256x40xf32>
    %c1_74 = arith.constant 1 : index
    %c2_75 = arith.constant 2 : index
    %c0_76 = arith.constant 0 : index
    %66 = vector.load %arg12[%c1_74, %c2_75, %c0_76] : memref<18x18x40xf32, #tpu.memory_space<vmem>>, vector<16x16x40xf32>
    %67 = vector.shape_cast %66 : vector<16x16x40xf32> to vector<256x40xf32>
    %68 = tpu.concatenate %63, %65, %67 in 1 : vector<256x40xf32>, vector<256x40xf32>, vector<256x40xf32> -> vector<256x120xf32>
    %c1_77 = arith.constant 1 : index
    %c0_78 = arith.constant 0 : index
    %c0_79 = arith.constant 0 : index
    %69 = vector.load %arg4[%c1_77, %c0_78, %c0_79] : memref<3x120x40xf32, #tpu.memory_space<vmem>>, vector<1x120x40xf32>
    %70 = vector.shape_cast %69 : vector<1x120x40xf32> to vector<120x40xf32>
    %cst_80 = arith.constant dense<0.000000e+00> : vector<256x40xf32>
    %71 = tpu.matmul %68, %70, %cst_80 {dimension_numbers = #tpu.dot_dimension_numbers<[1], [0], [0], [1], [0, 0, 1, 1], [], []>} : vector<256x120xf32>, vector<120x40xf32>, vector<256x40xf32> -> vector<256x40xf32>
    %72 = arith.addf %61, %71 : vector<256x40xf32>
    %c2_81 = arith.constant 2 : index
    %c0_82 = arith.constant 0 : index
    %c0_83 = arith.constant 0 : index
    %73 = vector.load %arg12[%c2_81, %c0_82, %c0_83] : memref<18x18x40xf32, #tpu.memory_space<vmem>>, vector<16x16x40xf32>
    %74 = vector.shape_cast %73 : vector<16x16x40xf32> to vector<256x40xf32>
    %c2_84 = arith.constant 2 : index
    %c1_85 = arith.constant 1 : index
    %c0_86 = arith.constant 0 : index
    %75 = vector.load %arg12[%c2_84, %c1_85, %c0_86] : memref<18x18x40xf32, #tpu.memory_space<vmem>>, vector<16x16x40xf32>
    %76 = vector.shape_cast %75 : vector<16x16x40xf32> to vector<256x40xf32>
    %c2_87 = arith.constant 2 : index
    %c2_88 = arith.constant 2 : index
    %c0_89 = arith.constant 0 : index
    %77 = vector.load %arg12[%c2_87, %c2_88, %c0_89] : memref<18x18x40xf32, #tpu.memory_space<vmem>>, vector<16x16x40xf32>
    %78 = vector.shape_cast %77 : vector<16x16x40xf32> to vector<256x40xf32>
    %79 = tpu.concatenate %74, %76, %78 in 1 : vector<256x40xf32>, vector<256x40xf32>, vector<256x40xf32> -> vector<256x120xf32>
    %c2_90 = arith.constant 2 : index
    %c0_91 = arith.constant 0 : index
    %c0_92 = arith.constant 0 : index
    %80 = vector.load %arg4[%c2_90, %c0_91, %c0_92] : memref<3x120x40xf32, #tpu.memory_space<vmem>>, vector<1x120x40xf32>
    %81 = vector.shape_cast %80 : vector<1x120x40xf32> to vector<120x40xf32>
    %cst_93 = arith.constant dense<0.000000e+00> : vector<256x40xf32>
    %82 = tpu.matmul %79, %81, %cst_93 {dimension_numbers = #tpu.dot_dimension_numbers<[1], [0], [0], [1], [0, 0, 1, 1], [], []>} : vector<256x120xf32>, vector<120x40xf32>, vector<256x40xf32> -> vector<256x40xf32>
    %83 = arith.addf %72, %82 : vector<256x40xf32>
    %c0_94 = arith.constant 0 : index
    %c0_95 = arith.constant 0 : index
    %84 = vector.load %arg5[%c0_94, %c0_95] : memref<1x40xf32, #tpu.memory_space<vmem>>, vector<1x40xf32>
    %85 = vector.broadcast %84 : vector<1x40xf32> to vector<256x40xf32>
    %86 = arith.addf %83, %85 : vector<256x40xf32>
    %cst_96 = arith.constant dense<0.000000e+00> : vector<40xf32>
    %87 = vector.multi_reduction <add>, %86, %cst_96 [0] : vector<256x40xf32> to vector<40xf32>
    %88 = vector.shape_cast %87 : vector<40xf32> to vector<1x40xf32>
    %cst_97 = arith.constant 2.560000e+02 : f32
    %89 = vector.broadcast %cst_97 : f32 to vector<1x40xf32>
    %90 = arith.divf %88, %89 : vector<1x40xf32>
    %c0_98 = arith.constant 0 : index
    %c0_99 = arith.constant 0 : index
    %91 = vector.load %arg6[%c0_98, %c0_99] : memref<40x10xf32, #tpu.memory_space<vmem>>, vector<40x10xf32>
    %cst_100 = arith.constant dense<0.000000e+00> : vector<1x10xf32>
    %92 = tpu.matmul %90, %91, %cst_100 {dimension_numbers = #tpu.dot_dimension_numbers<[1], [0], [0], [1], [0, 0, 1, 1], [], []>} : vector<1x40xf32>, vector<40x10xf32>, vector<1x10xf32> -> vector<1x10xf32>
    %c0_101 = arith.constant 0 : index
    %c0_102 = arith.constant 0 : index
    %93 = vector.load %arg7[%c0_101, %c0_102] : memref<1x10xf32, #tpu.memory_space<vmem>>, vector<1x10xf32>
    %94 = arith.addf %92, %93 : vector<1x10xf32>
    %cst_103 = arith.constant 0.000000e+00 : f32
    %95 = vector.broadcast %cst_103 : f32 to vector<1x10xf32>
    %96 = arith.maximumf %94, %95 : vector<1x10xf32>
    %c0_104 = arith.constant 0 : index
    %c0_105 = arith.constant 0 : index
    %97 = vector.load %arg8[%c0_104, %c0_105] : memref<10x40xf32, #tpu.memory_space<vmem>>, vector<10x40xf32>
    %cst_106 = arith.constant dense<0.000000e+00> : vector<1x40xf32>
    %98 = tpu.matmul %96, %97, %cst_106 {dimension_numbers = #tpu.dot_dimension_numbers<[1], [0], [0], [1], [0, 0, 1, 1], [], []>} : vector<1x10xf32>, vector<10x40xf32>, vector<1x40xf32> -> vector<1x40xf32>
    %c0_107 = arith.constant 0 : index
    %c0_108 = arith.constant 0 : index
    %99 = vector.load %arg9[%c0_107, %c0_108] : memref<1x40xf32, #tpu.memory_space<vmem>>, vector<1x40xf32>
    %100 = arith.addf %98, %99 : vector<1x40xf32>
    %cst_109 = arith.constant 0.000000e+00 : f32
    %101 = vector.broadcast %cst_109 : f32 to vector<1x40xf32>
    %102 = arith.subf %101, %100 : vector<1x40xf32>
    %103 = math.exp %102 : vector<1x40xf32>
    %cst_110 = arith.constant 1.000000e+00 : f32
    %104 = vector.broadcast %cst_110 : f32 to vector<1x40xf32>
    %105 = arith.addf %104, %103 : vector<1x40xf32>
    %cst_111 = arith.constant 1.000000e+00 : f32
    %106 = vector.broadcast %cst_111 : f32 to vector<1x40xf32>
    %107 = arith.divf %106, %105 : vector<1x40xf32>
    %108 = vector.broadcast %107 : vector<1x40xf32> to vector<256x40xf32>
    %109 = arith.mulf %86, %108 : vector<256x40xf32>
    %c0_112 = arith.constant 0 : index
    %c0_113 = arith.constant 0 : index
    %c0_114 = arith.constant 0 : index
    %c0_115 = arith.constant 0 : index
    %110 = vector.load %arg1[%c0_112, %c0_113, %c0_114, %c0_115] : memref<1x16x16x40xf32, #tpu.memory_space<vmem>>, vector<1x16x16x40xf32>
    %111 = vector.shape_cast %110 : vector<1x16x16x40xf32> to vector<16x16x40xf32>
    %112 = vector.shape_cast %111 : vector<16x16x40xf32> to vector<256x40xf32>
    %113 = arith.addf %109, %112 : vector<256x40xf32>
    %c0_116 = arith.constant 0 : index
    %c0_117 = arith.constant 0 : index
    %c0_118 = arith.constant 0 : index
    %114 = vector.load %arg11[%c0_116, %c0_117, %c0_118] : memref<1x256x40xf32, #tpu.memory_space<vmem>>, vector<1x256x40xf32>
    %115 = vector.shape_cast %114 : vector<1x256x40xf32> to vector<256x40xf32>
    %116 = vector.shape_cast %113 : vector<256x40xf32> to vector<1x256x40xf32>
    tpu.vector_store %arg11[%c0_116, %c0_117, %c0_118], %116 {strides = array<i32>} : memref<1x256x40xf32, #tpu.memory_space<vmem>>, vector<1x256x40xf32>,
    return
  }
  func.func @transform_0(%arg0: i32) -> (i32, i32, i32, i32) {
    %c0_i32 = arith.constant 0 : i32
    %c0_i32_0 = arith.constant 0 : i32
    %c0_i32_1 = arith.constant 0 : i32
    %c0_i32_2 = arith.constant 0 : i32
    return %arg0, %c0_i32, %c0_i32_0, %c0_i32_1 : i32, i32, i32, i32
  }
  func.func @transform_1(%arg0: i32) -> (i32, i32, i32) {
    %c0_i32 = arith.constant 0 : i32
    %c0_i32_0 = arith.constant 0 : i32
    %c0_i32_1 = arith.constant 0 : i32
    %c0_i32_2 = arith.constant 0 : i32
    return %c0_i32, %c0_i32_0, %c0_i32_1 : i32, i32, i32
  }
  func.func @transform_2(%arg0: i32) -> (i32, i32) {
    %c0_i32 = arith.constant 0 : i32
    %c0_i32_0 = arith.constant 0 : i32
    %c0_i32_1 = arith.constant 0 : i32
    return %c0_i32, %c0_i32_0 : i32, i32
  }
  func.func @transform_3(%arg0: i32) -> (i32, i32, i32) {
    %c0_i32 = arith.constant 0 : i32
    %c0_i32_0 = arith.constant 0 : i32
    %c0_i32_1 = arith.constant 0 : i32
    %c0_i32_2 = arith.constant 0 : i32
    return %c0_i32, %c0_i32_0, %c0_i32_1 : i32, i32, i32
  }
  func.func @transform_4(%arg0: i32) -> (i32, i32) {
    %c0_i32 = arith.constant 0 : i32
    %c0_i32_0 = arith.constant 0 : i32
    %c0_i32_1 = arith.constant 0 : i32
    return %c0_i32, %c0_i32_0 : i32, i32
  }
  func.func @transform_5(%arg0: i32) -> (i32, i32) {
    %c0_i32 = arith.constant 0 : i32
    %c0_i32_0 = arith.constant 0 : i32
    %c0_i32_1 = arith.constant 0 : i32
    return %c0_i32, %c0_i32_0 : i32, i32
  }
  func.func @transform_6(%arg0: i32) -> (i32, i32) {
    %c0_i32 = arith.constant 0 : i32
    %c0_i32_0 = arith.constant 0 : i32
    %c0_i32_1 = arith.constant 0 : i32
    return %c0_i32, %c0_i32_0 : i32, i32
  }
  func.func @transform_7(%arg0: i32) -> (i32, i32) {
    %c0_i32 = arith.constant 0 : i32
    %c0_i32_0 = arith.constant 0 : i32
    %c0_i32_1 = arith.constant 0 : i32
    return %c0_i32, %c0_i32_0 : i32, i32
  }
  func.func @transform_8(%arg0: i32) -> (i32, i32) {
    %c0_i32 = arith.constant 0 : i32
    %c0_i32_0 = arith.constant 0 : i32
    %c0_i32_1 = arith.constant 0 : i32
    return %c0_i32, %c0_i32_0 : i32, i32
  }
  func.func @transform_9(%arg0: i32) -> i32 {
    %c0_i32 = arith.constant 0 : i32
    %c0_i32_0 = arith.constant 0 : i32
    return %c0_i32 : i32
  }
  func.func @transform_10(%arg0: i32) -> (i32, i32, i32) {
    %c0_i32 = arith.constant 0 : i32
    %c0_i32_0 = arith.constant 0 : i32
    %c0_i32_1 = arith.constant 0 : i32
    return %arg0, %c0_i32, %c0_i32_0 : i32, i32, i32
  }
}

</mosaic_0001>

<bundles_post_ra>
// kernel: cab_forward.1
= control target key start
LH: loop header
LB: loop body
LE: loop exit
PB: predicated region body
PF: predicated region fallthrough
CT: control target
= control target key end

     0   :  { %s10025_s0 = inlined_call_operand.hbm [shape: f32[2,16,16,40], index: 0, kind: input, shape index: {}]   ;;  %s10026_s1 = inlined_call_operand.hbm [shape: f32[3,120,40], index: 1, kind: input, shape index: {}]   ;;  %s10027_s2 = inlined_call_operand.vmem [shape: f32[1,40], index: 2, kind: input, shape index: {}]   ;;  %s10028_s3 = inlined_call_operand.hbm [shape: f32[3,120,40], index: 3, kind: input, shape index: {}]   ;;  %s10029_s4 = inlined_call_operand.vmem [shape: f32[1,40], index: 4, kind: input, shape index: {}]   ;;  %s10030_s5 = inlined_call_operand.vmem [shape: f32[40,10], index: 5, kind: input, shape index: {}]   ;;  %s10031_s6 = inlined_call_operand.vmem [shape: f32[1,10], index: 6, kind: input, shape index: {}]   ;;  %s10032_s7 = inlined_call_operand.vmem [shape: f32[10,40], index: 7, kind: input, shape index: {}]   ;;  %s10033_s8 = inlined_call_operand.vmem [shape: f32[1,40], index: 8, kind: input, shape index: {}]   ;;  %s10034_s9 = inlined_call_operand.<no memory space> [shape: f32[1], index: 9, kind: input, shape index: {}]   ;;  %s10035_s10 = inlined_call_operand.hbm [shape: f32[2,256,40], index: 10, kind: output, shape index: {}]  }
   0x1   :  { %15 = sst [smem:[#allocation3]] %s10034_s9 }
   0x2   :  { %16 = vsyncpa [#allocation5], 0 }
   0x3   :  { %18 = vsyncpa [#allocation5 + $0x1], 0 }
   0x4   :  { %19 = vsyncpa [#allocation8], 0 }
   0x5   :  { %20 = vsyncpa [#allocation6], 0 }
   0x6   :  { %22 = vsyncpa [#allocation6 + $0x1], 0  ;;  %s7409_s15 = smov 0   ;;  %s7411_s16 = smov 0  }
   0x7   :  { %s7413_s17 = smov 0   ;;  %s7415_s18 = smov 0  }
   0x8 LB: > { %s7430_s9 = sadd.s32 4294967295, %s7335_s18   ;;  %s5796_s19 = sadd.s32 4294967294, %s7335_s18   ;;  %s7335_s18 = sphi %s7415_s18, %s10153_s18   ;;  %s7331_s17 = sphi %s7413_s17, %s10152_s17   ;;  %s7327_s16 = sphi %s7411_s16, %s10151_s16   ;;  %s7323_s15 = sphi %s7409_s15, %s10150_s15  }
   0x9   : > { %p48_p0 = scmp.ne.s32.totalorder %s7327_s16, %s7323_s15  ;;  %p10036_p1 = scmp.eq.s32.totalorder %s7430_s9, 0 }
   0xa   : > { %p267_p3 = scmp.eq.s32.totalorder %s5796_s19, 1  ;;  %p5797_p5 = scmp.ge.s32.totalorder %s7335_s18, 1 }
   0xb   : > { %p7439_p4 = por %p10036_p1, %p48_p0  ;;  %p274_p7 = scmp.lt.s32.totalorder %s7335_s18, 3 }
   0xc   : > { %p7444_p6 = por %p267_p3, %p48_p0  ;;  %s7337_s23 = smov [#allocation7]  }
   0xd   : > { %s10066_s20 = scalar_select %p7439_p4, 1, 0 }
   0xe   : > { %s10067_s21 = scalar_select %p7444_p6, 1, 0 }
   0xf   : > { %p7449_p8 = pnand %p5797_p5, %p274_p7  ;;  %s286_s24 = sshll.u32 %s7337_s23, 4  ;;  %s7453_s24 = int_to_ptr.vmem [resolvable:$true] %s286_s24 }
  0x10   : > { %10068 = sst [smem:[#allocation14_spill]] %s10067_s21  ;;  %s7338_s26 = smov [#allocation9]  }
  0x11   : > { %p7110_p9 = pneg %p7449_p8  ;;  %s302_s27 = sshll.u32 %s7338_s26, 4  ;;  %s7464_s27 = int_to_ptr.vmem [resolvable:$true] %s302_s27 }
  0x12   : > { %s7179_s30 = scalar_lea.hbm %s10026_s1, 5760 }
  0x13   : > { %p7460_p11 = pnand %p7110_p9, %p10036_p1  ;;  %p7180_p12 = scmp.ne.s32.totalorder %s10026_s1, %s7179_s30 }
  0x14   : > { %p7186_p5 = scmp.lt.u32.totalorder %s7179_s30, %s10026_s1 }
  0x15   : > { %p7181_p13 = pneg %p7460_p11 }
  0x17   : > { %p7182_p0 = pnand %p7181_p13, %p7180_p12 }
  0x19   : > { %p7183_p3 = pneg %p7182_p0 }
  0x1b   : > { %p7188_p7 = pnand %p7186_p5, %p7183_p3 }
  0x1d   : > { %7191 = shalt.err (!%p7188_p7)
}
  0x1e   : > { %s7192_s19 = scalar_lea.vmem %s7453_s24, 5760  ;;  %p7200_p2 = scmp.lt.s32.totalorder %s7453_s24, %s7453_s24 }
  0x1f   : > { %p7193_p9 = scmp.ne.s32.totalorder %s7453_s24, %s7192_s19  ;;  %p7201_p12 = scmp.lt.s32.totalorder %s7192_s19, %s7192_s19 }
  0x21   : > { %p7195_p10 = pnand %p7193_p9, %p7181_p13  ;;  %p7202_p0 = por %p7201_p12, %p7200_p2 }
  0x23   : > { %p7196_p1 = pneg %p7195_p10 }
  0x25   : > { %p7203_p6 = pnand %p7202_p0, %p7196_p1 }
  0x27   : > { %7206 = shalt.err (!%p7203_p6)
}
  0x28   : > { %s10038_s23 = smov 128   ;;  %s10039_s26 = smov 8  }
  0x29   : > { %7113 = dma.hbm_to_vmem [thread:$0]  (!%p7460_p11), %s10026_s1, 5760, %s7453_s24, [#allocation8], %s10038_s23, %s10038_s23, %s10039_s26  }
  0x2a   : > { %s7207_s12 = scalar_lea.hbm %s10028_s3, 5760 }
  0x2b   : > { %p7208_p1 = scmp.ne.s32.totalorder %s10028_s3, %s7207_s12  ;;  %p7214_p10 = scmp.lt.u32.totalorder %s7207_s12, %s10028_s3 }
  0x2d   : > { %p7210_p2 = pnand %p7208_p1, %p7181_p13 }
  0x2f   : > { %p7211_p6 = pneg %p7210_p2 }
  0x31   : > { %p7216_p3 = pnand %p7214_p10, %p7211_p6 }
  0x33   : > { %7219 = shalt.err (!%p7216_p3)
}
  0x34   : > { %s7220_s24 = scalar_lea.vmem %s7464_s27, 5760  ;;  %p7228_p12 = scmp.lt.s32.totalorder %s7464_s27, %s7464_s27 }
  0x35   : > { %p7221_p5 = scmp.ne.s32.totalorder %s7464_s27, %s7220_s24  ;;  %p7229_p0 = scmp.lt.s32.totalorder %s7220_s24, %s7220_s24 }
  0x37   : > { %p7223_p7 = pnand %p7221_p5, %p7181_p13  ;;  %p7230_p1 = por %p7229_p0, %p7228_p12 }
  0x39   : > { %p7224_p9 = pneg %p7223_p7 }
  0x3b   : > { %p7231_p2 = pnand %p7230_p1, %p7224_p9 }
  0x3d   : > { %7234 = shalt.err (!%p7231_p2)
}
  0x3e   : > { %7116 = dma.hbm_to_vmem [thread:$0]  (!%p7460_p11), %s10028_s3, 5760, %s7464_s27, [#allocation8], %s10038_s23, %s10038_s23, %s10039_s26  }
  0x3f   : > { %s7525_s25 = sadd.s32 1, %s7335_s18   ;;  %s35_s29 = sadd.s32 1, %s7331_s17 }
  0x40   : > { %s32_s30 = ssub.s32 %s7335_s18, %s7525_s25  ;;  %p42_p13 = scmp.ne.s32.totalorder %s7331_s17, %s7327_s16 }
  0x41   : > { %p33_p6 = scmp.eq.s32.totalorder %s32_s30, 0  ;;  %p43_p10 = scmp.eq.s32.totalorder %s7335_s18, 0 }
  0x42   : > { %p10071_p3 = scmp.eq.s32.totalorder %s7430_s9, 1  ;;  %p7127_p7 = scmp.lt.s32.totalorder %s7335_s18, 2 }
  0x43   : > { %s7541_s12 = scalar_select %p33_p6, %s7331_s17, %s35_s29  }
  0x44   : > { %p7535_p5 = por %p10071_p3, %p42_p13  ;;  %p44_p9 = por %p43_p10, %p42_p13 }
  0x45   : > { %s334_s13 = sand.u32 1, %s7331_s17   ;;  %s6011_s27 = sshll.u32 %s7335_s18, 12 }
  0x46   : > { %s10072_s11 = scalar_select %p7535_p5, 1, 0 }
  0x47   : > { %s5801_s14 = sshll.u32 %s334_s13, 8  ;;  %s7548_s21 = scalar_lea.hbm %s10025_s0, %s6011_s27 }
  0x48   : > { %s338_s28 = scalar_lea.vmem [#allocation4], %s5801_s14  ;;  %p7552_p11 = pnand %p7127_p7, %p44_p9 }
  0x49   : > { %s345_s30 = sshll.u32 %s338_s28, 4  ;;  %s7556_s23 = scalar_lea.sflag [#allocation5], %s334_s13  ;;  %s7550_s30 = int_to_ptr.vmem [resolvable:$true] %s345_s30 }
  0x4a   : > { %s7235_s26 = scalar_lea.hbm %s7548_s21, 4096  ;;  %p7237_p0 = pneg %p7552_p11 }
  0x4b   : > { %p7236_p12 = scmp.ne.s32.totalorder %s7548_s21, %s7235_s26  ;;  %s7240_s19 = scalar_lea.hbm %s10025_s0, 8192 }
  0x4c   : > { %p7241_p13 = scmp.lt.u32.totalorder %s7548_s21, %s10025_s0  ;;  %p7242_p6 = scmp.lt.u32.totalorder %s7240_s19, %s7235_s26 }
  0x4d   : > { %p7238_p1 = pnand %p7237_p0, %p7236_p12  ;;  %p7244_p3 = scmp.lt.u32.totalorder %s7235_s26, %s7548_s21 }
  0x4e   : > { %p7243_p10 = por %p7242_p6, %p7241_p13 }
  0x4f   : > { %p7239_p2 = pneg %p7238_p1 }
  0x50   : > { %p7245_p7 = por %p7244_p3, %p7243_p10 }
  0x52   : > { %p7246_p9 = pnand %p7245_p7, %p7239_p2 }
  0x54   : > { %7249 = shalt.err (!%p7246_p9)
}
  0x55   : > { %s7250_s13 = scalar_lea.vmem %s7550_s30, 4096  ;;  %s7341_s14 = smov [#allocation4]  }
  0x56   : > { %p7251_p12 = scmp.ne.s32.totalorder %s7550_s30, %s7250_s13  ;;  %s7255_s27 = sshll.u32 %s7341_s14, 4  ;;  %s7256_s27 = int_to_ptr.vmem [resolvable:$false] %s7255_s27 }
  0x57   : > { %s7257_s24 = scalar_lea.vmem %s7256_s27, 8192  ;;  %p7258_p4 = scmp.lt.s32.totalorder %s7550_s30, %s7256_s27 }
  0x58   : > { %p7253_p1 = pnand %p7251_p12, %p7237_p0  ;;  %p7259_p13 = scmp.lt.s32.totalorder %s7257_s24, %s7250_s13 }
  0x5a   : > { %p7254_p5 = pneg %p7253_p1  ;;  %p7260_p6 = por %p7259_p13, %p7258_p4 }
  0x5c   : > { %p7261_p10 = pnand %p7260_p6, %p7254_p5 }
  0x5e   : > { %7264 = shalt.err (!%p7261_p10)
}
  0x5f   : > { %s10074_s26 = smov 8   ;;  %s10075_s19 = smov 128  }
  0x60   : > { %7120 = dma.hbm_to_vmem [thread:$0]  (!%p7552_p11), %s7548_s21, 4096, %s7550_s30, %s7556_s23, %s10075_s19, %s10075_s19, %s10074_s26  }
  0x61   : > { %357 = sbr.rel (%p7449_p8) target bundleno = 1974 (0x7b6), region = 60 }
  0x68   : > { %s7590_s28 = sand.u32 1, %s7327_s16   ;;  %p10076_p4 = scmp.ne.s32.totalorder %s10066_s20, 0 }
  0x69   : > { %s5805_s13 = sshll.u32 %s7590_s28, 8  ;;  %s360_s14 = scalar_lea.sflag [#allocation5], %s7590_s28 }
  0x6a   : > { %s7596_s29 = scalar_lea.vmem [#allocation4], %s5805_s13 }
  0x6b   : > { %7310 = dma.done.wait (%p10076_p4), %s360_s14, 4096  }
  0x6c   : > { %7312 = vsyncadd (%p10076_p4), %s360_s14, 4294963200  ;;  %p10077_p5 = scmp.eq.s32.totalorder %s7430_s9, 0 }
  0x6e   : > { %7314 = dma.done.wait (%p10077_p5), [#allocation8], 11520   ;;  %p10078_p8 = pmov %p10077_p5 }
  0x6f   : > { %vm408_vm0 = vcmask 326656   ;;  %vm411_vm1 = vcmask 320512   ;;  %v10042_v0 = vmov 0.0   ;;  %v464_v1 = vld [vmem:[%s7596_s29] sm:$0xff]  ;;  %v465_v2 = vld [vmem:[%s7596_s29 + $0x8] sm:$0xff]  ;;  %v467_v3 = vld [vmem:[%s7596_s29 + $0x18] sm:$0xff] }
  0x70   : > { %7316 = vsyncadd (%p10078_p8), [#allocation8], 4294955776  ;;  %413 = vst.msk [vmem:[#allocation2 + $0x18] sm:$0xff] %vm408_vm0, %v10042_v0  ;;  %v466_v4 = vld [vmem:[%s7596_s29 + $0x10] sm:$0xff]  ;;  %v469_v5 = vld [vmem:[%s7596_s29 + $0x28] sm:$0xff]  ;;  %s7343_s20 = smov 80  }
  0x71   : > { %414 = vst.msk [vmem:[#allocation2 + $0x20] sm:$0xff] %vm408_vm0, %v10042_v0  ;;  %409 = vst.msk [vmem:[#allocation2] sm:$0xff] %vm408_vm0, %v10042_v0  ;;  %v468_v6 = vld [vmem:[%s7596_s29 + $0x20] sm:$0xff]  ;;  %v471_v7 = vld [vmem:[%s7596_s29 + $0x38] sm:$0xff]  ;;  %s7344_s22 = smov 40   ;;  %vm913_vm2 = vcmask 654336  }
  0x72   : > { %415 = vst.msk [vmem:[#allocation2 + $0x28] sm:$0x3] %vm411_vm1, %v10042_v0  ;;  %412 = vst.msk [vmem:[#allocation2 + $0x10] sm:$0x3] %vm411_vm1, %v10042_v0  ;;  %v470_v8 = vld [vmem:[%s7596_s29 + $0x30] sm:$0xff]  ;;  %v473_v9 = vld [vmem:[%s7596_s29 + $0x48] sm:$0xff] }
  0x73   : > { %410 = vst.msk [vmem:[#allocation2 + $0x8] sm:$0xff] %vm408_vm0, %v10042_v0  ;;  %416 = vst.msk [vmem:[#allocation2 + $0x30] sm:$0xff] %vm408_vm0, %v10042_v0  ;;  %v472_v10 = vld [vmem:[%s7596_s29 + $0x40] sm:$0xff]  ;;  %v475_v11 = vld [vmem:[%s7596_s29 + $0x58] sm:$0xff]  ;;  %vm1393_vm3 = vcmask 982016   ;;  %s2861_s23 = sld [smem:[#allocation3]] }
  0x74   : > { %417 = vst.msk [vmem:[#allocation2 + $0x38] sm:$0xff] %vm408_vm0, %v10042_v0  ;;  %419 = vst.msk [vmem:[#allocation2 + $0x48] sm:$0xff] %vm408_vm0, %v10042_v0  ;;  %v474_v12 = vld [vmem:[%s7596_s29 + $0x50] sm:$0xff]  ;;  %v477_v13 = vld [vmem:[%s7596_s29 + $0x68] sm:$0xff]  ;;  %s9882_s27 = scalar_lea.vmem [#allocation10], %s5805_s13  ;;  %s6012_s13 = sshll.u32 %s7430_s9, 12 }
  0x75   : > { %418 = vst.msk [vmem:[#allocation2 + $0x40] sm:$0x3] %vm411_vm1, %v10042_v0  ;;  %421 = vst.msk [vmem:[#allocation2 + $0x58] sm:$0x3] %vm411_vm1, %v10042_v0  ;;  %v476_v14 = vld [vmem:[%s7596_s29 + $0x60] sm:$0xff]  ;;  %v479_v15 = vld [vmem:[%s7596_s29 + $0x78] sm:$0xff]  ;;  %s9949_s19 = scalar_lea.hbm %s10035_s10, %s6012_s13 }
  0x76   : > { %420 = vst.msk [vmem:[#allocation2 + $0x50] sm:$0xff] %vm408_vm0, %v10042_v0  ;;  %422 = vst.msk [vmem:[#allocation2 + $0x60] sm:$0xff] %vm408_vm0, %v10042_v0  ;;  %v478_v16 = vld [vmem:[%s7596_s29 + $0x70] sm:$0xff]  ;;  %v481_v17 = vld [vmem:[%s7596_s29 + $0x88] sm:$0xff]  ;;  %s5704_s24 = sshll.u32 %s9882_s27, 4  ;;  %s5691_s9 = scalar_lea.sflag [#allocation6], %s7590_s28  ;;  %s9953_s24 = int_to_ptr.vmem [resolvable:$true] %s5704_s24 }
  0x77   : > { %423 = vst.msk [vmem:[#allocation2 + $0x68] sm:$0xff] %vm408_vm0, %v10042_v0  ;;  %425 = vst.msk [vmem:[#allocation2 + $0x78] sm:$0xff] %vm408_vm0, %v10042_v0  ;;  %v480_v18 = vld [vmem:[%s7596_s29 + $0x80] sm:$0xff]  ;;  %v483_v19 = vld [vmem:[%s7596_s29 + $0x98] sm:$0xff]  ;;  %s7265_s14 = scalar_lea.vmem %s9953_s24, 4096  ;;  %p10146_p0 = scmp.ne.s32.totalorder %s10072_s11, 0 }
  0x78   : > { %424 = vst.msk [vmem:[#allocation2 + $0x70] sm:$0x3] %vm411_vm1, %v10042_v0  ;;  %427 = vst.msk [vmem:[#allocation2 + $0x88] sm:$0x3] %vm411_vm1, %v10042_v0  ;;  %v482_v20 = vld [vmem:[%s7596_s29 + $0x90] sm:$0xff]  ;;  %v485_v21 = vld [vmem:[%s7596_s29 + $0xa8] sm:$0xff]  ;;  %p7266_p11 = scmp.ne.s32.totalorder %s9953_s24, %s7265_s14 }
  0x79   : > { %426 = vst.msk [vmem:[#allocation2 + $0x80] sm:$0xff] %vm408_vm0, %v10042_v0  ;;  %428 = vst.msk [vmem:[#allocation2 + $0x90] sm:$0xff] %vm408_vm0, %v10042_v0  ;;  %v484_v22 = vld [vmem:[%s7596_s29 + $0xa0] sm:$0xff]  ;;  %v487_v23 = vld [vmem:[%s7596_s29 + $0xb8] sm:$0xff] }
  0x7a   : > { %429 = vst.msk [vmem:[#allocation2 + $0x98] sm:$0xff] %vm408_vm0, %v10042_v0  ;;  %431 = vst.msk [vmem:[#allocation2 + $0xa8] sm:$0xff] %vm408_vm0, %v10042_v0  ;;  %v486_v24 = vld [vmem:[%s7596_s29 + $0xb0] sm:$0xff]  ;;  %v1378_v35 = vld [vmem:[#allocation7 + $0x78] sm:$0xff]  ;;  %p7267_p2 = pnand %p7266_p11, %p10146_p0 }
  0x7b   : > { %430 = vst.msk [vmem:[#allocation2 + $0xa0] sm:$0x3] %vm411_vm1, %v10042_v0  ;;  %433 = vst.msk [vmem:[#allocation2 + $0xb8] sm:$0x3] %vm411_vm1, %v10042_v0  ;;  %v1379_v36 = vld [vmem:[#allocation7 + $0x80] sm:$0xff]  ;;  %v1380_v39 = vld [vmem:[#allocation7 + $0x88] sm:$0xff] }
  0x7c   : > { %432 = vst.msk [vmem:[#allocation2 + $0xb0] sm:$0xff] %vm408_vm0, %v10042_v0  ;;  %434 = vst.msk [vmem:[#allocation2 + $0xc0] sm:$0xff] %vm408_vm0, %v10042_v0  ;;  %v6792_v38 = vpack.c.bf16 %v1379_v36, %v1378_v35  ;;  %v1381_v40 = vld [vmem:[#allocation7 + $0x90] sm:$0xff]  ;;  %v489_v41 = vld [vmem:[%s7596_s29 + $0xc8] sm:$0xff]  ;;  %p7268_p3 = pneg %p7267_p2 }
  0x7d   : > { %435 = vst.msk [vmem:[#allocation2 + $0xc8] sm:$0xff] %vm408_vm0, %v10042_v0  ;;  %437 = vst.msk [vmem:[#allocation2 + $0xd8] sm:$0xff] %vm408_vm0, %v10042_v0  ;;  %v488_v42 = vld [vmem:[%s7596_s29 + $0xc0] sm:$0xff]  ;;  %v6796_v44 = vpack.c.bf16 %v1381_v40, %v1380_v39  ;;  %v1382_v45 = vld [vmem:[#allocation7 + $0x98] sm:$0xff] }
  0x7e   : > { %436 = vst.msk [vmem:[#allocation2 + $0xd0] sm:$0x3] %vm411_vm1, %v10042_v0  ;;  %439 = vst.msk [vmem:[#allocation2 + $0xe8] sm:$0x3] %vm411_vm1, %v10042_v0  ;;  %6793 = vmatprep.subr.bf16.mxu0 %v6792_v38  ;;  %v1383_v46 = vld [vmem:[#allocation7 + $0xa0] sm:$0xff]  ;;  %v491_v47 = vld [vmem:[%s7596_s29 + $0xd8] sm:$0xff] }
  0x7f   : > { %438 = vst.msk [vmem:[#allocation2 + $0xe0] sm:$0xff] %vm408_vm0, %v10042_v0  ;;  %440 = vst.msk [vmem:[#allocation2 + $0xf0] sm:$0xff] %vm408_vm0, %v10042_v0  ;;  %6795 = vmatpush3.bf16.msra.mxu0 %v6792_v38  ;;  %v490_v48 = vld [vmem:[%s7596_s29 + $0xd0] sm:$0xff]  ;;  %v6800_v49 = vpack.c.bf16 %v1383_v46, %v1382_v45  ;;  %v1384_v50 = vld [vmem:[#allocation7 + $0xa8] sm:$0xff] }
  0x80   : > { %441 = vst.msk [vmem:[#allocation2 + $0xf8] sm:$0xff] %vm408_vm0, %v10042_v0  ;;  %443 = vst.msk [vmem:[#allocation2 + $0x108] sm:$0xff] %vm408_vm0, %v10042_v0  ;;  %6797 = vmatprep.subr.bf16.mxu0 %v6796_v44  ;;  %v1385_v51 = vld [vmem:[#allocation7 + $0xb0] sm:$0xff]  ;;  %v493_v52 = vld [vmem:[%s7596_s29 + $0xe8] sm:$0xff] }
  0x81   : > { %442 = vst.msk [vmem:[#allocation2 + $0x100] sm:$0x3] %vm411_vm1, %v10042_v0  ;;  %445 = vst.msk [vmem:[#allocation2 + $0x118] sm:$0x3] %vm411_vm1, %v10042_v0  ;;  %v492_v53 = vld [vmem:[%s7596_s29 + $0xe0] sm:$0xff]  ;;  %v495_v56 = vld [vmem:[%s7596_s29 + $0xf8] sm:$0xff]  ;;  %v6804_v57 = vpack.c.bf16 %v1385_v51, %v1384_v50 }
  0x82   : > { %444 = vst.msk [vmem:[#allocation2 + $0x110] sm:$0xff] %vm408_vm0, %v10042_v0  ;;  %446 = vst.msk [vmem:[#allocation2 + $0x120] sm:$0xff] %vm408_vm0, %v10042_v0  ;;  %v494_v58 = vld [vmem:[%s7596_s29 + $0xf0] sm:$0xff]  ;;  %v1386_v59 = vld [vmem:[#allocation7 + $0xb8] sm:$0xff] }
  0x83   : > { %447 = vst.msk [vmem:[#allocation2 + $0x128] sm:$0xff] %vm408_vm0, %v10042_v0  ;;  %449 = vst.msk [vmem:[#allocation2 + $0x138] sm:$0xff] %vm408_vm0, %v10042_v0  ;;  %6799 = vmatpush3.bf16.msra.mxu0 %v6796_v44  ;;  %v1387_v60 = vld [vmem:[#allocation7 + $0xc0] sm:$0xff] }
  0x84   : > { %448 = vst.msk [vmem:[#allocation2 + $0x130] sm:$0x3] %vm411_vm1, %v10042_v0  ;;  %451 = vst.msk [vmem:[#allocation2 + $0x148] sm:$0x3] %vm411_vm1, %v10042_v0  ;;  %6801 = vmatprep.subr.bf16.mxu0 %v6800_v49  ;;  %v6808_v63 = vpack.c.bf16 %v1387_v60, %v1386_v59 }
  0x85   : > { %450 = vst.msk [vmem:[#allocation2 + $0x140] sm:$0xff] %vm408_vm0, %v10042_v0  ;;  %452 = vst.msk [vmem:[#allocation2 + $0x150] sm:$0xff] %vm408_vm0, %v10042_v0 }
  0x86   : > { %453 = vst.msk [vmem:[#allocation2 + $0x158] sm:$0xff] %vm408_vm0, %v10042_v0  ;;  %455 = vst.msk [vmem:[#allocation2 + $0x168] sm:$0xff] %vm408_vm0, %v10042_v0 }
  0x87   : > { %454 = vst.msk [vmem:[#allocation2 + $0x160] sm:$0x3] %vm411_vm1, %v10042_v0  ;;  %457 = vst.msk [vmem:[#allocation2 + $0x178] sm:$0x3] %vm411_vm1, %v10042_v0  ;;  %6803 = vmatpush3.bf16.msra.mxu0 %v6800_v49 }
  0x88   : > { %456 = vst.msk [vmem:[#allocation2 + $0x170] sm:$0xff] %vm408_vm0, %v10042_v0  ;;  %458 = vst.msk [vmem:[#allocation2 + $0x180] sm:$0xff] %vm408_vm0, %v10042_v0  ;;  %6805 = vmatprep.subr.bf16.mxu0 %v6804_v57 }
  0x89   : > { %459 = vst.msk [vmem:[#allocation2 + $0x188] sm:$0xff] %vm408_vm0, %v10042_v0  ;;  %461 = vst.msk [vmem:[#allocation2 + $0x198] sm:$0xff] %vm408_vm0, %v10042_v0 }
  0x8a   : > { %460 = vst.msk [vmem:[#allocation2 + $0x190] sm:$0x3] %vm411_vm1, %v10042_v0  ;;  %463 = vst.msk [vmem:[#allocation2 + $0x1a8] sm:$0x3] %vm411_vm1, %v10042_v0 }
  0x8b   : > { %462 = vst.msk [vmem:[#allocation2 + $0x1a0] sm:$0xff] %vm408_vm0, %v10042_v0  ;;  %497 = vst.msk [vmem:[#allocation2 + $0x19] sm:$0xff] %vm408_vm0, %v464_v1  ;;  %v1388_v1 = vld [vmem:[#allocation7 + $0xc8] sm:$0xff]  ;;  %6807 = vmatpush3.bf16.msra.mxu0 %v6804_v57 }
  0x8c   : > { %498 = vst.msk [vmem:[#allocation2 + $0x21] sm:$0xff] %vm408_vm0, %v465_v2  ;;  %500 = vst.msk [vmem:[#allocation2 + $0x39] sm:$0xff] %vm408_vm0, %v467_v3  ;;  %v1389_v2 = vld [vmem:[#allocation7 + $0xd0] sm:$0xff]  ;;  %6809 = vmatprep.subr.bf16.mxu0 %v6808_v63 }
  0x8d   : > { %499 = vst.msk [vmem:[#allocation2 + $0x31] sm:$0xff] %vm408_vm0, %v466_v4  ;;  %502 = vst.msk [vmem:[#allocation2 + $0x51] sm:$0xff] %vm408_vm0, %v469_v5  ;;  %v6812_v5 = vpack.c.bf16 %v1389_v2, %v1388_v1 }
  0x8e   : > { %501 = vst.msk [vmem:[#allocation2 + $0x49] sm:$0xff] %vm408_vm0, %v468_v6  ;;  %504 = vst.msk [vmem:[#allocation2 + $0x69] sm:$0xff] %vm408_vm0, %v471_v7  ;;  %v1390_v6 = vld [vmem:[#allocation7 + $0xd8] sm:$0xff]  ;;  %v1391_v7 = vld [vmem:[#allocation7 + $0xe0] sm:$0xff] }
  0x8f   : > { %503 = vst.msk [vmem:[#allocation2 + $0x61] sm:$0xff] %vm408_vm0, %v470_v8  ;;  %506 = vst.msk [vmem:[#allocation2 + $0x81] sm:$0xff] %vm408_vm0, %v473_v9  ;;  %6811 = vmatpush3.bf16.msra.mxu0 %v6808_v63 }
  0x90   : > { %505 = vst.msk [vmem:[#allocation2 + $0x79] sm:$0xff] %vm408_vm0, %v472_v10  ;;  %508 = vst.msk [vmem:[#allocation2 + $0x99] sm:$0xff] %vm408_vm0, %v475_v11  ;;  %6813 = vmatprep.subr.bf16.mxu0 %v6812_v5  ;;  %v6816_v10 = vpack.c.bf16 %v1391_v7, %v1390_v6 }
  0x91   : > { %507 = vst.msk [vmem:[#allocation2 + $0x91] sm:$0xff] %vm408_vm0, %v474_v12  ;;  %510 = vst.msk [vmem:[#allocation2 + $0xb1] sm:$0xff] %vm408_vm0, %v477_v13  ;;  %v1392_v13 = vld [vmem:[#allocation7 + $0xe8] sm:$0xff] }
  0x92   : > { %509 = vst.msk [vmem:[#allocation2 + $0xa9] sm:$0xff] %vm408_vm0, %v476_v14  ;;  %512 = vst.msk [vmem:[#allocation2 + $0xc9] sm:$0xff] %vm408_vm0, %v479_v15  ;;  %v7761_v26 = vld [vmem:[#allocation2 + $0x19] sm:$0xff] }
  0x93   : > { %511 = vst.msk [vmem:[#allocation2 + $0xc1] sm:$0xff] %vm408_vm0, %v478_v16  ;;  %514 = vst.msk [vmem:[#allocation2 + $0xe1] sm:$0xff] %vm408_vm0, %v481_v17  ;;  %v7759_v25 = vld [vmem:[#allocation2 + $0x1a] sm:$0xff]  ;;  %1089 = vrot.lane.b32.xlu0 %v7761_v26, %s7344_s22  ;;  %v7770_v27 = vld [vmem:[#allocation2 + $0x22] sm:$0xff]  ;;  %6815 = vmatpush3.bf16.msra.mxu0 %v6812_v5 }
  0x94   : > { %513 = vst.msk [vmem:[#allocation2 + $0xd9] sm:$0xff] %vm408_vm0, %v480_v18  ;;  %516 = vst.msk [vmem:[#allocation2 + $0xf9] sm:$0xff] %vm408_vm0, %v483_v19  ;;  %1217 = vrot.lane.b32.xlu1 %v7759_v25, %s7343_s20  ;;  %v7772_v28 = vld [vmem:[#allocation2 + $0x21] sm:$0xff]  ;;  %v7778_v29 = vld [vmem:[#allocation2 + $0x39] sm:$0xff]  ;;  %6817 = vmatprep.subr.bf16.mxu0 %v6816_v10 }
  0x95   : > { %515 = vst.msk [vmem:[#allocation2 + $0xf1] sm:$0xff] %vm408_vm0, %v482_v20  ;;  %518 = vst.msk [vmem:[#allocation2 + $0x111] sm:$0xff] %vm408_vm0, %v485_v21  ;;  %v7780_v30 = vld [vmem:[#allocation2 + $0x31] sm:$0xff]  ;;  %v7786_v31 = vld [vmem:[#allocation2 + $0x3a] sm:$0xff] }
  0x96   : > { %517 = vst.msk [vmem:[#allocation2 + $0x109] sm:$0xff] %vm408_vm0, %v484_v22  ;;  %520 = vst.msk [vmem:[#allocation2 + $0x129] sm:$0xff] %vm408_vm0, %v487_v23  ;;  %v7788_v32 = vld [vmem:[#allocation2 + $0x32] sm:$0xff]  ;;  %v7796_v34 = vld [vmem:[#allocation2 + $0x49] sm:$0xff] }
  0x97   : > { %519 = vst.msk [vmem:[#allocation2 + $0x121] sm:$0xff] %vm408_vm0, %v486_v24  ;;  %1091 = vrot.lane.b32.xlu0 %v7772_v28, %s7344_s22  ;;  %v7794_v33 = vld [vmem:[#allocation2 + $0x51] sm:$0xff]  ;;  %522 = vst.msk [vmem:[#allocation2 + $0x141] sm:$0xff] %vm408_vm0, %v489_v41  ;;  %v7820_v54 = vld [vmem:[#allocation2 + $0x69] sm:$0xff]  ;;  %6819 = vmatpush3.bf16.msra.mxu0 %v6816_v10 }
  0x98   : > { %1219 = vrot.lane.b32.xlu1 %v7770_v27, %s7343_s20  ;;  %v7798_v37 = vld [vmem:[#allocation2 + $0x52] sm:$0xff]  ;;  %v7806_v43 = vld [vmem:[#allocation2 + $0x4a] sm:$0xff]  ;;  %521 = vst.msk [vmem:[#allocation2 + $0x139] sm:$0xff] %vm408_vm0, %v488_v42  ;;  %524 = vst.msk [vmem:[#allocation2 + $0x159] sm:$0xff] %vm408_vm0, %v491_v47  ;;  %6332 = vmatprep.subr.mxu0 %v1392_v13 }
  0x99   : > { %523 = vst.msk [vmem:[#allocation2 + $0x151] sm:$0xff] %vm408_vm0, %v490_v48  ;;  %v7822_v55 = vld [vmem:[#allocation2 + $0x61] sm:$0xff]  ;;  %526 = vst.msk [vmem:[#allocation2 + $0x171] sm:$0xff] %vm408_vm0, %v493_v52  ;;  %v7834_v61 = vld [vmem:[#allocation2 + $0x6a] sm:$0xff] }
  0x9a   : > { %525 = vst.msk [vmem:[#allocation2 + $0x169] sm:$0xff] %vm408_vm0, %v492_v53  ;;  %528 = vst.msk [vmem:[#allocation2 + $0x189] sm:$0xff] %vm408_vm0, %v495_v56  ;;  %v7836_v62 = vld [vmem:[#allocation2 + $0x62] sm:$0xff]  ;;  %v7844_v4 = vld [vmem:[#allocation2 + $0x79] sm:$0xff] }
  0x9b   : > { %1093 = vrot.lane.b32.xlu0 %v7780_v30, %s7344_s22  ;;  %527 = vst.msk [vmem:[#allocation2 + $0x181] sm:$0xff] %vm408_vm0, %v494_v58  ;;  %v7842_v3 = vld [vmem:[#allocation2 + $0x81] sm:$0xff]  ;;  %v7858_v11 = vld [vmem:[#allocation2 + $0x99] sm:$0xff]  ;;  %v7860_v12 = vld [vmem:[#allocation2 + $0x91] sm:$0xff]  ;;  %6333 = vmatpush3.msra.mxu0 %v1392_v13 }
  0x9c   : > { %1095 = vrot.lane.b32.xlu1 %v7778_v29, %s7344_s22  ;;  %v7850_v8 = vld [vmem:[#allocation2 + $0x82] sm:$0xff]  ;;  %v7852_v9 = vld [vmem:[#allocation2 + $0x7a] sm:$0xff]  ;;  %v7868_v15 = vld [vmem:[#allocation2 + $0x92] sm:$0xff] }
  0x9d   : > { %v7866_v14 = vld [vmem:[#allocation2 + $0x9a] sm:$0xff]  ;;  %v7874_v16 = vld [vmem:[#allocation2 + $0xb1] sm:$0xff]  ;;  %v7876_v17 = vld [vmem:[#allocation2 + $0xa9] sm:$0xff] }
  0x9e   : > { %v7882_v18 = vld [vmem:[#allocation2 + $0xb2] sm:$0xff]  ;;  %v7884_v19 = vld [vmem:[#allocation2 + $0xaa] sm:$0xff]  ;;  %v7892_v21 = vld [vmem:[#allocation2 + $0xc1] sm:$0xff] }
  0x9f   : > { %1221 = vrot.lane.b32.xlu0 %v7788_v32, %s7343_s20  ;;  %v7890_v20 = vld [vmem:[#allocation2 + $0xc9] sm:$0xff]  ;;  %v7906_v24 = vld [vmem:[#allocation2 + $0xe1] sm:$0xff]  ;;  %v7908_v35 = vld [vmem:[#allocation2 + $0xd9] sm:$0xff] }
  0xa0   : > { %1223 = vrot.lane.b32.xlu1 %v7786_v31, %s7343_s20  ;;  %v7898_v22 = vld [vmem:[#allocation2 + $0xca] sm:$0xff]  ;;  %v7900_v23 = vld [vmem:[#allocation2 + $0xc2] sm:$0xff]  ;;  %v7916_v38 = vld [vmem:[#allocation2 + $0xda] sm:$0xff] }
  0xa1   : > { %v7914_v36 = vld [vmem:[#allocation2 + $0xe2] sm:$0xff]  ;;  %v7922_v39 = vld [vmem:[#allocation2 + $0xf9] sm:$0xff]  ;;  %v7924_v40 = vld [vmem:[#allocation2 + $0xf1] sm:$0xff] }
  0xa2   : > { %v7930_v41 = vld [vmem:[#allocation2 + $0xfa] sm:$0xff]  ;;  %v7932_v42 = vld [vmem:[#allocation2 + $0xf2] sm:$0xff]  ;;  %v7940_v45 = vld [vmem:[#allocation2 + $0x109] sm:$0xff] }
  0xa3   : > { %1097 = vrot.lane.b32.xlu0 %v7796_v34, %s7344_s22  ;;  %v7938_v44 = vld [vmem:[#allocation2 + $0x111] sm:$0xff]  ;;  %v7954_v48 = vld [vmem:[#allocation2 + $0x129] sm:$0xff]  ;;  %v7956_v49 = vld [vmem:[#allocation2 + $0x121] sm:$0xff] }
  0xa4   : > { %1099 = vrot.lane.b32.xlu1 %v7794_v33, %s7344_s22  ;;  %v7946_v46 = vld [vmem:[#allocation2 + $0x112] sm:$0xff]  ;;  %v7948_v47 = vld [vmem:[#allocation2 + $0x10a] sm:$0xff]  ;;  %10079 = vst [vmem:[#allocation15_spill] sm:$0xff] %v7956_v49  ;;  %v7964_v51 = vld [vmem:[#allocation2 + $0x122] sm:$0xff] }
  0xa5   : > { %v7962_v50 = vld [vmem:[#allocation2 + $0x12a] sm:$0xff]  ;;  %10081 = vst [vmem:[#allocation17_spill] sm:$0xff] %v7964_v51  ;;  %v947_v53 = vld [vmem:[#allocation7 + $0x8] sm:$0xff]  ;;  %v7970_v57 = vld [vmem:[#allocation2 + $0x141] sm:$0xff] }
  0xa6   : > { %10080 = vst [vmem:[#allocation16_spill] sm:$0xff] %v7962_v50  ;;  %v946_v52 = vld [vmem:[#allocation7] sm:$0xff]  ;;  %10082 = vst [vmem:[#allocation18_spill] sm:$0xff] %v7970_v57  ;;  %v7972_v58 = vld [vmem:[#allocation2 + $0x139] sm:$0xff] }
  0xa7   : > { %1225 = vrot.lane.b32.xlu0 %v7806_v43, %s7343_s20  ;;  %v6820_v56 = vpack.c.bf16 %v947_v53, %v946_v52  ;;  %10083 = vst [vmem:[#allocation19_spill] sm:$0xff] %v7972_v58  ;;  %v7978_v59 = vld [vmem:[#allocation2 + $0x142] sm:$0xff]  ;;  %v7980_v60 = vld [vmem:[#allocation2 + $0x13a] sm:$0xff]  ;;  %v7988_v1 = vld [vmem:[#allocation2 + $0x151] sm:$0xff] }
  0xa8   : > { %1227 = vrot.lane.b32.xlu1 %v7798_v37, %s7343_s20  ;;  %10084 = vst [vmem:[#allocation20_spill] sm:$0xff] %v7978_v59  ;;  %10085 = vst [vmem:[#allocation21_spill] sm:$0xff] %v7980_v60  ;;  %v7986_v63 = vld [vmem:[#allocation2 + $0x159] sm:$0xff]  ;;  %v8002_v6 = vld [vmem:[#allocation2 + $0x171] sm:$0xff] }
  0xa9   : > { %6821 = vmatprep.subr.bf16.mxu0 %v6820_v56  ;;  %10086 = vst [vmem:[#allocation22_spill] sm:$0xff] %v7986_v63  ;;  %10087 = vst [vmem:[#allocation23_spill] sm:$0xff] %v7988_v1  ;;  %v7994_v2 = vld [vmem:[#allocation2 + $0x15a] sm:$0xff]  ;;  %v7996_v5 = vld [vmem:[#allocation2 + $0x152] sm:$0xff] }
  0xaa   : > { %10088 = vst [vmem:[#allocation24_spill] sm:$0xff] %v7994_v2  ;;  %10089 = vst [vmem:[#allocation25_spill] sm:$0xff] %v7996_v5  ;;  %v8004_v7 = vld [vmem:[#allocation2 + $0x169] sm:$0xff]  ;;  %v8010_v10 = vld [vmem:[#allocation2 + $0x18] sm:$0xff] }
  0xab   : > { %1101 = vrot.lane.b32.xlu0 %v7822_v55, %s7344_s22  ;;  %10090 = vst [vmem:[#allocation26_spill] sm:$0xff] %v8002_v6  ;;  %10091 = vst [vmem:[#allocation27_spill] sm:$0xff] %v8004_v7  ;;  %v8012_v13 = vld [vmem:[#allocation2 + $0x172] sm:$0xff]  ;;  %v8014_v52 = vld [vmem:[#allocation2 + $0x16a] sm:$0xff] }
  0xac   : > { %1103 = vrot.lane.b32.xlu1 %v7820_v54, %s7344_s22  ;;  %10092 = vst [vmem:[#allocation28_spill] sm:$0xff] %v8010_v10  ;;  %10093 = vst [vmem:[#allocation29_spill] sm:$0xff] %v8012_v13 }
  0xad   : > { %10094 = vst [vmem:[#allocation30_spill] sm:$0xff] %v8014_v52 }
  0xaf   : > { %1229 = vrot.lane.b32.xlu0 %v7836_v62, %s7343_s20 }
  0xb0   : > { %1231 = vrot.lane.b32.xlu1 %v7834_v61, %s7343_s20 }
  0xb3   : > { %1105 = vrot.lane.b32.xlu0 %v7844_v4, %s7344_s22 }
  0xb4   : > { %1107 = vrot.lane.b32.xlu1 %v7842_v3, %s7344_s22 }
  0xb7   : > { %1233 = vrot.lane.b32.xlu0 %v7852_v9, %s7343_s20 }
  0xb8   : > { %1235 = vrot.lane.b32.xlu1 %v7850_v8, %s7343_s20 }
  0xbb   : > { %1109 = vrot.lane.b32.xlu0 %v7860_v12, %s7344_s22 }
  0xbc   : > { %1111 = vrot.lane.b32.xlu1 %v7858_v11, %s7344_s22 }
  0xbf   : > { %1237 = vrot.lane.b32.xlu0 %v7868_v15, %s7343_s20 }
  0xc0   : > { %1239 = vrot.lane.b32.xlu1 %v7866_v14, %s7343_s20 }
  0xc3   : > { %1113 = vrot.lane.b32.xlu0 %v7876_v17, %s7344_s22 }
  0xc4   : > { %1115 = vrot.lane.b32.xlu1 %v7874_v16, %s7344_s22 }
  0xc7   : > { %1241 = vrot.lane.b32.xlu0 %v7884_v19, %s7343_s20 }
  0xc8   : > { %1243 = vrot.lane.b32.xlu1 %v7882_v18, %s7343_s20 }
  0xcb   : > { %1117 = vrot.lane.b32.xlu0 %v7892_v21, %s7344_s22 }
  0xcc   : > { %1119 = vrot.lane.b32.xlu1 %v7890_v20, %s7344_s22 }
  0xcf   : > { %1245 = vrot.lane.b32.xlu0 %v7900_v23, %s7343_s20 }
  0xd0   : > { %1247 = vrot.lane.b32.xlu1 %v7898_v22, %s7343_s20 }
  0xd3   : > { %1121 = vrot.lane.b32.xlu0 %v7908_v35, %s7344_s22 }
  0xd4   : > { %1123 = vrot.lane.b32.xlu1 %v7906_v24, %s7344_s22 }
  0xd7   : > { %1249 = vrot.lane.b32.xlu0 %v7916_v38, %s7343_s20 }
  0xd8   : > { %1251 = vrot.lane.b32.xlu1 %v7914_v36, %s7343_s20 }
  0xdb   : > { %1125 = vrot.lane.b32.xlu0 %v7924_v40, %s7344_s22 }
  0xdc   : > { %1127 = vrot.lane.b32.xlu1 %v7922_v39, %s7344_s22 }
  0xdf   : > { %1253 = vrot.lane.b32.xlu0 %v7932_v42, %s7343_s20 }
  0xe0   : > { %1255 = vrot.lane.b32.xlu1 %v7930_v41, %s7343_s20 }
  0xe3   : > { %1129 = vrot.lane.b32.xlu0 %v7940_v45, %s7344_s22 }
  0xe4   : > { %1131 = vrot.lane.b32.xlu1 %v7938_v44, %s7344_s22 }
  0xe7   : > { %1257 = vrot.lane.b32.xlu0 %v7948_v47, %s7343_s20 }
  0xe8   : > { %1259 = vrot.lane.b32.xlu1 %v7946_v46, %s7343_s20 }
  0xeb   : > { %1133 = vrot.lane.b32.xlu0 %v7956_v49, %s7344_s22  ;;  %v8034_v49 = vld [vmem:[#allocation2 + $0x30] sm:$0xff] }
  0xec   : > { %1135 = vrot.lane.b32.xlu1 %v7954_v48, %s7344_s22  ;;  %10096 = vst [vmem:[#allocation32_spill] sm:$0xff] %v8034_v49 }
  0xef   : > { %1261 = vrot.lane.b32.xlu0 %v7964_v51, %s7343_s20 }
  0xf0   : > { %1263 = vrot.lane.b32.xlu1 %v7962_v50, %s7343_s20  ;;  %v8032_v50 = vld [vmem:[#allocation2 + $0x38] sm:$0xff] }
  0xf3   : > { %1137 = vrot.lane.b32.xlu0 %v7972_v58, %s7344_s22 }
  0xf4   : > { %1139 = vrot.lane.b32.xlu1 %v7970_v57, %s7344_s22 }
  0xf7   : > { %1265 = vrot.lane.b32.xlu0 %v7980_v60, %s7343_s20  ;;  %v1023_v60 = vld [vmem:[#allocation2 + $0x181] sm:$0xff] }
  0xf8   : > { %1267 = vrot.lane.b32.xlu1 %v7978_v59, %s7343_s20 }
  0xfb   : > { %1141 = vrot.lane.b32.xlu0 %v7988_v1, %s7344_s22  ;;  %v949_v1 = vld [vmem:[#allocation7 + $0x18] sm:$0xff] }
  0xfc   : > { %1143 = vrot.lane.b32.xlu1 %v7986_v63, %s7344_s22  ;;  %v1024_v63 = vld [vmem:[#allocation2 + $0x189] sm:$0xff] }
  0xff   : > { %1269 = vrot.lane.b32.xlu0 %v7996_v5, %s7343_s20 }
 0x100   : > { %1271 = vrot.lane.b32.xlu1 %v7994_v2, %s7343_s20  ;;  %v948_v2 = vld [vmem:[#allocation7 + $0x10] sm:$0xff] }
 0x103   : > { %1145 = vrot.lane.b32.xlu0 %v8004_v7, %s7344_s22 }
 0x104   : > { %1147 = vrot.lane.b32.xlu1 %v8002_v6, %s7344_s22  ;;  %v8023_v6 = vld [vmem:[#allocation2 + $0x20] sm:$0xff] }
 0x105   : > { %v1090_v0 = vpop.permute.xlu0 %1089  ;;  %10095 = vst [vmem:[#allocation31_spill] sm:$0xff] %v8023_v6 }
 0x106   : > { %v1218_v53 = vpop.permute.xlu1 %1217  ;;  %v1313_v5 = vsel %vm408_vm0, %v8010_v10, %v1090_v0  ;;  %v6824_v10 = vpack.c.bf16 %v949_v1, %v948_v2 }
 0x107   : > { %1273 = vrot.lane.b32.xlu0 %v8014_v52, %s7343_s20  ;;  %v1345_v7 = vsel %vm913_vm2, %v1313_v5, %v1218_v53  ;;  %v950_v53 = vld [vmem:[#allocation7 + $0x20] sm:$0xff]  ;;  %v951_v52 = vld [vmem:[#allocation7 + $0x28] sm:$0xff] }
 0x108   : > { %1275 = vrot.lane.b32.xlu1 %v8012_v13, %s7343_s20  ;;  %6334 = vmatprep.mubr.msk.f32.mxu0 %vm1393_vm3, %v1345_v7  ;;  %v1056_v13 = vld [vmem:[#allocation2 + $0x18a] sm:$0xff]  ;;  %v1055_v7 = vld [vmem:[#allocation2 + $0x182] sm:$0xff] }
 0x109   : > { %v1092_v58 = vpop.permute.xlu0 %1091 }
 0x10a   : > { %v1220_v59 = vpop.permute.xlu1 %1219  ;;  %v1314_v0 = vsel %vm408_vm0, %v8023_v6, %v1092_v58  ;;  %v6828_v58 = vpack.c.bf16 %v951_v52, %v950_v53  ;;  %v954_v53 = vld [vmem:[#allocation7 + $0x40] sm:$0xff] }
 0x10b   : > { %1149 = vrot.lane.b32.xlu0 %v1023_v60, %s7344_s22  ;;  %v1346_v5 = vsel %vm913_vm2, %v1314_v0, %v1220_v59  ;;  %v952_v59 = vld [vmem:[#allocation7 + $0x30] sm:$0xff]  ;;  %v953_v60 = vld [vmem:[#allocation7 + $0x38] sm:$0xff] }
 0x10c   : > { %1151 = vrot.lane.b32.xlu1 %v1024_v63, %s7344_s22  ;;  %6335 = vmatmul.mubr.msk.f32.vlgmr.msra.gmra.mrb[0].mxu0 %vm1393_vm3, %v1346_v5  ;;  %v562_v63 = vld [vmem:[#allocation2 + $0x9] sm:$0xff]  ;;  %v561_v5 = vld [vmem:[#allocation2 + $0x1] sm:$0xff] }
 0x10d   : > { %v1094_v51 = vpop.permute.xlu0 %1093  ;;  %6823 = vmatpush3.bf16.msra.mxu0 %v6820_v56 }
 0x10e   : > { %v1096_v57 = vpop.permute.xlu1 %1095  ;;  %6825 = vmatprep.subr.bf16.mxu0 %v6824_v10  ;;  %v1315_v2 = vsel %vm408_vm0, %v8034_v49, %v1094_v51  ;;  %v594_v51 = vld [vmem:[#allocation2 + $0xa] sm:$0xff] }
 0x10f   : > { %1277 = vrot.lane.b32.xlu0 %v1055_v7, %s7343_s20  ;;  %v1316_v1 = vsel %vm408_vm0, %v8032_v50, %v1096_v57  ;;  %v955_v7 = vld [vmem:[#allocation7 + $0x48] sm:$0xff] }
 0x110   : > { %1279 = vrot.lane.b32.xlu1 %v1056_v13, %s7343_s20  ;;  %v6832_v13 = vpack.c.bf16 %v953_v60, %v952_v59  ;;  %v6836_v59 = vpack.c.bf16 %v955_v7, %v954_v53  ;;  %v956_v60 = vld [vmem:[#allocation7 + $0x50] sm:$0xff]  ;;  %v958_v7 = vld [vmem:[#allocation7 + $0x60] sm:$0xff] }
 0x111   : > { %v1222_v0 = vpop.permute.xlu0 %1221  ;;  %6827 = vmatpush3.bf16.msra.mxu0 %v6824_v10  ;;  %v593_v10 = vld [vmem:[#allocation2 + $0x2] sm:$0xff] }
 0x112   : > { %v1224_v56 = vpop.permute.xlu1 %1223  ;;  %v1347_v52 = vsel %vm913_vm2, %v1315_v2, %v1222_v0  ;;  %6829 = vmatprep.subr.bf16.mxu0 %v6828_v58  ;;  %v8050_v2 = vld [vmem:[#allocation2 + $0x48] sm:$0xff] }
 0x113   : > { %v1348_v6 = vsel %vm913_vm2, %v1316_v1, %v1224_v56  ;;  %6337 = vmatprep.mubr.msk.f32.mxu0 %vm1393_vm3, %v1347_v52  ;;  %657 = vrot.lane.b32.xlu0 %v561_v5, %s7344_s22  ;;  %v8048_v1 = vld [vmem:[#allocation2 + $0x50] sm:$0xff] }
 0x114   : > { %659 = vrot.lane.b32.xlu1 %v562_v63, %s7344_s22  ;;  %6338 = vmatmul.mubr.msk.f32.gmra.mrb[2].mxu0 %vm1393_vm3, %v1348_v6  ;;  %v957_v63 = vld [vmem:[#allocation7 + $0x58] sm:$0xff] }
 0x115   : > { %v1098_v49 = vpop.permute.xlu0 %1097  ;;  %6831 = vmatpush3.bf16.msra.mxu0 %v6828_v58  ;;  %v6840_v53 = vpack.c.bf16 %v957_v63, %v956_v60 }
 0x116   : > { %v1100_v57 = vpop.permute.xlu1 %1099  ;;  %6833 = vmatprep.subr.bf16.mxu0 %v6832_v13  ;;  %v1317_v56 = vsel %vm408_vm0, %v8050_v2, %v1098_v49 }
 0x117   : > { %785 = vrot.lane.b32.xlu0 %v593_v10, %s7343_s20  ;;  %v1318_v6 = vsel %vm408_vm0, %v8048_v1, %v1100_v57  ;;  %v8066_v57 = vld [vmem:[#allocation2 + $0x68] sm:$0xff]  ;;  %v8068_v10 = vld [vmem:[#allocation2 + $0x60] sm:$0xff] }
 0x118   : > { %787 = vrot.lane.b32.xlu1 %v594_v51, %s7343_s20  ;;  %v959_v51 = vld [vmem:[#allocation7 + $0x68] sm:$0xff] }
 0x119   : > { %v1226_v58 = vpop.permute.xlu0 %1225  ;;  %6835 = vmatpush3.bf16.msra.mxu0 %v6832_v13  ;;  %v6844_v60 = vpack.c.bf16 %v959_v51, %v958_v7 }
 0x11a   : > { %v1228_v0 = vpop.permute.xlu1 %1227  ;;  %v1349_v52 = vsel %vm913_vm2, %v1317_v56, %v1226_v58  ;;  %6837 = vmatprep.subr.bf16.mxu0 %v6836_v59  ;;  %v8086_v58 = vld [vmem:[#allocation2 + $0x80] sm:$0xff] }
 0x11b   : > { %v1350_v5 = vsel %vm913_vm2, %v1318_v6, %v1228_v0  ;;  %6340 = vmatprep.mubr.msk.f32.mxu0 %vm1393_vm3, %v1349_v52  ;;  %661 = vrot.lane.b32.xlu0 %v7761_v26, %s7344_s22 }
 0x11c   : > { %663 = vrot.lane.b32.xlu1 %v7772_v28, %s7344_s22  ;;  %6341 = vmatmul.mubr.msk.f32.gmra.mrb[4].mxu0 %vm1393_vm3, %v1350_v5  ;;  %v8088_v5 = vld [vmem:[#allocation2 + $0x78] sm:$0xff] }
 0x11d   : > { %v1102_v13 = vpop.permute.xlu0 %1101  ;;  %6839 = vmatpush3.bf16.msra.mxu0 %v6836_v59 }
 0x11e   : > { %v1104_v49 = vpop.permute.xlu1 %1103  ;;  %6841 = vmatprep.subr.bf16.mxu0 %v6840_v53  ;;  %v1319_v28 = vsel %vm408_vm0, %v8068_v10, %v1102_v13  ;;  %v8108_v13 = vld [vmem:[#allocation2 + $0x90] sm:$0xff] }
 0x11f   : > { %789 = vrot.lane.b32.xlu0 %v7759_v25, %s7343_s20  ;;  %v1320_v26 = vsel %vm408_vm0, %v8066_v57, %v1104_v49  ;;  %v960_v25 = vld [vmem:[#allocation7 + $0x70] sm:$0xff]  ;;  %v8106_v49 = vld [vmem:[#allocation2 + $0x98] sm:$0xff] }
 0x120   : > { %791 = vrot.lane.b32.xlu1 %v7770_v27, %s7343_s20 }
 0x121   : > { %v1230_v59 = vpop.permute.xlu0 %1229  ;;  %6843 = vmatpush3.bf16.msra.mxu0 %v6840_v53 }
 0x122   : > { %v1232_v63 = vpop.permute.xlu1 %1231  ;;  %v1351_v56 = vsel %vm913_vm2, %v1319_v28, %v1230_v59  ;;  %6845 = vmatprep.subr.bf16.mxu0 %v6844_v60  ;;  %v8126_v59 = vld [vmem:[#allocation2 + $0xb0] sm:$0xff] }
 0x123   : > { %v1352_v6 = vsel %vm913_vm2, %v1320_v26, %v1232_v63  ;;  %6343 = vmatprep.mubr.msk.f32.mxu0 %vm1393_vm3, %v1351_v56  ;;  %665 = vrot.lane.b32.xlu0 %v7780_v30, %s7344_s22 }
 0x124   : > { %667 = vrot.lane.b32.xlu1 %v7778_v29, %s7344_s22  ;;  %6344 = vmatmul.mubr.msk.f32.gmra.mrb[6].mxu0 %vm1393_vm3, %v1352_v6  ;;  %v8128_v6 = vld [vmem:[#allocation2 + $0xa8] sm:$0xff] }
 0x125   : > { %v1106_v0 = vpop.permute.xlu0 %1105  ;;  %6847 = vmatpush3.bf16.msra.mxu0 %v6844_v60 }
 0x126   : > { %v1108_v27 = vpop.permute.xlu1 %1107  ;;  %6410 = vmatprep.subr.mxu0 %v960_v25  ;;  %v1321_v30 = vsel %vm408_vm0, %v8088_v5, %v1106_v0 }
 0x127   : > { %793 = vrot.lane.b32.xlu0 %v7788_v32, %s7343_s20  ;;  %v1322_v29 = vsel %vm408_vm0, %v8086_v58, %v1108_v27 }
 0x128   : > { %795 = vrot.lane.b32.xlu1 %v7786_v31, %s7343_s20 }
 0x129   : > { %v1234_v53 = vpop.permute.xlu0 %1233  ;;  %6411 = vmatpush3.msra.mxu0 %v960_v25 }
 0x12a   : > { %v1236_v52 = vpop.permute.xlu1 %1235  ;;  %v1353_v51 = vsel %vm913_vm2, %v1321_v30, %v1234_v53  ;;  %v8148_v30 = vld [vmem:[#allocation2 + $0xc0] sm:$0xff] }
 0x12b   : > { %v1354_v7 = vsel %vm913_vm2, %v1322_v29, %v1236_v52  ;;  %6346 = vmatprep.mubr.msk.f32.mxu0 %vm1393_vm3, %v1353_v51  ;;  %669 = vrot.lane.b32.xlu0 %v7796_v34, %s7344_s22  ;;  %v8146_v29 = vld [vmem:[#allocation2 + $0xc8] sm:$0xff] }
 0x12c   : > { %671 = vrot.lane.b32.xlu1 %v7794_v33, %s7344_s22  ;;  %6347 = vmatmul.mubr.msk.f32.gmra.mrb[8].mxu0 %vm1393_vm3, %v1354_v7 }
 0x12d   : > { %v1110_v32 = vpop.permute.xlu0 %1109 }
 0x12e   : > { %v1112_v31 = vpop.permute.xlu1 %1111  ;;  %v1323_v34 = vsel %vm408_vm0, %v8108_v13, %v1110_v32  ;;  %v8168_v32 = vld [vmem:[#allocation2 + $0xd8] sm:$0xff] }
 0x12f   : > { %797 = vrot.lane.b32.xlu0 %v7806_v43, %s7343_s20  ;;  %v1324_v33 = vsel %vm408_vm0, %v8106_v49, %v1112_v31  ;;  %v8166_v31 = vld [vmem:[#allocation2 + $0xe0] sm:$0xff] }
 0x130   : > { %799 = vrot.lane.b32.xlu1 %v7798_v37, %s7343_s20 }
 0x131   : > { %v1238_v26 = vpop.permute.xlu0 %1237 }
 0x132   : > { %v1240_v60 = vpop.permute.xlu1 %1239  ;;  %v1355_v63 = vsel %vm913_vm2, %v1323_v34, %v1238_v26 }
 0x133   : > { %v1356_v28 = vsel %vm913_vm2, %v1324_v33, %v1240_v60  ;;  %6349 = vmatprep.mubr.msk.f32.mxu0 %vm1393_vm3, %v1355_v63  ;;  %673 = vrot.lane.b32.xlu0 %v7822_v55, %s7344_s22 }
 0x134   : > { %675 = vrot.lane.b32.xlu1 %v7820_v54, %s7344_s22  ;;  %6350 = vmatmul.mubr.msk.f32.gmra.mrb[10].mxu0 %vm1393_vm3, %v1356_v28  ;;  %v2455_v28 = vld [vmem:[#allocation7 + $0xf8] sm:$0xff] }
 0x135   : > { %v1114_v43 = vpop.permute.xlu0 %1113 }
 0x136   : > { %v1116_v37 = vpop.permute.xlu1 %1115  ;;  %v1325_v55 = vsel %vm408_vm0, %v8128_v6, %v1114_v43  ;;  %v8188_v43 = vld [vmem:[#allocation2 + $0xf8] sm:$0xff] }
 0x137   : > { %801 = vrot.lane.b32.xlu0 %v7836_v62, %s7343_s20  ;;  %v1326_v54 = vsel %vm408_vm0, %v8126_v59, %v1116_v37 }
 0x138   : > { %803 = vrot.lane.b32.xlu1 %v7834_v61, %s7343_s20 }
 0x139   : > { %v1242_v25 = vpop.permute.xlu0 %1241 }
 0x13a   : > { %v1244_v56 = vpop.permute.xlu1 %1243  ;;  %v1357_v0 = vsel %vm913_vm2, %v1325_v55, %v1242_v25 }
 0x13b   : > { %v1358_v27 = vsel %vm913_vm2, %v1326_v54, %v1244_v56  ;;  %6352 = vmatprep.mubr.msk.f32.mxu0 %vm1393_vm3, %v1357_v0  ;;  %677 = vrot.lane.b32.xlu0 %v7844_v4, %s7344_s22  ;;  %v8190_v54 = vld [vmem:[#allocation2 + $0xf0] sm:$0xff] }
 0x13c   : > { %679 = vrot.lane.b32.xlu1 %v7842_v3, %s7344_s22  ;;  %6353 = vmatmul.mubr.msk.f32.gmra.mrb[12].mxu0 %vm1393_vm3, %v1358_v27  ;;  %v8209_v0 = vld [vmem:[#allocation2 + $0x110] sm:$0xff] }
 0x13d   : > { %v1118_v62 = vpop.permute.xlu0 %1117 }
 0x13e   : > { %v1120_v61 = vpop.permute.xlu1 %1119  ;;  %v1327_v4 = vsel %vm408_vm0, %v8148_v30, %v1118_v62 }
 0x13f   : > { %805 = vrot.lane.b32.xlu0 %v7852_v9, %s7343_s20  ;;  %v1328_v3 = vsel %vm408_vm0, %v8146_v29, %v1120_v61  ;;  %v8211_v61 = vld [vmem:[#allocation2 + $0x108] sm:$0xff] }
 0x140   : > { %807 = vrot.lane.b32.xlu1 %v7850_v8, %s7343_s20 }
 0x141   : > { %v1246_v53 = vpop.permute.xlu0 %1245 }
 0x142   : > { %v1248_v52 = vpop.permute.xlu1 %1247  ;;  %v1359_v51 = vsel %vm913_vm2, %v1327_v4, %v1246_v53  ;;  %v8229_v53 = vld [vmem:[#allocation2 + $0x128] sm:$0xff] }
 0x143   : > { %v1360_v7 = vsel %vm913_vm2, %v1328_v3, %v1248_v52  ;;  %6355 = vmatprep.mubr.msk.f32.mxu0 %vm1393_vm3, %v1359_v51  ;;  %681 = vrot.lane.b32.xlu0 %v7860_v12, %s7344_s22 }
 0x144   : > { %683 = vrot.lane.b32.xlu1 %v7858_v11, %s7344_s22  ;;  %6356 = vmatmul.mubr.msk.f32.gmra.mrb[14].mxu0 %vm1393_vm3, %v1360_v7  ;;  %v8231_v7 = vld [vmem:[#allocation2 + $0x120] sm:$0xff] }
 0x145   : > { %v1122_v9 = vpop.permute.xlu0 %1121 }
 0x146   : > { %v1124_v8 = vpop.permute.xlu1 %1123  ;;  %v1329_v12 = vsel %vm408_vm0, %v8168_v32, %v1122_v9 }
 0x147   : > { %809 = vrot.lane.b32.xlu0 %v7868_v15, %s7343_s20  ;;  %v1330_v11 = vsel %vm408_vm0, %v8166_v31, %v1124_v8 }
 0x148   : > { %811 = vrot.lane.b32.xlu1 %v7866_v14, %s7343_s20  ;;  %v2454_v14 = vld [vmem:[#allocation7 + $0xf0] sm:$0xff] }
 0x149   : > { %v1250_v34 = vpop.permute.xlu0 %1249  ;;  %v8186_v15 = vpack.c.bf16 %v2455_v28, %v2454_v14  ;;  %v8269_v28 = vld [vmem:[#allocation2 + $0x158] sm:$0xff] }
 0x14a   : > { %v1252_v33 = vpop.permute.xlu1 %1251  ;;  %v1361_v26 = vsel %vm913_vm2, %v1329_v12, %v1250_v34  ;;  %v8249_v12 = vld [vmem:[#allocation2 + $0x140] sm:$0xff] }
 0x14b   : > { %v1362_v60 = vsel %vm913_vm2, %v1330_v11, %v1252_v33  ;;  %6358 = vmatprep.mubr.msk.f32.mxu0 %vm1393_vm3, %v1361_v26  ;;  %685 = vrot.lane.b32.xlu0 %v7876_v17, %s7344_s22  ;;  %v8251_v33 = vld [vmem:[#allocation2 + $0x138] sm:$0xff] }
 0x14c   : > { %687 = vrot.lane.b32.xlu1 %v7874_v16, %s7344_s22  ;;  %6359 = vmatmul.mubr.msk.f32.gmra.mrb[16].mxu0 %vm1393_vm3, %v1362_v60 }
 0x14d   : > { %v1126_v37 = vpop.permute.xlu0 %1125  ;;  %6849 = vmatprep.subr.bf16.mxu0 %v8186_v15 }
 0x14e   : > { %v1128_v63 = vpop.permute.xlu1 %1127  ;;  %v1331_v17 = vsel %vm408_vm0, %v8190_v54, %v1126_v37 }
 0x14f   : > { %813 = vrot.lane.b32.xlu0 %v7884_v19, %s7343_s20  ;;  %v1332_v16 = vsel %vm408_vm0, %v8188_v43, %v1128_v63  ;;  %v8271_v63 = vld [vmem:[#allocation2 + $0x150] sm:$0xff] }
 0x150   : > { %815 = vrot.lane.b32.xlu1 %v7882_v18, %s7343_s20 }
 0x151   : > { %v1254_v56 = vpop.permute.xlu0 %1253 }
 0x152   : > { %v1256_v55 = vpop.permute.xlu1 %1255  ;;  %v1363_v27 = vsel %vm913_vm2, %v1331_v17, %v1254_v56 }
 0x153   : > { %v1364_v25 = vsel %vm913_vm2, %v1332_v16, %v1256_v55  ;;  %6361 = vmatprep.mubr.msk.f32.mxu0 %vm1393_vm3, %v1363_v27  ;;  %689 = vrot.lane.b32.xlu0 %v7892_v21, %s7344_s22  ;;  %v8291_v27 = vld [vmem:[#allocation2 + $0x168] sm:$0xff] }
 0x154   : > { %691 = vrot.lane.b32.xlu1 %v7890_v20, %s7344_s22  ;;  %6362 = vmatmul.mubr.msk.f32.gmra.mrb[18].mxu0 %vm1393_vm3, %v1364_v25  ;;  %v8289_v25 = vld [vmem:[#allocation2 + $0x170] sm:$0xff] }
 0x155   : > { %v1130_v19 = vpop.permute.xlu0 %1129 }
 0x156   : > { %v1132_v18 = vpop.permute.xlu1 %1131  ;;  %v1333_v21 = vsel %vm408_vm0, %v8211_v61, %v1130_v19  ;;  %v10099_v19 = vld [vmem:[#allocation17_spill] sm:$0xff] }
 0x157   : > { %817 = vrot.lane.b32.xlu0 %v7900_v23, %s7343_s20  ;;  %v1334_v20 = vsel %vm408_vm0, %v8209_v0, %v1132_v18  ;;  %v10098_v18 = vld [vmem:[#allocation16_spill] sm:$0xff] }
 0x158   : > { %819 = vrot.lane.b32.xlu1 %v7898_v22, %s7343_s20 }
 0x159   : > { %v1258_v3 = vpop.permute.xlu0 %1257 }
 0x15a   : > { %v1260_v62 = vpop.permute.xlu1 %1259  ;;  %v1365_v52 = vsel %vm913_vm2, %v1333_v21, %v1258_v3 }
 0x15b   : > { %v1366_v4 = vsel %vm913_vm2, %v1334_v20, %v1260_v62  ;;  %6364 = vmatprep.mubr.msk.f32.mxu0 %vm1393_vm3, %v1365_v52  ;;  %693 = vrot.lane.b32.xlu0 %v7908_v35, %s7344_s22  ;;  %v10100_v52 = vld [vmem:[#allocation18_spill] sm:$0xff] }
 0x15c   : > { %695 = vrot.lane.b32.xlu1 %v7906_v24, %s7344_s22  ;;  %6365 = vmatmul.mubr.msk.f32.gmra.mrb[20].mxu0 %vm1393_vm3, %v1366_v4 }
 0x15d   : > { %v1134_v23 = vpop.permute.xlu0 %1133 }
 0x15e   : > { %v1136_v22 = vpop.permute.xlu1 %1135  ;;  %v1335_v35 = vsel %vm408_vm0, %v8231_v7, %v1134_v23 }
 0x15f   : > { %821 = vrot.lane.b32.xlu0 %v7916_v38, %s7343_s20  ;;  %v1336_v24 = vsel %vm408_vm0, %v8229_v53, %v1136_v22  ;;  %v10101_v22 = vld [vmem:[#allocation19_spill] sm:$0xff] }
 0x160   : > { %823 = vrot.lane.b32.xlu1 %v7914_v36, %s7343_s20 }
 0x161   : > { %v1262_v8 = vpop.permute.xlu0 %1261 }
 0x162   : > { %v1264_v51 = vpop.permute.xlu1 %1263  ;;  %v1367_v11 = vsel %vm913_vm2, %v1335_v35, %v1262_v8  ;;  %v992_v35 = vld [vmem:[#allocation2 + $0x188] sm:$0xff] }
 0x163   : > { %v1368_v9 = vsel %vm913_vm2, %v1336_v24, %v1264_v51  ;;  %6367 = vmatprep.mubr.msk.f32.mxu0 %vm1393_vm3, %v1367_v11  ;;  %697 = vrot.lane.b32.xlu0 %v7924_v40, %s7344_s22  ;;  %v991_v51 = vld [vmem:[#allocation2 + $0x180] sm:$0xff]  ;;  %v10102_v8 = vld [vmem:[#allocation20_spill] sm:$0xff] }
 0x164   : > { %699 = vrot.lane.b32.xlu1 %v7922_v39, %s7344_s22  ;;  %6368 = vmatmul.mubr.msk.f32.gmra.mrb[22].mxu0 %vm1393_vm3, %v1368_v9  ;;  %v10103_v9 = vld [vmem:[#allocation21_spill] sm:$0xff] }
 0x165   : > { %v1138_v38 = vpop.permute.xlu0 %1137 }
 0x166   : > { %v1140_v36 = vpop.permute.xlu1 %1139  ;;  %v1337_v40 = vsel %vm408_vm0, %v8251_v33, %v1138_v38 }
 0x167   : > { %825 = vrot.lane.b32.xlu0 %v7932_v42, %s7343_s20  ;;  %v1338_v39 = vsel %vm408_vm0, %v8249_v12, %v1140_v36 }
 0x168   : > { %827 = vrot.lane.b32.xlu1 %v7930_v41, %s7343_s20 }
 0x169   : > { %v1266_v60 = vpop.permute.xlu0 %1265 }
 0x16a   : > { %v1268_v34 = vpop.permute.xlu1 %1267  ;;  %v1369_v14 = vsel %vm913_vm2, %v1337_v40, %v1266_v60  ;;  %v10104_v60 = vld [vmem:[#allocation22_spill] sm:$0xff] }
 0x16b   : > { %v1370_v26 = vsel %vm913_vm2, %v1338_v39, %v1268_v34  ;;  %6370 = vmatprep.mubr.msk.f32.mxu0 %vm1393_vm3, %v1369_v14  ;;  %701 = vrot.lane.b32.xlu0 %v7940_v45, %s7344_s22 }
 0x16c   : > { %703 = vrot.lane.b32.xlu1 %v7938_v44, %s7344_s22  ;;  %6371 = vmatmul.mubr.msk.f32.gmra.mrb[24].mxu0 %vm1393_vm3, %v1370_v26  ;;  %v10105_v26 = vld [vmem:[#allocation23_spill] sm:$0xff] }
 0x16d   : > { %v1142_v42 = vpop.permute.xlu0 %1141 }
 0x16e   : > { %v1144_v41 = vpop.permute.xlu1 %1143  ;;  %v1339_v45 = vsel %vm408_vm0, %v8271_v63, %v1142_v42 }
 0x16f   : > { %829 = vrot.lane.b32.xlu0 %v7948_v47, %s7343_s20  ;;  %v1340_v44 = vsel %vm408_vm0, %v8269_v28, %v1144_v41  ;;  %v530_v41 = vld [vmem:[#allocation2 + $0x8] sm:$0xff] }
 0x170   : > { %831 = vrot.lane.b32.xlu1 %v7946_v46, %s7343_s20  ;;  %v10097_v46 = vld [vmem:[#allocation15_spill] sm:$0xff] }
 0x171   : > { %v1270_v16 = vpop.permute.xlu0 %1269 }
 0x172   : > { %v1272_v37 = vpop.permute.xlu1 %1271  ;;  %v1371_v55 = vsel %vm913_vm2, %v1339_v45, %v1270_v16  ;;  %v10106_v45 = vld [vmem:[#allocation24_spill] sm:$0xff]  ;;  %v2456_v16 = vld [vmem:[#allocation7 + $0x100] sm:$0xff] }
 0x173   : > { %v1372_v17 = vsel %vm913_vm2, %v1340_v44, %v1272_v37  ;;  %6373 = vmatprep.mubr.msk.f32.mxu0 %vm1393_vm3, %v1371_v55  ;;  %705 = vrot.lane.b32.xlu0 %v10097_v46, %s7344_s22  ;;  %v529_v44 = vld [vmem:[#allocation2] sm:$0xff]  ;;  %v10107_v37 = vld [vmem:[#allocation25_spill] sm:$0xff] }
 0x174   : > { %707 = vrot.lane.b32.xlu1 %v7954_v48, %s7344_s22  ;;  %6374 = vmatmul.mubr.msk.f32.gmra.mrb[26].mxu0 %vm1393_vm3, %v1372_v17  ;;  %v2457_v17 = vld [vmem:[#allocation7 + $0x108] sm:$0xff] }
 0x175   : > { %v1146_v56 = vpop.permute.xlu0 %1145 }
 0x176   : > { %v1148_v47 = vpop.permute.xlu1 %1147  ;;  %v1341_v20 = vsel %vm408_vm0, %v8291_v27, %v1146_v56 }
 0x177   : > { %833 = vrot.lane.b32.xlu0 %v10099_v19, %s7343_s20  ;;  %v1342_v48 = vsel %vm408_vm0, %v8289_v25, %v1148_v47 }
 0x178   : > { %835 = vrot.lane.b32.xlu1 %v10098_v18, %s7343_s20 }
 0x179   : > { %v1274_v62 = vpop.permute.xlu0 %1273 }
 0x17a   : > { %v1276_v21 = vpop.permute.xlu1 %1275  ;;  %v1373_v4 = vsel %vm913_vm2, %v1341_v20, %v1274_v62  ;;  %v6852_v20 = vpack.c.bf16 %v2457_v17, %v2456_v16  ;;  %v2458_v62 = vld [vmem:[#allocation7 + $0x110] sm:$0xff]  ;;  %v2072_v17 = vld [vmem:[#allocation2 + $0x51] sm:$0xff] }
 0x17b   : > { %v1374_v3 = vsel %vm913_vm2, %v1342_v48, %v1276_v21  ;;  %6376 = vmatprep.mubr.msk.f32.mxu0 %vm1393_vm3, %v1373_v4  ;;  %709 = vrot.lane.b32.xlu0 %v10101_v22, %s7344_s22  ;;  %v10108_v48 = vld [vmem:[#allocation26_spill] sm:$0xff]  ;;  %v10109_v21 = vld [vmem:[#allocation27_spill] sm:$0xff]  ;;  %v10110_v22 = vld [vmem:[#allocation29_spill] sm:$0xff] }
 0x17c   : > { %711 = vrot.lane.b32.xlu1 %v10100_v52, %s7344_s22  ;;  %6377 = vmatmul.mubr.msk.f32.gmra.mrb[28].mxu0 %vm1393_vm3, %v1374_v3  ;;  %v2459_v3 = vld [vmem:[#allocation7 + $0x118] sm:$0xff] }
 0x17d   : > { %v1150_v24 = vpop.permute.xlu0 %1149 }
 0x17e   : > { %v1152_v23 = vpop.permute.xlu1 %1151  ;;  %v1343_v36 = vsel %vm408_vm0, %v991_v51, %v1150_v24  ;;  %v10111_v24 = vld [vmem:[#allocation30_spill] sm:$0xff]  ;;  %v2460_v51 = vld [vmem:[#allocation7 + $0x120] sm:$0xff] }
 0x17f   : > { %837 = vrot.lane.b32.xlu0 %v10103_v9, %s7343_s20  ;;  %v1344_v11 = vsel %vm408_vm0, %v992_v35, %v1152_v23  ;;  %v6856_v23 = vpack.c.bf16 %v2459_v3, %v2458_v62  ;;  %v2070_v35 = vld [vmem:[#allocation2 + $0x39] sm:$0xff] }
 0x180   : > { %839 = vrot.lane.b32.xlu1 %v10102_v8, %s7343_s20  ;;  %v2461_v8 = vld [vmem:[#allocation7 + $0x128] sm:$0xff]  ;;  %v10112_v9 = vld [vmem:[#allocation31_spill] sm:$0xff] }
 0x181   : > { %v1278_v39 = vpop.permute.xlu0 %1277 }
 0x182   : > { %v1280_v38 = vpop.permute.xlu1 %1279  ;;  %v1375_v34 = vsel %vm913_vm2, %v1343_v36, %v1278_v39  ;;  %v10113_v39 = vld [vmem:[#allocation28_spill] sm:$0xff] }
 0x183   : > { %v1376_v40 = vsel %vm913_vm2, %v1344_v11, %v1280_v38  ;;  %6379 = vmatprep.mubr.msk.f32.mxu0 %vm1393_vm3, %v1375_v34  ;;  %713 = vrot.lane.b32.xlu0 %v10105_v26, %s7344_s22  ;;  %v2069_v38 = vld [vmem:[#allocation2 + $0x31] sm:$0xff]  ;;  %v6860_v26 = vpack.c.bf16 %v2461_v8, %v2460_v51  ;;  %v2074_v51 = vld [vmem:[#allocation2 + $0x69] sm:$0xff] }
 0x184   : > { %715 = vrot.lane.b32.xlu1 %v10104_v60, %s7344_s22  ;;  %6380 = vmatmul.mubr.msk.f32.gmra.mrb[30].mxu0 %vm1393_vm3, %v1376_v40 }
 0x185   : > { %v658_v42 = vpop.permute.xlu0 %657 }
 0x186   : > { %v660_v14 = vpop.permute.xlu1 %659  ;;  %v881_v47 = vsel %vm408_vm0, %v529_v44, %v658_v42  ;;  %v2463_v42 = vld [vmem:[#allocation7 + $0x138] sm:$0xff] }
 0x187   : > { %841 = vrot.lane.b32.xlu0 %v10107_v37, %s7343_s20  ;;  %v882_v55 = vsel %vm408_vm0, %v530_v41, %v660_v14  ;;  %v2102_v14 = vld [vmem:[#allocation2 + $0x3a] sm:$0xff] }
 0x188   : > { %843 = vrot.lane.b32.xlu1 %v10106_v45, %s7343_s20  ;;  %v2462_v41 = vld [vmem:[#allocation7 + $0x130] sm:$0xff]  ;;  %v2101_v45 = vld [vmem:[#allocation2 + $0x32] sm:$0xff] }
 0x189   : > { %v786_v18 = vpop.permute.xlu0 %785  ;;  %v6864_v16 = vpack.c.bf16 %v2463_v42, %v2462_v41  ;;  %v2075_v42 = vld [vmem:[#allocation2 + $0x79] sm:$0xff] }
 0x18a   : > { %v788_v46 = vpop.permute.xlu1 %787  ;;  %v914_v19 = vsel %vm913_vm2, %v881_v47, %v786_v18  ;;  %v2071_v18 = vld [vmem:[#allocation2 + $0x49] sm:$0xff] }
 0x18b   : > { %v915_v56 = vsel %vm913_vm2, %v882_v55, %v788_v46  ;;  %717 = vrot.lane.b32.xlu0 %v10109_v21, %s7344_s22  ;;  %6412 = vmatprep.mubr.msk.f32.mxu0 %vm1393_vm3, %v914_v19  ;;  %v2464_v55 = vld [vmem:[#allocation7 + $0x140] sm:$0xff]  ;;  %v2465_v46 = vld [vmem:[#allocation7 + $0x148] sm:$0xff]  ;;  %v10114_v19 = vld [vmem:[#allocation32_spill] sm:$0xff] }
 0x18c   : > { %719 = vrot.lane.b32.xlu1 %v10108_v48, %s7344_s22  ;;  %6413 = vmatmul.mubr.msk.f32.vlgmr.msra.gmra.mrb[0].mxu0 %vm1393_vm3, %v915_v56  ;;  %v6868_v3 = vpack.c.bf16 %v2465_v46, %v2464_v55  ;;  %v2107_v55 = vld [vmem:[#allocation2 + $0x7a] sm:$0xff] }
 0x18d   : > { %v662_v52 = vpop.permute.xlu0 %661  ;;  %6851 = vmatpush3.bf16.msra.mxu0 %v8186_v15 }
 0x18e   : > { %v664_v4 = vpop.permute.xlu1 %663  ;;  %6853 = vmatprep.subr.bf16.mxu0 %v6852_v20  ;;  %v883_v40 = vsel %vm408_vm0, %v10113_v39, %v662_v52  ;;  %v2467_v52 = vld [vmem:[#allocation7 + $0x158] sm:$0xff] }
 0x18f   : > { %845 = vrot.lane.b32.xlu0 %v10111_v24, %s7343_s20  ;;  %v884_v11 = vsel %vm408_vm0, %v10112_v9, %v664_v4  ;;  %v2466_v4 = vld [vmem:[#allocation7 + $0x150] sm:$0xff] }
 0x190   : > { %847 = vrot.lane.b32.xlu1 %v10110_v22, %s7343_s20 }
 0x191   : > { %v790_v34 = vpop.permute.xlu0 %789  ;;  %6855 = vmatpush3.bf16.msra.mxu0 %v6852_v20 }
 0x192   : > { %v792_v36 = vpop.permute.xlu1 %791  ;;  %v916_v60 = vsel %vm913_vm2, %v883_v40, %v790_v34  ;;  %6857 = vmatprep.subr.bf16.mxu0 %v6856_v23 }
 0x193   : > { %v917_v15 = vsel %vm913_vm2, %v884_v11, %v792_v36  ;;  %2165 = vrot.lane.b32.xlu0 %v2069_v38, %s7344_s22  ;;  %6415 = vmatprep.mubr.msk.f32.mxu0 %vm1393_vm3, %v916_v60  ;;  %v2073_v11 = vld [vmem:[#allocation2 + $0x61] sm:$0xff] }
 0x194   : > { %2167 = vrot.lane.b32.xlu1 %v2070_v35, %s7344_s22  ;;  %6416 = vmatmul.mubr.msk.f32.gmra.mrb[2].mxu0 %vm1393_vm3, %v917_v15  ;;  %v6872_v35 = vpack.c.bf16 %v2467_v52, %v2466_v4  ;;  %v2106_v15 = vld [vmem:[#allocation2 + $0x6a] sm:$0xff]  ;;  %v2105_v60 = vld [vmem:[#allocation2 + $0x62] sm:$0xff] }
 0x195   : > { %v666_v37 = vpop.permute.xlu0 %665  ;;  %6859 = vmatpush3.bf16.msra.mxu0 %v6856_v23  ;;  %v2103_v23 = vld [vmem:[#allocation2 + $0x4a] sm:$0xff] }
 0x196   : > { %v668_v44 = vpop.permute.xlu1 %667  ;;  %6861 = vmatprep.subr.bf16.mxu0 %v6860_v26  ;;  %v885_v48 = vsel %vm408_vm0, %v10114_v19, %v666_v37 }
 0x197   : > { %2293 = vrot.lane.b32.xlu0 %v2101_v45, %s7343_s20  ;;  %v886_v47 = vsel %vm408_vm0, %v8032_v50, %v668_v44  ;;  %v2104_v50 = vld [vmem:[#allocation2 + $0x52] sm:$0xff] }
 0x198   : > { %2295 = vrot.lane.b32.xlu1 %v2102_v14, %s7343_s20 }
 0x199   : > { %v794_v21 = vpop.permute.xlu0 %793  ;;  %6863 = vmatpush3.bf16.msra.mxu0 %v6860_v26  ;;  %v2076_v26 = vld [vmem:[#allocation2 + $0x81] sm:$0xff] }
 0x19a   : > { %v796_v56 = vpop.permute.xlu1 %795  ;;  %v918_v62 = vsel %vm913_vm2, %v885_v48, %v794_v21  ;;  %6865 = vmatprep.subr.bf16.mxu0 %v6864_v16 }
 0x19b   : > { %v919_v20 = vsel %vm913_vm2, %v886_v47, %v796_v56  ;;  %2169 = vrot.lane.b32.xlu0 %v2071_v18, %s7344_s22  ;;  %6418 = vmatprep.mubr.msk.f32.mxu0 %vm1393_vm3, %v918_v62  ;;  %v2077_v18 = vld [vmem:[#allocation2 + $0x91] sm:$0xff]  ;;  %v2110_v62 = vld [vmem:[#allocation2 + $0x9a] sm:$0xff] }
 0x19c   : > { %2171 = vrot.lane.b32.xlu1 %v2072_v17, %s7344_s22  ;;  %6419 = vmatmul.mubr.msk.f32.gmra.mrb[4].mxu0 %vm1393_vm3, %v919_v20  ;;  %v2108_v17 = vld [vmem:[#allocation2 + $0x82] sm:$0xff] }
 0x19d   : > { %v670_v24 = vpop.permute.xlu0 %669  ;;  %6867 = vmatpush3.bf16.msra.mxu0 %v6864_v16 }
 0x19e   : > { %v672_v22 = vpop.permute.xlu1 %671  ;;  %6869 = vmatprep.subr.bf16.mxu0 %v6868_v3  ;;  %v887_v36 = vsel %vm408_vm0, %v8050_v2, %v670_v24 }
 0x19f   : > { %2297 = vrot.lane.b32.xlu0 %v2103_v23, %s7343_s20  ;;  %v888_v8 = vsel %vm408_vm0, %v8048_v1, %v672_v22  ;;  %v2468_v1 = vld [vmem:[#allocation7 + $0x160] sm:$0xff] }
 0x1a0   : > { %2299 = vrot.lane.b32.xlu1 %v2104_v50, %s7343_s20  ;;  %v2079_v22 = vld [vmem:[#allocation2 + $0xa9] sm:$0xff] }
 0x1a1   : > { %v798_v39 = vpop.permute.xlu0 %797  ;;  %6871 = vmatpush3.bf16.msra.mxu0 %v6868_v3  ;;  %v2109_v3 = vld [vmem:[#allocation2 + $0x92] sm:$0xff] }
 0x1a2   : > { %v800_v9 = vpop.permute.xlu1 %799  ;;  %v920_v40 = vsel %vm913_vm2, %v887_v36, %v798_v39  ;;  %6873 = vmatprep.subr.bf16.mxu0 %v6872_v35  ;;  %v2081_v39 = vld [vmem:[#allocation2 + $0xc1] sm:$0xff] }
 0x1a3   : > { %v921_v38 = vsel %vm913_vm2, %v888_v8, %v800_v9  ;;  %2173 = vrot.lane.b32.xlu0 %v2073_v11, %s7344_s22  ;;  %6421 = vmatprep.mubr.msk.f32.mxu0 %vm1393_vm3, %v920_v40  ;;  %v2112_v8 = vld [vmem:[#allocation2 + $0xb2] sm:$0xff]  ;;  %v2111_v9 = vld [vmem:[#allocation2 + $0xaa] sm:$0xff] }
 0x1a4   : > { %2175 = vrot.lane.b32.xlu1 %v2074_v51, %s7344_s22  ;;  %6422 = vmatmul.mubr.msk.f32.gmra.mrb[6].mxu0 %vm1393_vm3, %v921_v38 }
 0x1a5   : > { %v674_v2 = vpop.permute.xlu0 %673  ;;  %6875 = vmatpush3.bf16.msra.mxu0 %v6872_v35 }
 0x1a6   : > { %v676_v34 = vpop.permute.xlu1 %675  ;;  %6488 = vmatprep.subr.mxu0 %v2468_v1  ;;  %v889_v44 = vsel %vm408_vm0, %v8068_v10, %v674_v2  ;;  %v2078_v10 = vld [vmem:[#allocation2 + $0x99] sm:$0xff]  ;;  %v2113_v2 = vld [vmem:[#allocation2 + $0xc2] sm:$0xff] }
 0x1a7   : > { %2301 = vrot.lane.b32.xlu0 %v2105_v60, %s7343_s20  ;;  %v890_v14 = vsel %vm408_vm0, %v8066_v57, %v676_v34  ;;  %v2114_v60 = vld [vmem:[#allocation2 + $0xca] sm:$0xff] }
 0x1a8   : > { %2303 = vrot.lane.b32.xlu1 %v2106_v15, %s7343_s20 }
 0x1a9   : > { %v802_v37 = vpop.permute.xlu0 %801  ;;  %6489 = vmatpush3.msra.mxu0 %v2468_v1 }
 0x1aa   : > { %v804_v41 = vpop.permute.xlu1 %803  ;;  %v922_v16 = vsel %vm913_vm2, %v889_v44, %v802_v37 }
 0x1ab   : > { %v923_v45 = vsel %vm913_vm2, %v890_v14, %v804_v41  ;;  %2177 = vrot.lane.b32.xlu0 %v2075_v42, %s7344_s22  ;;  %6424 = vmatprep.mubr.msk.f32.mxu0 %vm1393_vm3, %v922_v16  ;;  %v2083_v42 = vld [vmem:[#allocation2 + $0xd9] sm:$0xff] }
 0x1ac   : > { %2179 = vrot.lane.b32.xlu1 %v2076_v26, %s7344_s22  ;;  %6425 = vmatmul.mubr.msk.f32.gmra.mrb[8].mxu0 %vm1393_vm3, %v923_v45 }
 0x1ad   : > { %v678_v46 = vpop.permute.xlu0 %677 }
 0x1ae   : > { %v680_v57 = vpop.permute.xlu1 %679  ;;  %v891_v19 = vsel %vm408_vm0, %v8088_v5, %v678_v46  ;;  %v2080_v5 = vld [vmem:[#allocation2 + $0xb1] sm:$0xff] }
 0x1af   : > { %2305 = vrot.lane.b32.xlu0 %v2107_v55, %s7343_s20  ;;  %v892_v47 = vsel %vm408_vm0, %v8086_v58, %v680_v57  ;;  %v2115_v57 = vld [vmem:[#allocation2 + $0xda] sm:$0xff] }
 0x1b0   : > { %2307 = vrot.lane.b32.xlu1 %v2108_v17, %s7343_s20  ;;  %v2116_v17 = vld [vmem:[#allocation2 + $0xe2] sm:$0xff] }
 0x1b1   : > { %v806_v20 = vpop.permute.xlu0 %805 }
 0x1b2   : > { %v808_v56 = vpop.permute.xlu1 %807  ;;  %v924_v21 = vsel %vm913_vm2, %v891_v19, %v806_v20  ;;  %v2118_v20 = vld [vmem:[#allocation2 + $0xfa] sm:$0xff] }
 0x1b3   : > { %v925_v48 = vsel %vm913_vm2, %v892_v47, %v808_v56  ;;  %2181 = vrot.lane.b32.xlu0 %v2077_v18, %s7344_s22  ;;  %6427 = vmatprep.mubr.msk.f32.mxu0 %vm1393_vm3, %v924_v21  ;;  %v2085_v47 = vld [vmem:[#allocation2 + $0xf1] sm:$0xff] }
 0x1b4   : > { %2183 = vrot.lane.b32.xlu1 %v2078_v10, %s7344_s22  ;;  %6428 = vmatmul.mubr.msk.f32.gmra.mrb[10].mxu0 %vm1393_vm3, %v925_v48  ;;  %v2117_v21 = vld [vmem:[#allocation2 + $0xf2] sm:$0xff] }
 0x1b5   : > { %v682_v50 = vpop.permute.xlu0 %681 }
 0x1b6   : > { %v684_v58 = vpop.permute.xlu1 %683  ;;  %v893_v23 = vsel %vm408_vm0, %v8108_v13, %v682_v50  ;;  %v2082_v13 = vld [vmem:[#allocation2 + $0xc9] sm:$0xff] }
 0x1b7   : > { %2309 = vrot.lane.b32.xlu0 %v2109_v3, %s7343_s20  ;;  %v894_v4 = vsel %vm408_vm0, %v8106_v49, %v684_v58  ;;  %v2087_v50 = vld [vmem:[#allocation2 + $0x109] sm:$0xff] }
 0x1b8   : > { %2311 = vrot.lane.b32.xlu1 %v2110_v62, %s7343_s20 }
 0x1b9   : > { %v810_v35 = vpop.permute.xlu0 %809 }
 0x1ba   : > { %v812_v52 = vpop.permute.xlu1 %811  ;;  %v926_v51 = vsel %vm913_vm2, %v893_v23, %v810_v35  ;;  %v2120_v23 = vld [vmem:[#allocation2 + $0x112] sm:$0xff] }
 0x1bb   : > { %v927_v24 = vsel %vm913_vm2, %v894_v4, %v812_v52  ;;  %2185 = vrot.lane.b32.xlu0 %v2079_v22, %s7344_s22  ;;  %6430 = vmatprep.mubr.msk.f32.mxu0 %vm1393_vm3, %v926_v51 }
 0x1bc   : > { %2187 = vrot.lane.b32.xlu1 %v2080_v5, %s7344_s22  ;;  %6431 = vmatmul.mubr.msk.f32.gmra.mrb[12].mxu0 %vm1393_vm3, %v927_v24  ;;  %v2119_v24 = vld [vmem:[#allocation2 + $0x10a] sm:$0xff] }
 0x1bd   : > { %v686_v11 = vpop.permute.xlu0 %685 }
 0x1be   : > { %v688_v49 = vpop.permute.xlu1 %687  ;;  %v895_v40 = vsel %vm408_vm0, %v8128_v6, %v686_v11  ;;  %v2084_v6 = vld [vmem:[#allocation2 + $0xe1] sm:$0xff] }
 0x1bf   : > { %2313 = vrot.lane.b32.xlu0 %v2111_v9, %s7343_s20  ;;  %v896_v36 = vsel %vm408_vm0, %v8126_v59, %v688_v49  ;;  %v2089_v49 = vld [vmem:[#allocation2 + $0x121] sm:$0xff] }
 0x1c0   : > { %2315 = vrot.lane.b32.xlu1 %v2112_v8, %s7343_s20 }
 0x1c1   : > { %v814_v1 = vpop.permute.xlu0 %813 }
 0x1c2   : > { %v816_v38 = vpop.permute.xlu1 %815  ;;  %v928_v34 = vsel %vm913_vm2, %v895_v40, %v814_v1 }
 0x1c3   : > { %v929_v15 = vsel %vm913_vm2, %v896_v36, %v816_v38  ;;  %2189 = vrot.lane.b32.xlu0 %v2081_v39, %s7344_s22  ;;  %6433 = vmatprep.mubr.msk.f32.mxu0 %vm1393_vm3, %v928_v34  ;;  %v2122_v38 = vld [vmem:[#allocation2 + $0x12a] sm:$0xff]  ;;  %v2121_v39 = vld [vmem:[#allocation2 + $0x122] sm:$0xff]  ;;  %v2091_v34 = vld [vmem:[#allocation2 + $0x139] sm:$0xff] }
 0x1c4   : > { %2191 = vrot.lane.b32.xlu1 %v2082_v13, %s7344_s22  ;;  %6434 = vmatmul.mubr.msk.f32.gmra.mrb[14].mxu0 %vm1393_vm3, %v929_v15 }
 0x1c5   : > { %v690_v26 = vpop.permute.xlu0 %689 }
 0x1c6   : > { %v692_v59 = vpop.permute.xlu1 %691  ;;  %v897_v44 = vsel %vm408_vm0, %v8148_v30, %v690_v26  ;;  %v2086_v30 = vld [vmem:[#allocation2 + $0xf9] sm:$0xff] }
 0x1c7   : > { %2317 = vrot.lane.b32.xlu0 %v2113_v2, %s7343_s20  ;;  %v898_v14 = vsel %vm408_vm0, %v8146_v29, %v692_v59 }
 0x1c8   : > { %2319 = vrot.lane.b32.xlu1 %v2114_v60, %s7343_s20 }
 0x1c9   : > { %v818_v37 = vpop.permute.xlu0 %817 }
 0x1ca   : > { %v820_v41 = vpop.permute.xlu1 %819  ;;  %v930_v16 = vsel %vm913_vm2, %v897_v44, %v818_v37 }
 0x1cb   : > { %v931_v45 = vsel %vm913_vm2, %v898_v14, %v820_v41  ;;  %2193 = vrot.lane.b32.xlu0 %v2083_v42, %s7344_s22  ;;  %6436 = vmatprep.mubr.msk.f32.mxu0 %vm1393_vm3, %v930_v16  ;;  %v2123_v14 = vld [vmem:[#allocation2 + $0x13a] sm:$0xff] }
 0x1cc   : > { %2195 = vrot.lane.b32.xlu1 %v2084_v6, %s7344_s22  ;;  %6437 = vmatmul.mubr.msk.f32.gmra.mrb[16].mxu0 %vm1393_vm3, %v931_v45  ;;  %v2124_v6 = vld [vmem:[#allocation2 + $0x142] sm:$0xff]  ;;  %v2093_v45 = vld [vmem:[#allocation2 + $0x151] sm:$0xff] }
 0x1cd   : > { %v694_v55 = vpop.permute.xlu0 %693 }
 0x1ce   : > { %v696_v29 = vpop.permute.xlu1 %695  ;;  %v899_v56 = vsel %vm408_vm0, %v8168_v32, %v694_v55  ;;  %v2088_v32 = vld [vmem:[#allocation2 + $0x111] sm:$0xff] }
 0x1cf   : > { %2321 = vrot.lane.b32.xlu0 %v2115_v57, %s7343_s20  ;;  %v900_v46 = vsel %vm408_vm0, %v8166_v31, %v696_v29  ;;  %v2126_v57 = vld [vmem:[#allocation2 + $0x15a] sm:$0xff]  ;;  %v2125_v55 = vld [vmem:[#allocation2 + $0x152] sm:$0xff] }
 0x1d0   : > { %2323 = vrot.lane.b32.xlu1 %v2116_v17, %s7343_s20 }
 0x1d1   : > { %v822_v19 = vpop.permute.xlu0 %821 }
 0x1d2   : > { %v824_v10 = vpop.permute.xlu1 %823  ;;  %v932_v48 = vsel %vm913_vm2, %v899_v56, %v822_v19 }
 0x1d3   : > { %v933_v18 = vsel %vm913_vm2, %v900_v46, %v824_v10  ;;  %2197 = vrot.lane.b32.xlu0 %v2085_v47, %s7344_s22  ;;  %6439 = vmatprep.mubr.msk.f32.mxu0 %vm1393_vm3, %v932_v48  ;;  %v2095_v47 = vld [vmem:[#allocation2 + $0x169] sm:$0xff] }
 0x1d4   : > { %2199 = vrot.lane.b32.xlu1 %v2086_v30, %s7344_s22  ;;  %6440 = vmatmul.mubr.msk.f32.gmra.mrb[18].mxu0 %vm1393_vm3, %v933_v18 }
 0x1d5   : > { %v698_v62 = vpop.permute.xlu0 %697 }
 0x1d6   : > { %v700_v31 = vpop.permute.xlu1 %699  ;;  %v901_v5 = vsel %vm408_vm0, %v8190_v54, %v698_v62  ;;  %v2090_v54 = vld [vmem:[#allocation2 + $0x129] sm:$0xff] }
 0x1d7   : > { %2325 = vrot.lane.b32.xlu0 %v2117_v21, %s7343_s20  ;;  %v902_v58 = vsel %vm408_vm0, %v8188_v43, %v700_v31  ;;  %v2127_v31 = vld [vmem:[#allocation2 + $0x16a] sm:$0xff] }
 0x1d8   : > { %2327 = vrot.lane.b32.xlu1 %v2118_v20, %s7343_s20  ;;  %v2128_v20 = vld [vmem:[#allocation2 + $0x172] sm:$0xff] }
 0x1d9   : > { %v826_v52 = vpop.permute.xlu0 %825 }
 0x1da   : > { %v828_v3 = vpop.permute.xlu1 %827  ;;  %v934_v22 = vsel %vm913_vm2, %v901_v5, %v826_v52  ;;  %v2130_v52 = vld [vmem:[#allocation2 + $0x18a] sm:$0xff] }
 0x1db   : > { %v935_v4 = vsel %vm913_vm2, %v902_v58, %v828_v3  ;;  %2201 = vrot.lane.b32.xlu0 %v2087_v50, %s7344_s22  ;;  %6442 = vmatprep.mubr.msk.f32.mxu0 %vm1393_vm3, %v934_v22  ;;  %v2097_v58 = vld [vmem:[#allocation2 + $0x181] sm:$0xff] }
 0x1dc   : > { %2203 = vrot.lane.b32.xlu1 %v2088_v32, %s7344_s22  ;;  %6443 = vmatmul.mubr.msk.f32.gmra.mrb[20].mxu0 %vm1393_vm3, %v935_v4  ;;  %v2129_v22 = vld [vmem:[#allocation2 + $0x182] sm:$0xff] }
 0x1dd   : > { %v702_v35 = vpop.permute.xlu0 %701 }
 0x1de   : > { %v704_v43 = vpop.permute.xlu1 %703  ;;  %v903_v9 = vsel %vm408_vm0, %v8211_v61, %v702_v35  ;;  %v2092_v61 = vld [vmem:[#allocation2 + $0x141] sm:$0xff] }
 0x1df   : > { %2329 = vrot.lane.b32.xlu0 %v2119_v24, %s7343_s20  ;;  %v904_v51 = vsel %vm408_vm0, %v8209_v0, %v704_v43  ;;  %v2037_v24 = vld [vmem:[#allocation2 + $0x30] sm:$0xff] }
 0x1e0   : > { %2331 = vrot.lane.b32.xlu1 %v2120_v23, %s7343_s20  ;;  %v2038_v23 = vld [vmem:[#allocation2 + $0x38] sm:$0xff] }
 0x1e1   : > { %v830_v13 = vpop.permute.xlu0 %829 }
 0x1e2   : > { %v832_v8 = vpop.permute.xlu1 %831  ;;  %v936_v36 = vsel %vm913_vm2, %v903_v9, %v830_v13  ;;  %v2040_v13 = vld [vmem:[#allocation2 + $0x50] sm:$0xff] }
 0x1e3   : > { %v937_v11 = vsel %vm913_vm2, %v904_v51, %v832_v8  ;;  %2205 = vrot.lane.b32.xlu0 %v2089_v49, %s7344_s22  ;;  %6445 = vmatprep.mubr.msk.f32.mxu0 %vm1393_vm3, %v936_v36  ;;  %v2099_v51 = vld [vmem:[#allocation2 + $0x199] sm:$0xff]  ;;  %v2132_v36 = vld [vmem:[#allocation2 + $0x1a2] sm:$0xff] }
 0x1e4   : > { %2207 = vrot.lane.b32.xlu1 %v2090_v54, %s7344_s22  ;;  %6446 = vmatmul.mubr.msk.f32.gmra.mrb[22].mxu0 %vm1393_vm3, %v937_v11 }
 0x1e5   : > { %v706_v40 = vpop.permute.xlu0 %705 }
 0x1e6   : > { %v708_v0 = vpop.permute.xlu1 %707  ;;  %v905_v60 = vsel %vm408_vm0, %v8231_v7, %v706_v40  ;;  %v2094_v7 = vld [vmem:[#allocation2 + $0x159] sm:$0xff] }
 0x1e7   : > { %2333 = vrot.lane.b32.xlu0 %v2121_v39, %s7343_s20  ;;  %v906_v15 = vsel %vm408_vm0, %v8229_v53, %v708_v0  ;;  %v2131_v39 = vld [vmem:[#allocation2 + $0x19a] sm:$0xff] }
 0x1e8   : > { %2335 = vrot.lane.b32.xlu1 %v2122_v38, %s7343_s20  ;;  %v2039_v38 = vld [vmem:[#allocation2 + $0x48] sm:$0xff] }
 0x1e9   : > { %v834_v2 = vpop.permute.xlu0 %833 }
 0x1ea   : > { %v836_v1 = vpop.permute.xlu1 %835  ;;  %v938_v26 = vsel %vm913_vm2, %v905_v60, %v834_v2  ;;  %v2042_v2 = vld [vmem:[#allocation2 + $0x68] sm:$0xff] }
 0x1eb   : > { %v939_v59 = vsel %vm913_vm2, %v906_v15, %v836_v1  ;;  %2209 = vrot.lane.b32.xlu0 %v2091_v34, %s7344_s22  ;;  %6448 = vmatprep.mubr.msk.f32.mxu0 %vm1393_vm3, %v938_v26  ;;  %v2041_v26 = vld [vmem:[#allocation2 + $0x60] sm:$0xff] }
 0x1ec   : > { %2211 = vrot.lane.b32.xlu1 %v2092_v61, %s7344_s22  ;;  %6449 = vmatmul.mubr.msk.f32.gmra.mrb[24].mxu0 %vm1393_vm3, %v939_v59 }
 0x1ed   : > { %v710_v41 = vpop.permute.xlu0 %709 }
 0x1ee   : > { %v712_v53 = vpop.permute.xlu1 %711  ;;  %v907_v37 = vsel %vm408_vm0, %v8251_v33, %v710_v41  ;;  %v2096_v33 = vld [vmem:[#allocation2 + $0x171] sm:$0xff] }
 0x1ef   : > { %2337 = vrot.lane.b32.xlu0 %v2123_v14, %s7343_s20  ;;  %v908_v42 = vsel %vm408_vm0, %v8249_v12, %v712_v53 }
 0x1f0   : > { %2339 = vrot.lane.b32.xlu1 %v2124_v6, %s7343_s20 }
 0x1f1   : > { %v838_v17 = vpop.permute.xlu0 %837 }
 0x1f2   : > { %v840_v44 = vpop.permute.xlu1 %839  ;;  %v940_v29 = vsel %vm913_vm2, %v907_v37, %v838_v17  ;;  %v2044_v37 = vld [vmem:[#allocation2 + $0x80] sm:$0xff] }
 0x1f3   : > { %v941_v16 = vsel %vm913_vm2, %v908_v42, %v840_v44  ;;  %2213 = vrot.lane.b32.xlu0 %v2093_v45, %s7344_s22  ;;  %6451 = vmatprep.mubr.msk.f32.mxu0 %vm1393_vm3, %v940_v29 }
 0x1f4   : > { %2215 = vrot.lane.b32.xlu1 %v2094_v7, %s7344_s22  ;;  %6452 = vmatmul.mubr.msk.f32.gmra.mrb[26].mxu0 %vm1393_vm3, %v941_v16  ;;  %v2043_v16 = vld [vmem:[#allocation2 + $0x78] sm:$0xff] }
 0x1f5   : > { %v714_v30 = vpop.permute.xlu0 %713 }
 0x1f6   : > { %v716_v12 = vpop.permute.xlu1 %715  ;;  %v909_v56 = vsel %vm408_vm0, %v8271_v63, %v714_v30  ;;  %v2098_v63 = vld [vmem:[#allocation2 + $0x189] sm:$0xff] }
 0x1f7   : > { %2341 = vrot.lane.b32.xlu0 %v2125_v55, %s7343_s20  ;;  %v910_v46 = vsel %vm408_vm0, %v8269_v28, %v716_v12 }
 0x1f8   : > { %2343 = vrot.lane.b32.xlu1 %v2126_v57, %s7343_s20 }
 0x1f9   : > { %v842_v19 = vpop.permute.xlu0 %841 }
 0x1fa   : > { %v844_v10 = vpop.permute.xlu1 %843  ;;  %v942_v48 = vsel %vm913_vm2, %v909_v56, %v842_v19 }
 0x1fb   : > { %v943_v18 = vsel %vm913_vm2, %v910_v46, %v844_v10  ;;  %2217 = vrot.lane.b32.xlu0 %v2095_v47, %s7344_s22  ;;  %6454 = vmatprep.mubr.msk.f32.mxu0 %vm1393_vm3, %v942_v48  ;;  %v2046_v10 = vld [vmem:[#allocation2 + $0x98] sm:$0xff]  ;;  %v2045_v47 = vld [vmem:[#allocation2 + $0x90] sm:$0xff] }
 0x1fc   : > { %2219 = vrot.lane.b32.xlu1 %v2096_v33, %s7344_s22  ;;  %6455 = vmatmul.mubr.msk.f32.gmra.mrb[28].mxu0 %vm1393_vm3, %v943_v18 }
 0x1fd   : > { %v718_v21 = vpop.permute.xlu0 %717 }
 0x1fe   : > { %v720_v28 = vpop.permute.xlu1 %719  ;;  %v911_v3 = vsel %vm408_vm0, %v8291_v27, %v718_v21  ;;  %v2100_v27 = vld [vmem:[#allocation2 + $0x1a1] sm:$0xff] }
 0x1ff   : > { %2345 = vrot.lane.b32.xlu0 %v2127_v31, %s7343_s20  ;;  %v912_v62 = vsel %vm408_vm0, %v8289_v25, %v720_v28 }
 0x200   : > { %2347 = vrot.lane.b32.xlu1 %v2128_v20, %s7343_s20 }
 0x201   : > { %v846_v5 = vpop.permute.xlu0 %845 }
 0x202   : > { %v848_v32 = vpop.permute.xlu1 %847  ;;  %v944_v4 = vsel %vm913_vm2, %v911_v3, %v846_v5 }
 0x203   : > { %v945_v50 = vsel %vm913_vm2, %v912_v62, %v848_v32  ;;  %2221 = vrot.lane.b32.xlu0 %v2097_v58, %s7344_s22  ;;  %6457 = vmatprep.mubr.msk.f32.mxu0 %vm1393_vm3, %v944_v4  ;;  %v2047_v62 = vld [vmem:[#allocation2 + $0xa8] sm:$0xff] }
 0x204   : > { %2223 = vrot.lane.b32.xlu1 %v2098_v63, %s7344_s22  ;;  %6458 = vmatmul.mubr.msk.f32.gmra.mrb[30].mxu0 %vm1393_vm3, %v945_v50  ;;  %v2048_v63 = vld [vmem:[#allocation2 + $0xb0] sm:$0xff] }
 0x205   : > { %v2166_v43 = vpop.permute.xlu0 %2165 }
 0x206   : > { %v2168_v25 = vpop.permute.xlu1 %2167  ;;  %v2389_v8 = vsel %vm408_vm0, %v2037_v24, %v2166_v43 }
 0x207   : > { %2349 = vrot.lane.b32.xlu0 %v2129_v22, %s7343_s20  ;;  %v2390_v35 = vsel %vm408_vm0, %v2038_v23, %v2168_v25  ;;  %v2050_v22 = vld [vmem:[#allocation2 + $0xc8] sm:$0xff]  ;;  %v2049_v23 = vld [vmem:[#allocation2 + $0xc0] sm:$0xff] }
 0x208   : > { %2351 = vrot.lane.b32.xlu1 %v2130_v52, %s7343_s20 }
 0x209   : > { %v2294_v9 = vpop.permute.xlu0 %2293 }
 0x20a   : > { %v2296_v54 = vpop.permute.xlu1 %2295  ;;  %v2421_v11 = vsel %vm913_vm2, %v2389_v8, %v2294_v9  ;;  %v2052_v9 = vld [vmem:[#allocation2 + $0xe0] sm:$0xff] }
 0x20b   : > { %v2422_v49 = vsel %vm913_vm2, %v2390_v35, %v2296_v54  ;;  %2225 = vrot.lane.b32.xlu0 %v2099_v51, %s7344_s22  ;;  %6490 = vmatprep.mubr.msk.f32.mxu0 %vm1393_vm3, %v2421_v11  ;;  %v2051_v11 = vld [vmem:[#allocation2 + $0xd8] sm:$0xff] }
 0x20c   : > { %2227 = vrot.lane.b32.xlu1 %v2100_v27, %s7344_s22  ;;  %6491 = vmatmul.mubr.msk.f32.vlgmr.msra.gmra.mrb[0].mxu0 %vm1393_vm3, %v2422_v49 }
 0x20d   : > { %v2170_v40 = vpop.permute.xlu0 %2169 }
 0x20e   : > { %v2172_v0 = vpop.permute.xlu1 %2171  ;;  %v2391_v15 = vsel %vm408_vm0, %v2039_v38, %v2170_v40 }
 0x20f   : > { %v2392_v61 = vsel %vm408_vm0, %v2040_v13, %v2172_v0  ;;  %2353 = vrot.lane.b32.xlu0 %v2131_v39, %s7343_s20 }
 0x210   : > { %2355 = vrot.lane.b32.xlu1 %v2132_v36, %s7343_s20 }
 0x211   : > { %v2298_v34 = vpop.permute.xlu0 %2297 }
 0x212   : > { %v2300_v1 = vpop.permute.xlu1 %2299  ;;  %v2423_v59 = vsel %vm913_vm2, %v2391_v15, %v2298_v34  ;;  %v2053_v34 = vld [vmem:[#allocation2 + $0xf0] sm:$0xff] }
 0x213   : > { %v2424_v60 = vsel %vm913_vm2, %v2392_v61, %v2300_v1  ;;  %6493 = vmatprep.mubr.msk.f32.mxu0 %vm1393_vm3, %v2423_v59  ;;  %v2054_v1 = vld [vmem:[#allocation2 + $0xf8] sm:$0xff] }
 0x214   : > { %6494 = vmatmul.mubr.msk.f32.gmra.mrb[2].mxu0 %vm1393_vm3, %v2424_v60 }
 0x215   : > { %v2174_v53 = vpop.permute.xlu0 %2173 }
 0x216   : > { %v2176_v6 = vpop.permute.xlu1 %2175  ;;  %v2393_v41 = vsel %vm408_vm0, %v2041_v26, %v2174_v53 }
 0x217   : > { %v2394_v14 = vsel %vm408_vm0, %v2042_v2, %v2176_v6 }
 0x219   : > { %v2302_v42 = vpop.permute.xlu0 %2301 }
 0x21a   : > { %v2304_v7 = vpop.permute.xlu1 %2303  ;;  %v2425_v45 = vsel %vm913_vm2, %v2393_v41, %v2302_v42  ;;  %v2055_v42 = vld [vmem:[#allocation2 + $0x108] sm:$0xff] }
 0x21b   : > { %v2426_v44 = vsel %vm913_vm2, %v2394_v14, %v2304_v7  ;;  %6496 = vmatprep.mubr.msk.f32.mxu0 %vm1393_vm3, %v2425_v45  ;;  %v2056_v7 = vld [vmem:[#allocation2 + $0x110] sm:$0xff] }
 0x21c   : > { %6497 = vmatmul.mubr.msk.f32.gmra.mrb[4].mxu0 %vm1393_vm3, %v2426_v44 }
 0x21d   : > { %v2178_v29 = vpop.permute.xlu0 %2177 }
 0x21e   : > { %v2180_v17 = vpop.permute.xlu1 %2179  ;;  %v2395_v12 = vsel %vm408_vm0, %v2043_v16, %v2178_v29 }
 0x21f   : > { %v2396_v57 = vsel %vm408_vm0, %v2044_v37, %v2180_v17 }
 0x221   : > { %v2306_v30 = vpop.permute.xlu0 %2305 }
 0x222   : > { %v2308_v55 = vpop.permute.xlu1 %2307  ;;  %v2427_v46 = vsel %vm913_vm2, %v2395_v12, %v2306_v30  ;;  %v2057_v30 = vld [vmem:[#allocation2 + $0x120] sm:$0xff] }
 0x223   : > { %v2428_v33 = vsel %vm913_vm2, %v2396_v57, %v2308_v55  ;;  %6499 = vmatprep.mubr.msk.f32.mxu0 %vm1393_vm3, %v2427_v46  ;;  %v2058_v55 = vld [vmem:[#allocation2 + $0x128] sm:$0xff] }
 0x224   : > { %6500 = vmatmul.mubr.msk.f32.gmra.mrb[6].mxu0 %vm1393_vm3, %v2428_v33 }
 0x225   : > { %v2182_v18 = vpop.permute.xlu0 %2181 }
 0x226   : > { %v2184_v56 = vpop.permute.xlu1 %2183  ;;  %v2397_v48 = vsel %vm408_vm0, %v2045_v47, %v2182_v18 }
 0x227   : > { %v2398_v19 = vsel %vm408_vm0, %v2046_v10, %v2184_v56 }
 0x229   : > { %v2310_v28 = vpop.permute.xlu0 %2309 }
 0x22a   : > { %v2312_v20 = vpop.permute.xlu1 %2311  ;;  %v2429_v21 = vsel %vm913_vm2, %v2397_v48, %v2310_v28  ;;  %v2059_v28 = vld [vmem:[#allocation2 + $0x138] sm:$0xff] }
 0x22b   : > { %v2430_v31 = vsel %vm913_vm2, %v2398_v19, %v2312_v20  ;;  %6502 = vmatprep.mubr.msk.f32.mxu0 %vm1393_vm3, %v2429_v21  ;;  %v2060_v20 = vld [vmem:[#allocation2 + $0x140] sm:$0xff] }
 0x22c   : > { %6503 = vmatmul.mubr.msk.f32.gmra.mrb[8].mxu0 %vm1393_vm3, %v2430_v31 }
 0x22d   : > { %v2186_v58 = vpop.permute.xlu0 %2185 }
 0x22e   : > { %v2188_v32 = vpop.permute.xlu1 %2187  ;;  %v2399_v50 = vsel %vm408_vm0, %v2047_v62, %v2186_v58 }
 0x22f   : > { %v2400_v3 = vsel %vm408_vm0, %v2048_v63, %v2188_v32 }
 0x231   : > { %v2314_v4 = vpop.permute.xlu0 %2313 }
 0x232   : > { %v2316_v5 = vpop.permute.xlu1 %2315  ;;  %v2431_v25 = vsel %vm913_vm2, %v2399_v50, %v2314_v4  ;;  %v2062_v4 = vld [vmem:[#allocation2 + $0x158] sm:$0xff] }
 0x233   : > { %v2432_v52 = vsel %vm913_vm2, %v2400_v3, %v2316_v5  ;;  %6505 = vmatprep.mubr.msk.f32.mxu0 %vm1393_vm3, %v2431_v25  ;;  %v3023_v5 = vld [vmem:[#allocation2 + $0x1] sm:$0xff]  ;;  %v2061_v25 = vld [vmem:[#allocation2 + $0x150] sm:$0xff] }
 0x234   : > { %6506 = vmatmul.mubr.msk.f32.gmra.mrb[10].mxu0 %vm1393_vm3, %v2432_v52  ;;  %3119 = vrot.lane.b32.xlu0 %v3023_v5, %s7344_s22  ;;  %v3024_v52 = vld [vmem:[#allocation2 + $0x9] sm:$0xff]  ;;  %v8631_v5 = vstv %s2861_s23 }
 0x235   : > { %v2190_v24 = vpop.permute.xlu0 %2189  ;;  %3121 = vrot.lane.b32.xlu1 %v3024_v52, %s7344_s22  ;;  %v3852_v52 = vld [vmem:[#allocation9 + $0xe0] sm:$0xff] }
 0x236   : > { %v2192_v43 = vpop.permute.xlu1 %2191  ;;  %v2401_v35 = vsel %vm408_vm0, %v2049_v23, %v2190_v24  ;;  %v3055_v24 = vld [vmem:[#allocation2 + $0x2] sm:$0xff] }
 0x237   : > { %v2402_v27 = vsel %vm408_vm0, %v2050_v22, %v2192_v43 }
 0x238   : > { %3247 = vrot.lane.b32.xlu0 %v3055_v24, %s7343_s20 }
 0x239   : > { %v2318_v51 = vpop.permute.xlu0 %2317 }
 0x23a   : > { %v2320_v54 = vpop.permute.xlu1 %2319  ;;  %v2433_v49 = vsel %vm913_vm2, %v2401_v35, %v2318_v51  ;;  %v3056_v35 = vld [vmem:[#allocation2 + $0xa] sm:$0xff] }
 0x23b   : > { %v2434_v8 = vsel %vm913_vm2, %v2402_v27, %v2320_v54  ;;  %6508 = vmatprep.mubr.msk.f32.mxu0 %vm1393_vm3, %v2433_v49  ;;  %3249 = vrot.lane.b32.xlu1 %v3056_v35, %s7343_s20 }
 0x23c   : > { %6509 = vmatmul.mubr.msk.f32.gmra.mrb[12].mxu0 %vm1393_vm3, %v2434_v8 }
 0x23d   : > { %v2194_v36 = vpop.permute.xlu0 %2193 }
 0x23e   : > { %v2196_v13 = vpop.permute.xlu1 %2195  ;;  %v2403_v0 = vsel %vm408_vm0, %v2051_v11, %v2194_v36  ;;  %v2063_v11 = vld [vmem:[#allocation2 + $0x168] sm:$0xff] }
 0x23f   : > { %v2404_v38 = vsel %vm408_vm0, %v2052_v9, %v2196_v13  ;;  %v2064_v9 = vld [vmem:[#allocation2 + $0x170] sm:$0xff] }
 0x241   : > { %v2322_v40 = vpop.permute.xlu0 %2321 }
 0x242   : > { %v2324_v39 = vpop.permute.xlu1 %2323  ;;  %v2435_v15 = vsel %vm913_vm2, %v2403_v0, %v2322_v40 }
 0x243   : > { %v2436_v61 = vsel %vm913_vm2, %v2404_v38, %v2324_v39  ;;  %6511 = vmatprep.mubr.msk.f32.mxu0 %vm1393_vm3, %v2435_v15 }
 0x244   : > { %6512 = vmatmul.mubr.msk.f32.gmra.mrb[14].mxu0 %vm1393_vm3, %v2436_v61 }
 0x245   : > { %v2198_v59 = vpop.permute.xlu0 %2197 }
 0x246   : > { %v2200_v60 = vpop.permute.xlu1 %2199  ;;  %v2405_v26 = vsel %vm408_vm0, %v2053_v34, %v2198_v59  ;;  %v2065_v34 = vld [vmem:[#allocation2 + $0x180] sm:$0xff] }
 0x247   : > { %v2406_v2 = vsel %vm408_vm0, %v2054_v1, %v2200_v60  ;;  %v2066_v1 = vld [vmem:[#allocation2 + $0x188] sm:$0xff] }
 0x249   : > { %v2326_v53 = vpop.permute.xlu0 %2325 }
 0x24a   : > { %v2328_v6 = vpop.permute.xlu1 %2327  ;;  %v2437_v41 = vsel %vm913_vm2, %v2405_v26, %v2326_v53 }
 0x24b   : > { %v2438_v14 = vsel %vm913_vm2, %v2406_v2, %v2328_v6  ;;  %6514 = vmatprep.mubr.msk.f32.mxu0 %vm1393_vm3, %v2437_v41 }
 0x24c   : > { %6515 = vmatmul.mubr.msk.f32.gmra.mrb[16].mxu0 %vm1393_vm3, %v2438_v14 }
 0x24d   : > { %v2202_v45 = vpop.permute.xlu0 %2201 }
 0x24e   : > { %v2204_v44 = vpop.permute.xlu1 %2203  ;;  %v2407_v16 = vsel %vm408_vm0, %v2055_v42, %v2202_v45  ;;  %v2067_v42 = vld [vmem:[#allocation2 + $0x198] sm:$0xff] }
 0x24f   : > { %v2408_v37 = vsel %vm408_vm0, %v2056_v7, %v2204_v44  ;;  %v2068_v7 = vld [vmem:[#allocation2 + $0x1a0] sm:$0xff] }
 0x251   : > { %v2330_v29 = vpop.permute.xlu0 %2329 }
 0x252   : > { %v2332_v17 = vpop.permute.xlu1 %2331  ;;  %v2439_v12 = vsel %vm913_vm2, %v2407_v16, %v2330_v29 }
 0x253   : > { %v2440_v57 = vsel %vm913_vm2, %v2408_v37, %v2332_v17  ;;  %6517 = vmatprep.mubr.msk.f32.mxu0 %vm1393_vm3, %v2439_v12 }
 0x254   : > { %6518 = vmatmul.mubr.msk.f32.gmra.mrb[18].mxu0 %vm1393_vm3, %v2440_v57 }
 0x255   : > { %v2206_v46 = vpop.permute.xlu0 %2205 }
 0x256   : > { %v2208_v33 = vpop.permute.xlu1 %2207  ;;  %v2409_v47 = vsel %vm408_vm0, %v2057_v30, %v2206_v46  ;;  %v3840_v30 = vld [vmem:[#allocation9 + $0x80] sm:$0xff]  ;;  %v3841_v46 = vld [vmem:[#allocation9 + $0x88] sm:$0xff] }
 0x257   : > { %v2410_v10 = vsel %vm408_vm0, %v2058_v55, %v2208_v33  ;;  %v3839_v55 = vld [vmem:[#allocation9 + $0x78] sm:$0xff] }
 0x258   : > { %v6876_v33 = vpack.c.bf16 %v3840_v30, %v3839_v55 }
 0x259   : > { %v2334_v18 = vpop.permute.xlu0 %2333 }
 0x25a   : > { %v2336_v56 = vpop.permute.xlu1 %2335  ;;  %v2441_v48 = vsel %vm913_vm2, %v2409_v47, %v2334_v18  ;;  %6877 = vmatprep.subr.bf16.mxu1 %v6876_v33  ;;  %v3844_v18 = vld [vmem:[#allocation9 + $0xa0] sm:$0xff] }
 0x25b   : > { %v2442_v19 = vsel %vm913_vm2, %v2410_v10, %v2336_v56  ;;  %6520 = vmatprep.mubr.msk.f32.mxu0 %vm1393_vm3, %v2441_v48  ;;  %6879 = vmatpush3.bf16.msra.mxu1 %v6876_v33  ;;  %v3842_v10 = vld [vmem:[#allocation9 + $0x90] sm:$0xff]  ;;  %v3843_v56 = vld [vmem:[#allocation9 + $0x98] sm:$0xff]  ;;  %v3845_v48 = vld [vmem:[#allocation9 + $0xa8] sm:$0xff] }
 0x25c   : > { %6521 = vmatmul.mubr.msk.f32.gmra.mrb[20].mxu0 %vm1393_vm3, %v2442_v19  ;;  %v6880_v47 = vpack.c.bf16 %v3842_v10, %v3841_v46  ;;  %v6884_v19 = vpack.c.bf16 %v3844_v18, %v3843_v56 }
 0x25d   : > { %v2210_v21 = vpop.permute.xlu0 %2209 }
 0x25e   : > { %v2212_v31 = vpop.permute.xlu1 %2211  ;;  %v2411_v62 = vsel %vm408_vm0, %v2059_v28, %v2210_v21  ;;  %6881 = vmatprep.subr.bf16.mxu1 %v6880_v47  ;;  %v3848_v21 = vld [vmem:[#allocation9 + $0xc0] sm:$0xff] }
 0x25f   : > { %v2412_v63 = vsel %vm408_vm0, %v2060_v20, %v2212_v31  ;;  %6883 = vmatpush3.bf16.msra.mxu1 %v6880_v47  ;;  %v3846_v20 = vld [vmem:[#allocation9 + $0xb0] sm:$0xff]  ;;  %v3847_v31 = vld [vmem:[#allocation9 + $0xb8] sm:$0xff] }
 0x260   : > { %6885 = vmatprep.subr.bf16.mxu1 %v6884_v19  ;;  %v6888_v28 = vpack.c.bf16 %v3846_v20, %v3845_v48 }
 0x261   : > { %v2338_v58 = vpop.permute.xlu0 %2337 }
 0x262   : > { %v2340_v32 = vpop.permute.xlu1 %2339  ;;  %v2443_v50 = vsel %vm913_vm2, %v2411_v62, %v2338_v58  ;;  %v3849_v62 = vld [vmem:[#allocation9 + $0xc8] sm:$0xff] }
 0x263   : > { %v2444_v3 = vsel %vm913_vm2, %v2412_v63, %v2340_v32  ;;  %6523 = vmatprep.mubr.msk.f32.mxu0 %vm1393_vm3, %v2443_v50  ;;  %6887 = vmatpush3.bf16.msra.mxu1 %v6884_v19  ;;  %v6892_v63 = vpack.c.bf16 %v3848_v21, %v3847_v31  ;;  %v3850_v32 = vld [vmem:[#allocation9 + $0xd0] sm:$0xff] }
 0x264   : > { %6524 = vmatmul.mubr.msk.f32.gmra.mrb[22].mxu0 %vm1393_vm3, %v2444_v3  ;;  %6889 = vmatprep.subr.bf16.mxu1 %v6888_v28  ;;  %v6896_v58 = vpack.c.bf16 %v3850_v32, %v3849_v62  ;;  %v8629_v3 = vld [vmem:[%s10027_s2] ss:$0 sm:$0xff] }
 0x265   : > { %v2214_v23 = vpop.permute.xlu0 %2213 }
 0x266   : > { %v2216_v22 = vpop.permute.xlu1 %2215  ;;  %v2413_v27 = vsel %vm408_vm0, %v2061_v25, %v2214_v23 }
 0x267   : > { %v2414_v43 = vsel %vm408_vm0, %v2062_v4, %v2216_v22  ;;  %6891 = vmatpush3.bf16.msra.mxu1 %v6888_v28  ;;  %v3851_v4 = vld [vmem:[#allocation9 + $0xd8] sm:$0xff] }
 0x268   : > { %6893 = vmatprep.subr.bf16.mxu1 %v6892_v63  ;;  %v6900_v23 = vpack.c.bf16 %v3852_v52, %v3851_v4 }
 0x269   : > { %v2342_v51 = vpop.permute.xlu0 %2341 }
 0x26a   : > { %v2344_v54 = vpop.permute.xlu1 %2343  ;;  %v2445_v49 = vsel %vm913_vm2, %v2413_v27, %v2342_v51 }
 0x26b   : > { %v2446_v8 = vsel %vm913_vm2, %v2414_v43, %v2344_v54  ;;  %6526 = vmatprep.mubr.msk.f32.mxu0 %vm1393_vm3, %v2445_v49  ;;  %6895 = vmatpush3.bf16.msra.mxu1 %v6892_v63  ;;  %v3853_v54 = vld [vmem:[#allocation9 + $0xe8] sm:$0xff] }
 0x26c   : > { %6527 = vmatmul.mubr.msk.f32.gmra.mrb[24].mxu0 %vm1393_vm3, %v2446_v8  ;;  %6897 = vmatprep.subr.bf16.mxu1 %v6896_v58 }
 0x26d   : > { %v2218_v36 = vpop.permute.xlu0 %2217 }
 0x26e   : > { %v2220_v13 = vpop.permute.xlu1 %2219  ;;  %v2415_v0 = vsel %vm408_vm0, %v2063_v11, %v2218_v36 }
 0x26f   : > { %v2416_v38 = vsel %vm408_vm0, %v2064_v9, %v2220_v13  ;;  %6899 = vmatpush3.bf16.msra.mxu1 %v6896_v58 }
 0x270   : > { %6901 = vmatprep.subr.bf16.mxu1 %v6900_v23 }
 0x271   : > { %v2346_v40 = vpop.permute.xlu0 %2345 }
 0x272   : > { %v2348_v39 = vpop.permute.xlu1 %2347  ;;  %v2447_v15 = vsel %vm913_vm2, %v2415_v0, %v2346_v40 }
 0x273   : > { %v2448_v61 = vsel %vm913_vm2, %v2416_v38, %v2348_v39  ;;  %6529 = vmatprep.mubr.msk.f32.mxu0 %vm1393_vm3, %v2447_v15  ;;  %6903 = vmatpush3.bf16.msra.mxu1 %v6900_v23 }
 0x274   : > { %6530 = vmatmul.mubr.msk.f32.gmra.mrb[26].mxu0 %vm1393_vm3, %v2448_v61  ;;  %6566 = vmatprep.subr.mxu1 %v3853_v54 }
 0x275   : > { %v2222_v59 = vpop.permute.xlu0 %2221 }
 0x276   : > { %v2224_v60 = vpop.permute.xlu1 %2223  ;;  %v2417_v26 = vsel %vm408_vm0, %v2065_v34, %v2222_v59 }
 0x277   : > { %v2418_v2 = vsel %vm408_vm0, %v2066_v1, %v2224_v60  ;;  %6567 = vmatpush3.msra.mxu1 %v3853_v54 }
 0x279   : > { %v2350_v53 = vpop.permute.xlu0 %2349 }
 0x27a   : > { %v2352_v6 = vpop.permute.xlu1 %2351  ;;  %v2449_v41 = vsel %vm913_vm2, %v2417_v26, %v2350_v53 }
 0x27b   : > { %v2450_v14 = vsel %vm913_vm2, %v2418_v2, %v2352_v6  ;;  %6532 = vmatprep.mubr.msk.f32.mxu0 %vm1393_vm3, %v2449_v41 }
 0x27c   : > { %6533 = vmatmul.mubr.msk.f32.gmra.mrb[28].mxu0 %vm1393_vm3, %v2450_v14 }
 0x27d   : > { %v2226_v45 = vpop.permute.xlu0 %2225 }
 0x27e   : > { %v2228_v44 = vpop.permute.xlu1 %2227  ;;  %v2419_v16 = vsel %vm408_vm0, %v2067_v42, %v2226_v45 }
 0x27f   : > { %v2420_v37 = vsel %vm408_vm0, %v2068_v7, %v2228_v44 }
 0x281   : > { %v2354_v29 = vpop.permute.xlu0 %2353 }
 0x282   : > { %v2356_v17 = vpop.permute.xlu1 %2355  ;;  %v2451_v12 = vsel %vm913_vm2, %v2419_v16, %v2354_v29 }
 0x283   : > { %v2452_v57 = vsel %vm913_vm2, %v2420_v37, %v2356_v17  ;;  %6535 = vmatprep.mubr.msk.f32.mxu0 %vm1393_vm3, %v2451_v12 }
 0x284   : > { %6536 = vmatmul.mubr.msk.f32.gmra.mrb[30].mxu0 %vm1393_vm3, %v2452_v57 }
 0x2df   : > { %v6492_v50 = vpop.f32.mrb[0].mxu0 }
 0x2e0   : > { %v2830_v25 = vadd.f32 %v6492_v50, %v8629_v3  ;;  %v2631_v22 = vpop.f32.mrb[1].mxu0 }
 0x2e1   : > { %v2829_v43 = vadd.f32 %v8629_v3, %v2631_v22 }
 0x2e2   : > { %vm2863_vm4 = vcmp.ge.f32.partialorder %v2830_v25, 0.0  ;;  %v2896_v24 = vmul.f32 %v8631_v5, %v2830_v25 }
 0x2e3   : > { %vm2862_vm5 = vcmp.ge.f32.partialorder %v2829_v43, 0.0  ;;  %v2895_v27 = vmul.f32 %v8631_v5, %v2829_v43 }
 0x2e4   : > { %v2928_v35 = vsel %vm2863_vm4, %v2830_v25, %v2896_v24 }
 0x2e5   : > { %2960 = vst.msk [vmem:[#allocation2 + $0x21] sm:$0xff] %vm408_vm0, %v2928_v35  ;;  %v2927_v51 = vsel %vm2862_vm5, %v2829_v43, %v2895_v27 }
 0x2e6   : > { %2959 = vst.msk [vmem:[#allocation2 + $0x19] sm:$0xff] %vm408_vm0, %v2927_v51 }
 0x2e7   : > { %v6495_v8 = vpop.f32.mrb[2].mxu0 }
 0x2e8   : > { %v2832_v49 = vadd.f32 %v6495_v8, %v8629_v3  ;;  %v2641_v9 = vpop.f32.mrb[3].mxu0 }
 0x2e9   : > { %v2831_v11 = vadd.f32 %v8629_v3, %v2641_v9 }
 0x2ea   : > { %vm2865_vm6 = vcmp.ge.f32.partialorder %v2832_v49, 0.0  ;;  %v2898_v13 = vmul.f32 %v8631_v5, %v2832_v49 }
 0x2eb   : > { %vm2864_vm7 = vcmp.ge.f32.partialorder %v2831_v11, 0.0  ;;  %v2897_v36 = vmul.f32 %v8631_v5, %v2831_v11 }
 0x2ec   : > { %v2930_v38 = vsel %vm2865_vm6, %v2832_v49, %v2898_v13  ;;  %v3455_v0 = vld [vmem:[#allocation2 + $0x21] sm:$0xff] }
 0x2ed   : > { %2962 = vst.msk [vmem:[#allocation2 + $0x39] sm:$0xff] %vm408_vm0, %v2930_v38  ;;  %v2929_v39 = vsel %vm2864_vm7, %v2831_v11, %v2897_v36  ;;  %3552 = vrot.lane.b32.xlu1 %v3455_v0, %s7344_s22  ;;  %v3454_v40 = vld [vmem:[#allocation2 + $0x19] sm:$0xff]  ;;  %v3487_v34 = vld [vmem:[#allocation2 + $0x22] sm:$0xff] }
 0x2ee   : > { %2961 = vst.msk [vmem:[#allocation2 + $0x31] sm:$0xff] %vm408_vm0, %v2929_v39  ;;  %3550 = vrot.lane.b32.xlu0 %v3454_v40, %s7344_s22  ;;  %v3486_v59 = vld [vmem:[#allocation2 + $0x1a] sm:$0xff] }
 0x2ef   : > { %v6498_v61 = vpop.f32.mrb[4].mxu0 }
 0x2f0   : > { %v2834_v15 = vadd.f32 %v6498_v61, %v8629_v3  ;;  %v2651_v1 = vpop.f32.mrb[5].mxu0 }
 0x2f1   : > { %v2833_v60 = vadd.f32 %v8629_v3, %v2651_v1  ;;  %3680 = vrot.lane.b32.xlu1 %v3487_v34, %s7343_s20 }
 0x2f2   : > { %vm2867_vm8 = vcmp.ge.f32.partialorder %v2834_v15, 0.0  ;;  %v2900_v2 = vmul.f32 %v8631_v5, %v2834_v15  ;;  %3678 = vrot.lane.b32.xlu0 %v3486_v59, %s7343_s20 }
 0x2f3   : > { %vm2866_vm9 = vcmp.ge.f32.partialorder %v2833_v60, 0.0  ;;  %v2899_v26 = vmul.f32 %v8631_v5, %v2833_v60 }
 0x2f4   : > { %v2932_v6 = vsel %vm2867_vm8, %v2834_v15, %v2900_v2  ;;  %v3457_v16 = vld [vmem:[#allocation2 + $0x39] sm:$0xff] }
 0x2f5   : > { %2964 = vst.msk [vmem:[#allocation2 + $0x51] sm:$0xff] %vm408_vm0, %v2932_v6  ;;  %v2931_v53 = vsel %vm2866_vm9, %v2833_v60, %v2899_v26  ;;  %3125 = vrot.lane.b32.xlu1 %v3455_v0, %s7344_s22  ;;  %v3456_v29 = vld [vmem:[#allocation2 + $0x31] sm:$0xff]  ;;  %v3489_v30 = vld [vmem:[#allocation2 + $0x3a] sm:$0xff] }
 0x2f6   : > { %2963 = vst.msk [vmem:[#allocation2 + $0x49] sm:$0xff] %vm408_vm0, %v2931_v53  ;;  %3123 = vrot.lane.b32.xlu0 %v3454_v40, %s7344_s22  ;;  %v3488_v46 = vld [vmem:[#allocation2 + $0x32] sm:$0xff] }
 0x2f7   : > { %v6501_v14 = vpop.f32.mrb[6].mxu0 }
 0x2f8   : > { %v2836_v41 = vadd.f32 %v6501_v14, %v8629_v3  ;;  %v2661_v7 = vpop.f32.mrb[7].mxu0 }
 0x2f9   : > { %v2835_v42 = vadd.f32 %v8629_v3, %v2661_v7  ;;  %3253 = vrot.lane.b32.xlu1 %v3487_v34, %s7343_s20 }
 0x2fa   : > { %vm2869_vm10 = vcmp.ge.f32.partialorder %v2836_v41, 0.0  ;;  %v2902_v44 = vmul.f32 %v8631_v5, %v2836_v41  ;;  %3251 = vrot.lane.b32.xlu0 %v3486_v59, %s7343_s20 }
 0x2fb   : > { %vm2868_vm11 = vcmp.ge.f32.partialorder %v2835_v42, 0.0  ;;  %v2901_v45 = vmul.f32 %v8631_v5, %v2835_v42 }
 0x2fc   : > { %v2934_v37 = vsel %vm2869_vm10, %v2836_v41, %v2902_v44  ;;  %v3459_v62 = vld [vmem:[#allocation2 + $0x51] sm:$0xff] }
 0x2fd   : > { %2966 = vst.msk [vmem:[#allocation2 + $0x69] sm:$0xff] %vm408_vm0, %v2934_v37  ;;  %v2933_v17 = vsel %vm2868_vm11, %v2835_v42, %v2901_v45  ;;  %3556 = vrot.lane.b32.xlu1 %v3457_v16, %s7344_s22  ;;  %v3458_v58 = vld [vmem:[#allocation2 + $0x49] sm:$0xff]  ;;  %v3491_v25 = vld [vmem:[#allocation2 + $0x52] sm:$0xff] }
 0x2fe   : > { %2965 = vst.msk [vmem:[#allocation2 + $0x61] sm:$0xff] %vm408_vm0, %v2933_v17  ;;  %3554 = vrot.lane.b32.xlu0 %v3456_v29, %s7344_s22  ;;  %v3490_v23 = vld [vmem:[#allocation2 + $0x4a] sm:$0xff] }
 0x2ff   : > { %v6504_v57 = vpop.f32.mrb[8].mxu0 }
 0x300   : > { %v2838_v12 = vadd.f32 %v6504_v57, %v8629_v3  ;;  %v2671_v55 = vpop.f32.mrb[9].mxu0 }
 0x301   : > { %v2837_v33 = vadd.f32 %v8629_v3, %v2671_v55  ;;  %3684 = vrot.lane.b32.xlu1 %v3489_v30, %s7343_s20 }
 0x302   : > { %vm2871_vm12 = vcmp.ge.f32.partialorder %v2838_v12, 0.0  ;;  %v2904_v10 = vmul.f32 %v8631_v5, %v2838_v12  ;;  %3682 = vrot.lane.b32.xlu0 %v3488_v46, %s7343_s20 }
 0x303   : > { %vm2870_vm13 = vcmp.ge.f32.partialorder %v2837_v33, 0.0  ;;  %v2903_v47 = vmul.f32 %v8631_v5, %v2837_v33 }
 0x304   : > { %v2936_v56 = vsel %vm2871_vm12, %v2838_v12, %v2904_v10  ;;  %v3461_v36 = vld [vmem:[#allocation2 + $0x69] sm:$0xff] }
 0x305   : > { %2968 = vst.msk [vmem:[#allocation2 + $0x81] sm:$0xff] %vm408_vm0, %v2936_v56  ;;  %v2935_v18 = vsel %vm2870_vm13, %v2837_v33, %v2903_v47  ;;  %3129 = vrot.lane.b32.xlu1 %v3457_v16, %s7344_s22  ;;  %v3460_v0 = vld [vmem:[#allocation2 + $0x61] sm:$0xff]  ;;  %v8708_v15 = vld [vmem:[#allocation2 + $0x6a] sm:$0xff] }
 0x306   : > { %2967 = vst.msk [vmem:[#allocation2 + $0x79] sm:$0xff] %vm408_vm0, %v2935_v18  ;;  %3127 = vrot.lane.b32.xlu0 %v3456_v29, %s7344_s22  ;;  %v3492_v34 = vld [vmem:[#allocation2 + $0x62] sm:$0xff] }
 0x307   : > { %v6507_v19 = vpop.f32.mrb[10].mxu0 }
 0x308   : > { %v2840_v48 = vadd.f32 %v6507_v19, %v8629_v3  ;;  %v2681_v20 = vpop.f32.mrb[11].mxu0 }
 0x309   : > { %v2839_v28 = vadd.f32 %v8629_v3, %v2681_v20  ;;  %3257 = vrot.lane.b32.xlu1 %v3489_v30, %s7343_s20 }
 0x30a   : > { %vm2873_vm14 = vcmp.ge.f32.partialorder %v2840_v48, 0.0  ;;  %v2906_v31 = vmul.f32 %v8631_v5, %v2840_v48  ;;  %3255 = vrot.lane.b32.xlu0 %v3488_v46, %s7343_s20 }
 0x30b   : > { %vm2872_vm15 = vcmp.ge.f32.partialorder %v2839_v28, 0.0  ;;  %v2905_v21 = vmul.f32 %v8631_v5, %v2839_v28 }
 0x30c   : > { %v2938_v63 = vsel %vm2873_vm14, %v2840_v48, %v2906_v31  ;;  %v8721_v41 = vld [vmem:[#allocation2 + $0x81] sm:$0xff] }
 0x30d   : > { %2970 = vst.msk [vmem:[#allocation2 + $0x99] sm:$0xff] %vm408_vm0, %v2938_v63  ;;  %v2937_v32 = vsel %vm2872_vm15, %v2839_v28, %v2905_v21  ;;  %3560 = vrot.lane.b32.xlu1 %v3459_v62, %s7344_s22  ;;  %v8729_v37 = vld [vmem:[#allocation2 + $0x82] sm:$0xff]  ;;  %v8734_v17 = vld [vmem:[#allocation2 + $0x79] sm:$0xff] }
 0x30e   : > { %2969 = vst.msk [vmem:[#allocation2 + $0x91] sm:$0xff] %vm408_vm0, %v2937_v32  ;;  %3558 = vrot.lane.b32.xlu0 %v3458_v58, %s7344_s22  ;;  %v8745_v33 = vld [vmem:[#allocation2 + $0x7a] sm:$0xff] }
 0x30f   : > { %v6510_v50 = vpop.f32.mrb[12].mxu0 }
 0x310   : > { %v2842_v4 = vadd.f32 %v6510_v50, %v8629_v3  ;;  %v2691_v52 = vpop.f32.mrb[13].mxu0 }
 0x311   : > { %v2841_v22 = vadd.f32 %v8629_v3, %v2691_v52  ;;  %3688 = vrot.lane.b32.xlu1 %v3491_v25, %s7343_s20 }
 0x312   : > { %vm2875_vm1 = vcmp.ge.f32.partialorder %v2842_v4, 0.0  ;;  %v2908_v43 = vmul.f32 %v8631_v5, %v2842_v4  ;;  %3686 = vrot.lane.b32.xlu0 %v3490_v23, %s7343_s20 }
 0x313   : > { %vm2874_vm4 = vcmp.ge.f32.partialorder %v2841_v22, 0.0  ;;  %v2907_v24 = vmul.f32 %v8631_v5, %v2841_v22 }
 0x314   : > { %v2940_v27 = vsel %vm2875_vm1, %v2842_v4, %v2908_v43  ;;  %v8740_v55 = vld [vmem:[#allocation2 + $0x99] sm:$0xff] }
 0x315   : > { %2972 = vst.msk [vmem:[#allocation2 + $0xb1] sm:$0xff] %vm408_vm0, %v2940_v27  ;;  %v2939_v35 = vsel %vm2874_vm4, %v2841_v22, %v2907_v24  ;;  %3133 = vrot.lane.b32.xlu1 %v3459_v62, %s7344_s22  ;;  %v8751_v56 = vld [vmem:[#allocation2 + $0x9a] sm:$0xff]  ;;  %v8756_v19 = vld [vmem:[#allocation2 + $0x91] sm:$0xff] }
 0x316   : > { %2971 = vst.msk [vmem:[#allocation2 + $0xa9] sm:$0xff] %vm408_vm0, %v2939_v35  ;;  %3131 = vrot.lane.b32.xlu0 %v3458_v58, %s7344_s22  ;;  %v8767_v63 = vld [vmem:[#allocation2 + $0x92] sm:$0xff] }
 0x317   : > { %v6513_v54 = vpop.f32.mrb[14].mxu0 }
 0x318   : > { %v2844_v51 = vadd.f32 %v6513_v54, %v8629_v3  ;;  %v2701_v8 = vpop.f32.mrb[15].mxu0 }
 0x319   : > { %v2843_v49 = vadd.f32 %v8629_v3, %v2701_v8  ;;  %3261 = vrot.lane.b32.xlu1 %v3491_v25, %s7343_s20 }
 0x31a   : > { %vm2877_vm5 = vcmp.ge.f32.partialorder %v2844_v51, 0.0  ;;  %v2910_v9 = vmul.f32 %v8631_v5, %v2844_v51  ;;  %3259 = vrot.lane.b32.xlu0 %v3490_v23, %s7343_s20 }
 0x31b   : > { %vm2876_vm6 = vcmp.ge.f32.partialorder %v2843_v49, 0.0  ;;  %v2909_v11 = vmul.f32 %v8631_v5, %v2843_v49 }
 0x31c   : > { %v2942_v13 = vsel %vm2877_vm5, %v2844_v51, %v2910_v9  ;;  %v8762_v31 = vld [vmem:[#allocation2 + $0xb1] sm:$0xff] }
 0x31d   : > { %2974 = vst.msk [vmem:[#allocation2 + $0xc9] sm:$0xff] %vm408_vm0, %v2942_v13  ;;  %v2941_v38 = vsel %vm2876_vm6, %v2843_v49, %v2909_v11  ;;  %3564 = vrot.lane.b32.xlu1 %v3461_v36, %s7344_s22  ;;  %v8773_v50 = vld [vmem:[#allocation2 + $0xb2] sm:$0xff]  ;;  %v8778_v52 = vld [vmem:[#allocation2 + $0xa9] sm:$0xff] }
 0x31e   : > { %2973 = vst.msk [vmem:[#allocation2 + $0xc1] sm:$0xff] %vm408_vm0, %v2941_v38  ;;  %3562 = vrot.lane.b32.xlu0 %v3460_v0, %s7344_s22  ;;  %v8789_v27 = vld [vmem:[#allocation2 + $0xaa] sm:$0xff] }
 0x31f   : > { %v6516_v39 = vpop.f32.mrb[16].mxu0 }
 0x320   : > { %v2846_v40 = vadd.f32 %v6516_v39, %v8629_v3  ;;  %v2711_v61 = vpop.f32.mrb[17].mxu0 }
 0x321   : > { %v2845_v1 = vadd.f32 %v8629_v3, %v2711_v61  ;;  %3692 = vrot.lane.b32.xlu1 %v8708_v15, %s7343_s20 }
 0x322   : > { %vm2879_vm7 = vcmp.ge.f32.partialorder %v2846_v40, 0.0  ;;  %v2912_v60 = vmul.f32 %v8631_v5, %v2846_v40  ;;  %3690 = vrot.lane.b32.xlu0 %v3492_v34, %s7343_s20 }
 0x323   : > { %vm2878_vm8 = vcmp.ge.f32.partialorder %v2845_v1, 0.0  ;;  %v2911_v59 = vmul.f32 %v8631_v5, %v2845_v1 }
 0x324   : > { %v2944_v2 = vsel %vm2879_vm7, %v2846_v40, %v2912_v60  ;;  %v8784_v43 = vld [vmem:[#allocation2 + $0xc9] sm:$0xff] }
 0x325   : > { %2976 = vst.msk [vmem:[#allocation2 + $0xe1] sm:$0xff] %vm408_vm0, %v2944_v2  ;;  %v2943_v26 = vsel %vm2878_vm8, %v2845_v1, %v2911_v59  ;;  %3137 = vrot.lane.b32.xlu1 %v3461_v36, %s7344_s22  ;;  %v8795_v8 = vld [vmem:[#allocation2 + $0xca] sm:$0xff]  ;;  %v8800_v9 = vld [vmem:[#allocation2 + $0xc1] sm:$0xff] }
 0x326   : > { %2975 = vst.msk [vmem:[#allocation2 + $0xd9] sm:$0xff] %vm408_vm0, %v2943_v26  ;;  %3135 = vrot.lane.b32.xlu0 %v3460_v0, %s7344_s22  ;;  %v8811_v39 = vld [vmem:[#allocation2 + $0xc2] sm:$0xff] }
 0x327   : > { %v6519_v6 = vpop.f32.mrb[18].mxu0 }
 0x328   : > { %v2848_v53 = vadd.f32 %v6519_v6, %v8629_v3  ;;  %v2721_v14 = vpop.f32.mrb[19].mxu0 }
 0x329   : > { %v2847_v7 = vadd.f32 %v8629_v3, %v2721_v14  ;;  %3568 = vrot.lane.b32.xlu1 %v8721_v41, %s7344_s22 }
 0x32a   : > { %vm2881_vm9 = vcmp.ge.f32.partialorder %v2848_v53, 0.0  ;;  %v2914_v42 = vmul.f32 %v8631_v5, %v2848_v53  ;;  %3263 = vrot.lane.b32.xlu0 %v3492_v34, %s7343_s20 }
 0x32b   : > { %vm2880_vm10 = vcmp.ge.f32.partialorder %v2847_v7, 0.0  ;;  %v2913_v44 = vmul.f32 %v8631_v5, %v2847_v7 }
 0x32c   : > { %v2946_v45 = vsel %vm2881_vm9, %v2848_v53, %v2914_v42  ;;  %v8806_v38 = vld [vmem:[#allocation2 + $0xe1] sm:$0xff] }
 0x32d   : > { %2978 = vst.msk [vmem:[#allocation2 + $0xf9] sm:$0xff] %vm408_vm0, %v2946_v45  ;;  %v2945_v16 = vsel %vm2880_vm10, %v2847_v7, %v2913_v44  ;;  %3696 = vrot.lane.b32.xlu1 %v8729_v37, %s7343_s20  ;;  %v8817_v34 = vld [vmem:[#allocation2 + $0xe2] sm:$0xff]  ;;  %v8822_v59 = vld [vmem:[#allocation2 + $0xd9] sm:$0xff]  ;;  %v8839_v45 = vpop.permute.xlu1 %3121  ;;  %vm7347_vm10 = vmmov 1  }
 0x32e   : > { %2977 = vst.msk [vmem:[#allocation2 + $0xf1] sm:$0xff] %vm408_vm0, %v2945_v16  ;;  %3566 = vrot.lane.b32.xlu0 %v8734_v17, %s7344_s22  ;;  %v8833_v7 = vld [vmem:[#allocation2 + $0xda] sm:$0xff] }
 0x32f   : > { %v6522_v29 = vpop.f32.mrb[20].mxu0 }
 0x330   : > { %v2850_v57 = vadd.f32 %v6522_v29, %v8629_v3  ;;  %v2731_v12 = vpop.f32.mrb[21].mxu0 }
 0x331   : > { %v2849_v30 = vadd.f32 %v8629_v3, %v2731_v12  ;;  %3572 = vrot.lane.b32.xlu1 %v8740_v55, %s7344_s22 }
 0x332   : > { %vm2883_vm11 = vcmp.ge.f32.partialorder %v2850_v57, 0.0  ;;  %v2916_v46 = vmul.f32 %v8631_v5, %v2850_v57  ;;  %3694 = vrot.lane.b32.xlu0 %v8745_v33, %s7343_s20 }
 0x333   : > { %vm2882_vm12 = vcmp.ge.f32.partialorder %v2849_v30, 0.0  ;;  %v2915_v10 = vmul.f32 %v8631_v5, %v2849_v30 }
 0x334   : > { %v2948_v47 = vsel %vm2883_vm11, %v2850_v57, %v2916_v46  ;;  %v8828_v53 = vld [vmem:[#allocation2 + $0xf9] sm:$0xff] }
 0x335   : > { %2980 = vst.msk [vmem:[#allocation2 + $0x111] sm:$0xff] %vm408_vm0, %v2948_v47  ;;  %v2947_v18 = vsel %vm2882_vm12, %v2849_v30, %v2915_v10  ;;  %3700 = vrot.lane.b32.xlu1 %v8751_v56, %s7343_s20  ;;  %v8841_v29 = vld [vmem:[#allocation2 + $0xfa] sm:$0xff]  ;;  %v8846_v12 = vld [vmem:[#allocation2 + $0xf1] sm:$0xff]  ;;  %v8849_v30 = vpop.permute.xlu0 %3119  ;;  %vm5474_vm12 = vcmask 80896  }
 0x336   : > { %2979 = vst.msk [vmem:[#allocation2 + $0x109] sm:$0xff] %vm408_vm0, %v2947_v18  ;;  %3570 = vrot.lane.b32.xlu0 %v8756_v19, %s7344_s22 }
 0x337   : > { %v6525_v48 = vpop.f32.mrb[22].mxu0 }
 0x338   : > { %v2852_v20 = vadd.f32 %v6525_v48, %v8629_v3  ;;  %v2741_v28 = vpop.f32.mrb[23].mxu0 }
 0x339   : > { %v2851_v21 = vadd.f32 %v8629_v3, %v2741_v28  ;;  %3576 = vrot.lane.b32.xlu1 %v8762_v31, %s7344_s22  ;;  %v8861_v28 = vld [vmem:[#allocation2 + $0xf2] sm:$0xff] }
 0x33a   : > { %vm2885_vm13 = vcmp.ge.f32.partialorder %v2852_v20, 0.0  ;;  %v2918_v62 = vmul.f32 %v8631_v5, %v2852_v20  ;;  %3698 = vrot.lane.b32.xlu0 %v8767_v63, %s7343_s20 }
 0x33b   : > { %vm2884_vm14 = vcmp.ge.f32.partialorder %v2851_v21, 0.0  ;;  %v2917_v32 = vmul.f32 %v8631_v5, %v2851_v21 }
 0x33c   : > { %v2950_v58 = vsel %vm2885_vm13, %v2852_v20, %v2918_v62  ;;  %v8854_v18 = vld [vmem:[#allocation2 + $0x111] sm:$0xff]  ;;  %v8859_v20 = vpop.permute.xlu1 %3249 }
 0x33d   : > { %2982 = vst.msk [vmem:[#allocation2 + $0x129] sm:$0xff] %vm408_vm0, %v2950_v58  ;;  %v2949_v4 = vsel %vm2884_vm14, %v2851_v21, %v2917_v32  ;;  %3704 = vrot.lane.b32.xlu1 %v8773_v50, %s7343_s20  ;;  %v8867_v58 = vpop.permute.xlu0 %3247 }
 0x33e   : > { %2981 = vst.msk [vmem:[#allocation2 + $0x121] sm:$0xff] %vm408_vm0, %v2949_v4  ;;  %3574 = vrot.lane.b32.xlu0 %v8778_v52, %s7344_s22 }
 0x33f   : > { %v6528_v25 = vpop.f32.mrb[24].mxu0 }
 0x340   : > { %v2854_v22 = vadd.f32 %v6528_v25, %v8629_v3  ;;  %v2751_v23 = vpop.f32.mrb[25].mxu0  ;;  %v8874_v25 = vld [vmem:[#allocation2 + $0x109] sm:$0xff] }
 0x341   : > { %v2853_v24 = vadd.f32 %v8629_v3, %v2751_v23  ;;  %3580 = vrot.lane.b32.xlu1 %v8784_v43, %s7344_s22 }
 0x342   : > { %vm2887_vm15 = vcmp.ge.f32.partialorder %v2854_v22, 0.0  ;;  %v2920_v35 = vmul.f32 %v8631_v5, %v2854_v22  ;;  %3702 = vrot.lane.b32.xlu0 %v8789_v27, %s7343_s20 }
 0x343   : > { %vm2886_vm1 = vcmp.ge.f32.partialorder %v2853_v24, 0.0  ;;  %v2919_v54 = vmul.f32 %v8631_v5, %v2853_v24 }
 0x344   : > { %v2952_v51 = vsel %vm2887_vm15, %v2854_v22, %v2920_v35  ;;  %v8879_v23 = vld [vmem:[#allocation2 + $0x129] sm:$0xff]  ;;  %v8887_v35 = vld [vmem:[#allocation2 + $0x18] sm:$0xff] }
 0x345   : > { %2984 = vst.msk [vmem:[#allocation2 + $0x141] sm:$0xff] %vm408_vm0, %v2952_v51  ;;  %v2951_v49 = vsel %vm2886_vm1, %v2853_v24, %v2919_v54  ;;  %3708 = vrot.lane.b32.xlu1 %v8795_v8, %s7343_s20  ;;  %v8883_v24 = vld [vmem:[#allocation2 + $0x10a] sm:$0xff]  ;;  %10115 = vst [vmem:[#allocation15_spill] sm:$0xff] %v8887_v35  ;;  %v3407_v51 = vld [vmem:[#allocation9] sm:$0xff] }
 0x346   : > { %2983 = vst.msk [vmem:[#allocation2 + $0x139] sm:$0xff] %vm408_vm0, %v2951_v49  ;;  %3578 = vrot.lane.b32.xlu0 %v8800_v9, %s7344_s22  ;;  %v3408_v49 = vld [vmem:[#allocation9 + $0x8] sm:$0xff] }
 0x347   : > { %v6531_v11 = vpop.f32.mrb[26].mxu0 }
 0x348   : > { %v2856_v13 = vadd.f32 %v6531_v11, %v8629_v3  ;;  %v2761_v36 = vpop.f32.mrb[27].mxu0  ;;  %v8889_v11 = vld [vmem:[#allocation2 + $0x20] sm:$0xff] }
 0x349   : > { %v2855_v0 = vadd.f32 %v8629_v3, %v2761_v36  ;;  %3584 = vrot.lane.b32.xlu1 %v8806_v38, %s7344_s22  ;;  %10116 = vst [vmem:[#allocation16_spill] sm:$0xff] %v8889_v11 }
 0x34a   : > { %vm2889_vm4 = vcmp.ge.f32.partialorder %v2856_v13, 0.0  ;;  %v2922_v40 = vmul.f32 %v8631_v5, %v2856_v13  ;;  %3706 = vrot.lane.b32.xlu0 %v8811_v39, %s7343_s20 }
 0x34b   : > { %vm2888_vm5 = vcmp.ge.f32.partialorder %v2855_v0, 0.0  ;;  %v2921_v61 = vmul.f32 %v8631_v5, %v2855_v0 }
 0x34c   : > { %v2954_v1 = vsel %vm2889_vm4, %v2856_v13, %v2922_v40  ;;  %v6904_v40 = vpack.c.bf16 %v3408_v49, %v3407_v51  ;;  %v3414_v51 = vld [vmem:[#allocation9 + $0x38] sm:$0xff] }
 0x34d   : > { %2986 = vst.msk [vmem:[#allocation2 + $0x159] sm:$0xff] %vm408_vm0, %v2954_v1  ;;  %v2953_v60 = vsel %vm2888_vm5, %v2855_v0, %v2921_v61  ;;  %3712 = vrot.lane.b32.xlu1 %v8817_v34, %s7343_s20  ;;  %v8893_v0 = vld [vmem:[#allocation2 + $0x12a] sm:$0xff]  ;;  %v8935_v49 = vld [vmem:[#allocation2 + $0x13a] sm:$0xff] }
 0x34e   : > { %2985 = vst.msk [vmem:[#allocation2 + $0x151] sm:$0xff] %vm408_vm0, %v2953_v60  ;;  %3582 = vrot.lane.b32.xlu0 %v8822_v59, %s7344_s22  ;;  %v8900_v60 = vld [vmem:[#allocation2 + $0x121] sm:$0xff]  ;;  %6905 = vmatprep.subr.bf16.mxu1 %v6904_v40 }
 0x34f   : > { %v6534_v2 = vpop.f32.mrb[28].mxu0 }
 0x350   : > { %v2858_v26 = vadd.f32 %v6534_v2, %v8629_v3  ;;  %v2771_v6 = vpop.f32.mrb[29].mxu0 }
 0x351   : > { %v2857_v14 = vadd.f32 %v8629_v3, %v2771_v6  ;;  %3588 = vrot.lane.b32.xlu1 %v8828_v53, %s7344_s22  ;;  %v3409_v6 = vld [vmem:[#allocation9 + $0x10] sm:$0xff] }
 0x352   : > { %vm2891_vm6 = vcmp.ge.f32.partialorder %v2858_v26, 0.0  ;;  %v2924_v42 = vmul.f32 %v8631_v5, %v2858_v26  ;;  %3710 = vrot.lane.b32.xlu0 %v8833_v7, %s7343_s20 }
 0x353   : > { %vm2890_vm7 = vcmp.ge.f32.partialorder %v2857_v14, 0.0  ;;  %v2923_v44 = vmul.f32 %v8631_v5, %v2857_v14 }
 0x354   : > { %v2956_v16 = vsel %vm2891_vm6, %v2858_v26, %v2924_v42 }
 0x355   : > { %2988 = vst.msk [vmem:[#allocation2 + $0x171] sm:$0xff] %vm408_vm0, %v2956_v16  ;;  %v2955_v57 = vsel %vm2890_vm7, %v2857_v14, %v2923_v44  ;;  %3716 = vrot.lane.b32.xlu1 %v8841_v29, %s7343_s20  ;;  %v3410_v14 = vld [vmem:[#allocation9 + $0x18] sm:$0xff]  ;;  %v8911_v44 = vld [vmem:[#allocation2 + $0x141] sm:$0xff] }
 0x356   : > { %2987 = vst.msk [vmem:[#allocation2 + $0x169] sm:$0xff] %vm408_vm0, %v2955_v57  ;;  %3586 = vrot.lane.b32.xlu0 %v8846_v12, %s7344_s22  ;;  %v6908_v16 = vpack.c.bf16 %v3410_v14, %v3409_v6  ;;  %v8915_v57 = vld [vmem:[#allocation2 + $0x122] sm:$0xff]  ;;  %v8945_v6 = vld [vmem:[#allocation2 + $0x15a] sm:$0xff] }
 0x357   : > { %v6537_v46 = vpop.f32.mrb[30].mxu0  ;;  %v3415_v14 = vld [vmem:[#allocation9 + $0x40] sm:$0xff] }
 0x358   : > { %v2860_v10 = vadd.f32 %v6537_v46, %v8629_v3  ;;  %v2781_v47 = vpop.f32.mrb[31].mxu0 }
 0x359   : > { %v2859_v48 = vadd.f32 %v8629_v3, %v2781_v47  ;;  %3592 = vrot.lane.b32.xlu1 %v8854_v18, %s7344_s22  ;;  %v8869_v3 = vld [vmem:[#allocation2 + $0x112] sm:$0xff]  ;;  %v8923_v47 = vld [vmem:[#allocation2 + $0x142] sm:$0xff] }
 0x35a   : > { %vm2893_vm8 = vcmp.ge.f32.partialorder %v2860_v10, 0.0  ;;  %v2926_v21 = vmul.f32 %v8631_v5, %v2860_v10  ;;  %3714 = vrot.lane.b32.xlu0 %v8861_v28, %s7343_s20 }
 0x35b   : > { %vm2892_vm9 = vcmp.ge.f32.partialorder %v2859_v48, 0.0  ;;  %v2925_v62 = vmul.f32 %v8631_v5, %v2859_v48 }
 0x35c   : > { %v2958_v32 = vsel %vm2893_vm8, %v2860_v10, %v2926_v21  ;;  %v3412_v21 = vld [vmem:[#allocation9 + $0x28] sm:$0xff] }
 0x35d   : > { %2990 = vst.msk [vmem:[#allocation2 + $0x189] sm:$0xff] %vm408_vm0, %v2958_v32  ;;  %v2957_v4 = vsel %vm2892_vm9, %v2859_v48, %v2925_v62  ;;  %3720 = vrot.lane.b32.xlu1 %v8869_v3, %s7343_s20  ;;  %v3411_v48 = vld [vmem:[#allocation9 + $0x20] sm:$0xff] }
 0x35e   : > { %2989 = vst.msk [vmem:[#allocation2 + $0x181] sm:$0xff] %vm408_vm0, %v2957_v4  ;;  %3590 = vrot.lane.b32.xlu0 %v8874_v25, %s7344_s22  ;;  %v8927_v62 = vld [vmem:[#allocation2 + $0x139] sm:$0xff]  ;;  %v6912_v32 = vpack.c.bf16 %v3412_v21, %v3411_v48 }
 0x35f   : > { %v3553_v22 = vpop.permute.xlu1 %3552 }
 0x360   : > { %v3551_v5 = vpop.permute.xlu0 %3550  ;;  %v3775_v61 = vsel %vm408_vm0, %v8889_v11, %v3553_v22 }
 0x361   : > { %3596 = vrot.lane.b32.xlu1 %v8879_v23, %s7344_s22  ;;  %v3774_v13 = vsel %vm408_vm0, %v8887_v35, %v3551_v5  ;;  %v8931_v5 = vld [vmem:[#allocation2 + $0x159] sm:$0xff] }
 0x362   : > { %3718 = vrot.lane.b32.xlu0 %v8883_v24, %s7343_s20 }
 0x363   : > { %v3681_v54 = vpop.permute.xlu1 %3680 }
 0x364   : > { %v3679_v36 = vpop.permute.xlu0 %3678  ;;  %v3807_v2 = vsel %vm913_vm2, %v3775_v61, %v3681_v54  ;;  %v3413_v54 = vld [vmem:[#allocation9 + $0x30] sm:$0xff] }
 0x365   : > { %3724 = vrot.lane.b32.xlu1 %v8893_v0, %s7343_s20  ;;  %v3806_v1 = vsel %vm913_vm2, %v3774_v13, %v3679_v36  ;;  %v6916_v13 = vpack.c.bf16 %v3414_v51, %v3413_v54  ;;  %v8939_v36 = vld [vmem:[#allocation2 + $0x38] sm:$0xff]  ;;  %v3517_v11 = vld [vmem:[#allocation2 + $0x18a] sm:$0xff] }
 0x366   : > { %6568 = vmatprep.mubr.msk.f32.mxu1 %vm1393_vm3, %v3806_v1  ;;  %3594 = vrot.lane.b32.xlu0 %v8900_v60, %s7344_s22  ;;  %10120 = vst [vmem:[#allocation20_spill] sm:$0xff] %v8939_v36 }
 0x367   : > { %v8906_v26 = vpop.permute.xlu1 %3125  ;;  %6569 = vmatmul.mubr.msk.f32.vlgmr.msra.gmra.mrb[0].mxu1 %vm1393_vm3, %v3807_v2 }
 0x368   : > { %10117 = vst [vmem:[#allocation17_spill] sm:$0xff] %v8906_v26  ;;  %v8909_v42 = vpop.permute.xlu0 %3123  ;;  %6907 = vmatpush3.bf16.msra.mxu1 %v6904_v40  ;;  %v8941_v40 = vld [vmem:[#allocation2 + $0x30] sm:$0xff]  ;;  %v3484_v26 = vld [vmem:[#allocation2 + $0x181] sm:$0xff] }
 0x369   : > { %3600 = vrot.lane.b32.xlu1 %v8911_v44, %s7344_s22  ;;  %6909 = vmatprep.subr.bf16.mxu1 %v6908_v16  ;;  %10121 = vst [vmem:[#allocation21_spill] sm:$0xff] %v8941_v40 }
 0x36a   : > { %3722 = vrot.lane.b32.xlu0 %v8915_v57, %s7343_s20 }
 0x36b   : > { %v8919_v46 = vpop.permute.xlu1 %3253 }
 0x36c   : > { %10118 = vst [vmem:[#allocation18_spill] sm:$0xff] %v8919_v46  ;;  %v8921_v10 = vpop.permute.xlu0 %3251  ;;  %6911 = vmatpush3.bf16.msra.mxu1 %v6908_v16  ;;  %v3416_v16 = vld [vmem:[#allocation9 + $0x48] sm:$0xff] }
 0x36d   : > { %10119 = vst [vmem:[#allocation19_spill] sm:$0xff] %v8921_v10  ;;  %3728 = vrot.lane.b32.xlu1 %v8923_v47, %s7343_s20  ;;  %6913 = vmatprep.subr.bf16.mxu1 %v6912_v32  ;;  %v6920_v54 = vpack.c.bf16 %v3416_v16, %v3415_v14 }
 0x36e   : > { %3598 = vrot.lane.b32.xlu0 %v8927_v62, %s7344_s22 }
 0x36f   : > { %v3557_v4 = vpop.permute.xlu1 %3556 }
 0x370   : > { %v3555_v22 = vpop.permute.xlu0 %3554  ;;  %6915 = vmatpush3.bf16.msra.mxu1 %v6912_v32  ;;  %v3777_v48 = vsel %vm408_vm0, %v8939_v36, %v3557_v4  ;;  %v8952_v32 = vld [vmem:[#allocation2 + $0x151] sm:$0xff]  ;;  %v8979_v36 = vld [vmem:[#allocation2 + $0x169] sm:$0xff] }
 0x371   : > { %3604 = vrot.lane.b32.xlu1 %v8931_v5, %s7344_s22  ;;  %6917 = vmatprep.subr.bf16.mxu1 %v6916_v13  ;;  %v3776_v1 = vsel %vm408_vm0, %v8941_v40, %v3555_v22  ;;  %v8988_v40 = vld [vmem:[#allocation2 + $0x48] sm:$0xff] }
 0x372   : > { %3726 = vrot.lane.b32.xlu0 %v8935_v49, %s7343_s20 }
 0x373   : > { %v3685_v61 = vpop.permute.xlu1 %3684 }
 0x374   : > { %v3683_v2 = vpop.permute.xlu0 %3682  ;;  %6919 = vmatpush3.bf16.msra.mxu1 %v6916_v13  ;;  %v3809_v51 = vsel %vm913_vm2, %v3777_v48, %v3685_v61  ;;  %v8963_v13 = vld [vmem:[#allocation2 + $0x171] sm:$0xff] }
 0x375   : > { %v3808_v21 = vsel %vm913_vm2, %v3776_v1, %v3683_v2  ;;  %3732 = vrot.lane.b32.xlu1 %v8945_v6, %s7343_s20  ;;  %6921 = vmatprep.subr.bf16.mxu1 %v6920_v54  ;;  %v3417_v1 = vld [vmem:[#allocation9 + $0x50] sm:$0xff]  ;;  %v3418_v2 = vld [vmem:[#allocation9 + $0x58] sm:$0xff] }
 0x376   : > { %6571 = vmatprep.mubr.msk.f32.mxu1 %vm1393_vm3, %v3808_v21  ;;  %3602 = vrot.lane.b32.xlu0 %v8952_v32, %s7344_s22  ;;  %v8967_v61 = vld [vmem:[#allocation2 + $0x152] sm:$0xff]  ;;  %v6924_v14 = vpack.c.bf16 %v3418_v2, %v3417_v1 }
 0x377   : > { %v8958_v22 = vpop.permute.xlu1 %3129  ;;  %6572 = vmatmul.mubr.msk.f32.gmra.mrb[2].mxu1 %vm1393_vm3, %v3809_v51  ;;  %v8975_v21 = vld [vmem:[#allocation2 + $0x172] sm:$0xff]  ;;  %v3420_v51 = vld [vmem:[#allocation9 + $0x68] sm:$0xff] }
 0x378   : > { %10122 = vst [vmem:[#allocation22_spill] sm:$0xff] %v8958_v22  ;;  %v8961_v4 = vpop.permute.xlu0 %3127  ;;  %6923 = vmatpush3.bf16.msra.mxu1 %v6920_v54  ;;  %v3419_v54 = vld [vmem:[#allocation9 + $0x60] sm:$0xff] }
 0x379   : > { %10123 = vst [vmem:[#allocation23_spill] sm:$0xff] %v8961_v4  ;;  %3608 = vrot.lane.b32.xlu1 %v8963_v13, %s7344_s22  ;;  %6925 = vmatprep.subr.bf16.mxu1 %v6924_v14  ;;  %v6928_v22 = vpack.c.bf16 %v3420_v51, %v3419_v54  ;;  %v8990_v51 = vld [vmem:[#allocation2 + $0x50] sm:$0xff] }
 0x37a   : > { %3730 = vrot.lane.b32.xlu0 %v8967_v61, %s7343_s20 }
 0x37b   : > { %v8971_v16 = vpop.permute.xlu1 %3257 }
 0x37c   : > { %10124 = vst [vmem:[#allocation24_spill] sm:$0xff] %v8971_v16  ;;  %v8973_v48 = vpop.permute.xlu0 %3255  ;;  %6927 = vmatpush3.bf16.msra.mxu1 %v6924_v14  ;;  %v3485_v16 = vld [vmem:[#allocation2 + $0x189] sm:$0xff] }
 0x37d   : > { %10125 = vst [vmem:[#allocation25_spill] sm:$0xff] %v8973_v48  ;;  %3736 = vrot.lane.b32.xlu1 %v8975_v21, %s7343_s20  ;;  %6929 = vmatprep.subr.bf16.mxu1 %v6928_v22  ;;  %v8984_v48 = vld [vmem:[#allocation2 + $0x16a] sm:$0xff] }
 0x37e   : > { %3606 = vrot.lane.b32.xlu0 %v8979_v36, %s7344_s22  ;;  %v3421_v14 = vld [vmem:[#allocation9 + $0x70] sm:$0xff] }
 0x37f   : > { %v3561_v1 = vpop.permute.xlu1 %3560 }
 0x380   : > { %v3559_v2 = vpop.permute.xlu0 %3558  ;;  %6931 = vmatpush3.bf16.msra.mxu1 %v6928_v22  ;;  %v3779_v22 = vsel %vm408_vm0, %v8990_v51, %v3561_v1  ;;  %v3516_v1 = vld [vmem:[#allocation2 + $0x182] sm:$0xff] }
 0x381   : > { %3612 = vrot.lane.b32.xlu1 %v3485_v16, %s7344_s22  ;;  %6644 = vmatprep.subr.mxu1 %v3421_v14  ;;  %v3778_v4 = vsel %vm408_vm0, %v8988_v40, %v3559_v2 }
 0x382   : > { %3734 = vrot.lane.b32.xlu0 %v8984_v48, %s7343_s20 }
 0x383   : > { %v3689_v54 = vpop.permute.xlu1 %3688 }
 0x384   : > { %v3687_v46 = vpop.permute.xlu0 %3686  ;;  %6645 = vmatpush3.msra.mxu1 %v3421_v14  ;;  %v3811_v10 = vsel %vm913_vm2, %v3779_v22, %v3689_v54  ;;  %v9023_v14 = vld [vmem:[#allocation2 + $0x68] sm:$0xff] }
 0x385   : > { %v3810_v16 = vsel %vm913_vm2, %v3778_v4, %v3687_v46  ;;  %3740 = vrot.lane.b32.xlu1 %v3517_v11, %s7343_s20 }
 0x386   : > { %6574 = vmatprep.mubr.msk.f32.mxu1 %vm1393_vm3, %v3810_v16  ;;  %3610 = vrot.lane.b32.xlu0 %v3484_v26, %s7344_s22 }
 0x387   : > { %v9001_v35 = vpop.permute.xlu1 %3133  ;;  %6575 = vmatmul.mubr.msk.f32.gmra.mrb[4].mxu1 %vm1393_vm3, %v3811_v10 }
 0x388   : > { %v9004_v2 = vpop.permute.xlu0 %3131 }
 0x389   : > { %3265 = vrot.lane.b32.xlu1 %v8708_v15, %s7343_s20  ;;  %v9021_v15 = vld [vmem:[#allocation2 + $0x60] sm:$0xff] }
 0x38a   : > { %3738 = vrot.lane.b32.xlu0 %v3516_v1, %s7343_s20 }
 0x38b   : > { %v9009_v11 = vpop.permute.xlu1 %3261 }
 0x38c   : > { %v9011_v46 = vpop.permute.xlu0 %3259 }
 0x38d   : > { %3141 = vrot.lane.b32.xlu1 %v8721_v41, %s7344_s22 }
 0x38e   : > { %3139 = vrot.lane.b32.xlu0 %v8734_v17, %s7344_s22 }
 0x38f   : > { %v3565_v26 = vpop.permute.xlu1 %3564 }
 0x390   : > { %v3563_v10 = vpop.permute.xlu0 %3562  ;;  %v3781_v17 = vsel %vm408_vm0, %v9023_v14, %v3565_v26 }
 0x391   : > { %3269 = vrot.lane.b32.xlu1 %v8729_v37, %s7343_s20  ;;  %v3780_v54 = vsel %vm408_vm0, %v9021_v15, %v3563_v10  ;;  %v9057_v10 = vld [vmem:[#allocation2 + $0x80] sm:$0xff] }
 0x392   : > { %3267 = vrot.lane.b32.xlu0 %v8745_v33, %s7343_s20 }
 0x393   : > { %v3693_v4 = vpop.permute.xlu1 %3692 }
 0x394   : > { %v3691_v41 = vpop.permute.xlu0 %3690  ;;  %v3813_v37 = vsel %vm913_vm2, %v3781_v17, %v3693_v4  ;;  %v9075_v17 = vld [vmem:[#allocation2 + $0x90] sm:$0xff] }
 0x395   : > { %v3812_v22 = vsel %vm913_vm2, %v3780_v54, %v3691_v41  ;;  %3145 = vrot.lane.b32.xlu1 %v8740_v55, %s7344_s22 }
 0x396   : > { %6577 = vmatprep.mubr.msk.f32.mxu1 %vm1393_vm3, %v3812_v22  ;;  %3143 = vrot.lane.b32.xlu0 %v8756_v19, %s7344_s22  ;;  %v9077_v22 = vld [vmem:[#allocation2 + $0x98] sm:$0xff] }
 0x397   : > { %v9036_v33 = vpop.permute.xlu1 %3137  ;;  %6578 = vmatmul.mubr.msk.f32.gmra.mrb[6].mxu1 %vm1393_vm3, %v3813_v37 }
 0x398   : > { %v9039_v16 = vpop.permute.xlu0 %3135 }
 0x399   : > { %3273 = vrot.lane.b32.xlu1 %v8751_v56, %s7343_s20  ;;  %v9055_v56 = vld [vmem:[#allocation2 + $0x78] sm:$0xff] }
 0x39a   : > { %3271 = vrot.lane.b32.xlu0 %v8767_v63, %s7343_s20 }
 0x39b   : > { %v3569_v55 = vpop.permute.xlu1 %3568 }
 0x39c   : > { %v9045_v1 = vpop.permute.xlu0 %3263 }
 0x39d   : > { %3149 = vrot.lane.b32.xlu1 %v8762_v31, %s7344_s22 }
 0x39e   : > { %3147 = vrot.lane.b32.xlu0 %v8778_v52, %s7344_s22  ;;  %v3783_v52 = vsel %vm408_vm0, %v9057_v10, %v3569_v55 }
 0x39f   : > { %v3697_v19 = vpop.permute.xlu1 %3696 }
 0x3a0   : > { %v3567_v26 = vpop.permute.xlu0 %3566 }
 0x3a1   : > { %3277 = vrot.lane.b32.xlu1 %v8773_v50, %s7343_s20  ;;  %v3782_v4 = vsel %vm408_vm0, %v9055_v56, %v3567_v26  ;;  %v3815_v50 = vsel %vm913_vm2, %v3783_v52, %v3697_v19 }
 0x3a2   : > { %3275 = vrot.lane.b32.xlu0 %v8789_v27, %s7343_s20 }
 0x3a3   : > { %v3573_v63 = vpop.permute.xlu1 %3572 }
 0x3a4   : > { %v3695_v31 = vpop.permute.xlu0 %3694 }
 0x3a5   : > { %v3814_v54 = vsel %vm913_vm2, %v3782_v4, %v3695_v31  ;;  %3153 = vrot.lane.b32.xlu1 %v8784_v43, %s7344_s22  ;;  %v9097_v4 = vld [vmem:[#allocation2 + $0xb0] sm:$0xff] }
 0x3a6   : > { %6580 = vmatprep.mubr.msk.f32.mxu1 %vm1393_vm3, %v3814_v54  ;;  %3151 = vrot.lane.b32.xlu0 %v8800_v9, %s7344_s22  ;;  %v3785_v9 = vsel %vm408_vm0, %v9077_v22, %v3573_v63  ;;  %v9095_v63 = vld [vmem:[#allocation2 + $0xa8] sm:$0xff] }
 0x3a7   : > { %6581 = vmatmul.mubr.msk.f32.gmra.mrb[8].mxu1 %vm1393_vm3, %v3815_v50  ;;  %v3701_v27 = vpop.permute.xlu1 %3700 }
 0x3a8   : > { %v3571_v41 = vpop.permute.xlu0 %3570 }
 0x3a9   : > { %3281 = vrot.lane.b32.xlu1 %v8795_v8, %s7343_s20  ;;  %v3784_v37 = vsel %vm408_vm0, %v9075_v17, %v3571_v41  ;;  %v3817_v8 = vsel %vm913_vm2, %v3785_v9, %v3701_v27  ;;  %v9115_v27 = vld [vmem:[#allocation2 + $0xc0] sm:$0xff]  ;;  %v9117_v41 = vld [vmem:[#allocation2 + $0xc8] sm:$0xff] }
 0x3aa   : > { %3279 = vrot.lane.b32.xlu0 %v8811_v39, %s7343_s20 }
 0x3ab   : > { %v3577_v43 = vpop.permute.xlu1 %3576 }
 0x3ac   : > { %v3699_v55 = vpop.permute.xlu0 %3698 }
 0x3ad   : > { %v3816_v19 = vsel %vm913_vm2, %v3784_v37, %v3699_v55  ;;  %3157 = vrot.lane.b32.xlu1 %v8806_v38, %s7344_s22 }
 0x3ae   : > { %6583 = vmatprep.mubr.msk.f32.mxu1 %vm1393_vm3, %v3816_v19  ;;  %3155 = vrot.lane.b32.xlu0 %v8822_v59, %s7344_s22  ;;  %v3787_v59 = vsel %vm408_vm0, %v9097_v4, %v3577_v43  ;;  %v4913_v19 = vld [vmem:[#allocation9 + $0xf0] sm:$0xff] }
 0x3af   : > { %6584 = vmatmul.mubr.msk.f32.gmra.mrb[10].mxu1 %vm1393_vm3, %v3817_v8  ;;  %v3705_v39 = vpop.permute.xlu1 %3704  ;;  %v4914_v8 = vld [vmem:[#allocation9 + $0xf8] sm:$0xff] }
 0x3b0   : > { %v3575_v26 = vpop.permute.xlu0 %3574 }
 0x3b1   : > { %3285 = vrot.lane.b32.xlu1 %v8817_v34, %s7343_s20  ;;  %v3786_v31 = vsel %vm408_vm0, %v9095_v63, %v3575_v26  ;;  %v3819_v34 = vsel %vm913_vm2, %v3787_v59, %v3705_v39  ;;  %v9133_v39 = vpack.c.bf16 %v4914_v8, %v4913_v19  ;;  %v9198_v8 = vld [vmem:[#allocation2 + $0x120] sm:$0xff] }
 0x3b2   : > { %3283 = vrot.lane.b32.xlu0 %v8833_v7, %s7343_s20 }
 0x3b3   : > { %v3581_v38 = vpop.permute.xlu1 %3580  ;;  %6933 = vmatprep.subr.bf16.mxu1 %v9133_v39 }
 0x3b4   : > { %v3703_v52 = vpop.permute.xlu0 %3702 }
 0x3b5   : > { %v3818_v54 = vsel %vm913_vm2, %v3786_v31, %v3703_v52  ;;  %3161 = vrot.lane.b32.xlu1 %v8828_v53, %s7344_s22 }
 0x3b6   : > { %6586 = vmatprep.mubr.msk.f32.mxu1 %vm1393_vm3, %v3818_v54  ;;  %3159 = vrot.lane.b32.xlu0 %v8846_v12, %s7344_s22  ;;  %v3789_v12 = vsel %vm408_vm0, %v9117_v41, %v3581_v38 }
 0x3b7   : > { %6587 = vmatmul.mubr.msk.f32.gmra.mrb[12].mxu1 %vm1393_vm3, %v3819_v34  ;;  %v3709_v7 = vpop.permute.xlu1 %3708  ;;  %v9158_v34 = vld [vmem:[#allocation2 + $0xf0] sm:$0xff] }
 0x3b8   : > { %v3579_v50 = vpop.permute.xlu0 %3578 }
 0x3b9   : > { %3289 = vrot.lane.b32.xlu1 %v8841_v29, %s7343_s20  ;;  %v3788_v43 = vsel %vm408_vm0, %v9115_v27, %v3579_v50  ;;  %v3821_v29 = vsel %vm913_vm2, %v3789_v12, %v3709_v7  ;;  %v9160_v7 = vld [vmem:[#allocation2 + $0xf8] sm:$0xff]  ;;  %v9178_v12 = vld [vmem:[#allocation2 + $0x108] sm:$0xff] }
 0x3ba   : > { %3287 = vrot.lane.b32.xlu0 %v8861_v28, %s7343_s20 }
 0x3bb   : > { %v3585_v53 = vpop.permute.xlu1 %3584 }
 0x3bc   : > { %v3707_v37 = vpop.permute.xlu0 %3706 }
 0x3bd   : > { %v3820_v55 = vsel %vm913_vm2, %v3788_v43, %v3707_v37  ;;  %3165 = vrot.lane.b32.xlu1 %v8854_v18, %s7344_s22  ;;  %v9137_v18 = vld [vmem:[#allocation2 + $0xd8] sm:$0xff] }
 0x3be   : > { %6589 = vmatprep.mubr.msk.f32.mxu1 %vm1393_vm3, %v3820_v55  ;;  %3163 = vrot.lane.b32.xlu0 %v8874_v25, %s7344_s22  ;;  %v9140_v25 = vld [vmem:[#allocation2 + $0xe0] sm:$0xff]  ;;  %v9180_v55 = vld [vmem:[#allocation2 + $0x110] sm:$0xff] }
 0x3bf   : > { %6590 = vmatmul.mubr.msk.f32.gmra.mrb[14].mxu1 %vm1393_vm3, %v3821_v29  ;;  %v3713_v28 = vpop.permute.xlu1 %3712  ;;  %v3791_v52 = vsel %vm408_vm0, %v9140_v25, %v3585_v53 }
 0x3c0   : > { %v3583_v9 = vpop.permute.xlu0 %3582 }
 0x3c1   : > { %3293 = vrot.lane.b32.xlu1 %v8869_v3, %s7343_s20  ;;  %v3790_v38 = vsel %vm408_vm0, %v9137_v18, %v3583_v9 }
 0x3c2   : > { %3291 = vrot.lane.b32.xlu0 %v8883_v24, %s7343_s20  ;;  %v3823_v24 = vsel %vm913_vm2, %v3791_v52, %v3713_v28 }
 0x3c3   : > { %v3589_v26 = vpop.permute.xlu1 %3588 }
 0x3c4   : > { %v3711_v31 = vpop.permute.xlu0 %3710 }
 0x3c5   : > { %v3822_v3 = vsel %vm913_vm2, %v3790_v38, %v3711_v31  ;;  %3169 = vrot.lane.b32.xlu1 %v8879_v23, %s7344_s22 }
 0x3c6   : > { %6592 = vmatprep.mubr.msk.f32.mxu1 %vm1393_vm3, %v3822_v3  ;;  %3167 = vrot.lane.b32.xlu0 %v8900_v60, %s7344_s22  ;;  %v3793_v60 = vsel %vm408_vm0, %v9160_v7, %v3589_v26  ;;  %v9200_v26 = vld [vmem:[#allocation2 + $0x128] sm:$0xff] }
 0x3c7   : > { %6593 = vmatmul.mubr.msk.f32.gmra.mrb[16].mxu1 %vm1393_vm3, %v3823_v24  ;;  %v3717_v59 = vpop.permute.xlu1 %3716  ;;  %v9218_v24 = vld [vmem:[#allocation2 + $0x138] sm:$0xff] }
 0x3c8   : > { %v3587_v54 = vpop.permute.xlu0 %3586 }
 0x3c9   : > { %3297 = vrot.lane.b32.xlu1 %v8893_v0, %s7343_s20  ;;  %v3792_v50 = vsel %vm408_vm0, %v9158_v34, %v3587_v54  ;;  %v3825_v0 = vsel %vm913_vm2, %v3793_v60, %v3717_v59  ;;  %v9220_v59 = vld [vmem:[#allocation2 + $0x140] sm:$0xff] }
 0x3ca   : > { %3295 = vrot.lane.b32.xlu0 %v8915_v57, %s7343_s20 }
 0x3cb   : > { %v3593_v23 = vpop.permute.xlu1 %3592 }
 0x3cc   : > { %v3715_v53 = vpop.permute.xlu0 %3714 }
 0x3cd   : > { %v3824_v43 = vsel %vm913_vm2, %v3792_v50, %v3715_v53  ;;  %3173 = vrot.lane.b32.xlu1 %v8911_v44, %s7344_s22 }
 0x3ce   : > { %6595 = vmatprep.mubr.msk.f32.mxu1 %vm1393_vm3, %v3824_v43  ;;  %3171 = vrot.lane.b32.xlu0 %v8927_v62, %s7344_s22  ;;  %v3795_v62 = vsel %vm408_vm0, %v9180_v55, %v3593_v23 }
 0x3cf   : > { %6596 = vmatmul.mubr.msk.f32.gmra.mrb[18].mxu1 %vm1393_vm3, %v3825_v0  ;;  %v3721_v57 = vpop.permute.xlu1 %3720  ;;  %v4561_v0 = vld [vmem:[#allocation2 + $0x3a] sm:$0xff] }
 0x3d0   : > { %v3591_v37 = vpop.permute.xlu0 %3590 }
 0x3d1   : > { %3301 = vrot.lane.b32.xlu1 %v8923_v47, %s7343_s20  ;;  %v3794_v29 = vsel %vm408_vm0, %v9178_v12, %v3591_v37  ;;  %v3827_v47 = vsel %vm913_vm2, %v3795_v62, %v3721_v57  ;;  %v4560_v57 = vld [vmem:[#allocation2 + $0x32] sm:$0xff] }
 0x3d2   : > { %3299 = vrot.lane.b32.xlu0 %v8935_v49, %s7343_s20  ;;  %v9234_v37 = vld [vmem:[#allocation2 + $0x150] sm:$0xff] }
 0x3d3   : > { %v3597_v44 = vpop.permute.xlu1 %3596 }
 0x3d4   : > { %v3719_v28 = vpop.permute.xlu0 %3718 }
 0x3d5   : > { %v3826_v9 = vsel %vm913_vm2, %v3794_v29, %v3719_v28  ;;  %3177 = vrot.lane.b32.xlu1 %v8931_v5, %s7344_s22  ;;  %v9236_v29 = vld [vmem:[#allocation2 + $0x158] sm:$0xff] }
 0x3d6   : > { %6598 = vmatprep.mubr.msk.f32.mxu1 %vm1393_vm3, %v3826_v9  ;;  %3175 = vrot.lane.b32.xlu0 %v8952_v32, %s7344_s22  ;;  %v3797_v32 = vsel %vm408_vm0, %v9200_v26, %v3597_v44  ;;  %v4531_v9 = vld [vmem:[#allocation2 + $0x51] sm:$0xff] }
 0x3d7   : > { %6599 = vmatmul.mubr.msk.f32.gmra.mrb[20].mxu1 %vm1393_vm3, %v3827_v47  ;;  %v3725_v49 = vpop.permute.xlu1 %3724 }
 0x3d8   : > { %v3595_v19 = vpop.permute.xlu0 %3594 }
 0x3d9   : > { %3305 = vrot.lane.b32.xlu1 %v8945_v6, %s7343_s20  ;;  %v3796_v38 = vsel %vm408_vm0, %v9198_v8, %v3595_v19  ;;  %v3829_v6 = vsel %vm913_vm2, %v3797_v32, %v3725_v49  ;;  %v4530_v19 = vld [vmem:[#allocation2 + $0x49] sm:$0xff]  ;;  %v4563_v32 = vld [vmem:[#allocation2 + $0x52] sm:$0xff] }
 0x3da   : > { %3303 = vrot.lane.b32.xlu0 %v8967_v61, %s7343_s20 }
 0x3db   : > { %v3601_v5 = vpop.permute.xlu1 %3600 }
 0x3dc   : > { %v3723_v31 = vpop.permute.xlu0 %3722  ;;  %v3799_v50 = vsel %vm408_vm0, %v9220_v59, %v3601_v5 }
 0x3dd   : > { %v3828_v52 = vsel %vm913_vm2, %v3796_v38, %v3723_v31  ;;  %3181 = vrot.lane.b32.xlu1 %v8963_v13, %s7344_s22 }
 0x3de   : > { %6601 = vmatprep.mubr.msk.f32.mxu1 %vm1393_vm3, %v3828_v52  ;;  %3179 = vrot.lane.b32.xlu0 %v8979_v36, %s7344_s22  ;;  %v4529_v36 = vld [vmem:[#allocation2 + $0x39] sm:$0xff]  ;;  %v4562_v52 = vld [vmem:[#allocation2 + $0x4a] sm:$0xff] }
 0x3df   : > { %6602 = vmatmul.mubr.msk.f32.gmra.mrb[22].mxu1 %vm1393_vm3, %v3829_v6  ;;  %v3729_v61 = vpop.permute.xlu1 %3728  ;;  %v9250_v6 = vld [vmem:[#allocation2 + $0x168] sm:$0xff] }
 0x3e0   : > { %v3599_v3 = vpop.permute.xlu0 %3598 }
 0x3e1   : > { %3309 = vrot.lane.b32.xlu1 %v8975_v21, %s7343_s20  ;;  %v3798_v54 = vsel %vm408_vm0, %v9218_v24, %v3599_v3  ;;  %v4528_v21 = vld [vmem:[#allocation2 + $0x31] sm:$0xff] }
 0x3e2   : > { %3307 = vrot.lane.b32.xlu0 %v8984_v48, %s7343_s20  ;;  %v3831_v48 = vsel %vm913_vm2, %v3799_v50, %v3729_v61  ;;  %v9252_v3 = vld [vmem:[#allocation2 + $0x170] sm:$0xff] }
 0x3e3   : > { %v3605_v13 = vpop.permute.xlu1 %3604 }
 0x3e4   : > { %v3727_v23 = vpop.permute.xlu0 %3726  ;;  %v3801_v47 = vsel %vm408_vm0, %v9236_v29, %v3605_v13 }
 0x3e5   : > { %v3830_v53 = vsel %vm913_vm2, %v3798_v54, %v3727_v23  ;;  %4626 = vrot.lane.b32.xlu1 %v4529_v36, %s7344_s22  ;;  %v4533_v23 = vld [vmem:[#allocation2 + $0x69] sm:$0xff] }
 0x3e6   : > { %6604 = vmatprep.mubr.msk.f32.mxu1 %vm1393_vm3, %v3830_v53  ;;  %4624 = vrot.lane.b32.xlu0 %v4528_v21, %s7344_s22  ;;  %v4532_v53 = vld [vmem:[#allocation2 + $0x61] sm:$0xff] }
 0x3e7   : > { %6605 = vmatmul.mubr.msk.f32.gmra.mrb[24].mxu1 %vm1393_vm3, %v3831_v48  ;;  %v3733_v60 = vpop.permute.xlu1 %3732 }
 0x3e8   : > { %v3603_v43 = vpop.permute.xlu0 %3602  ;;  %v3833_v5 = vsel %vm913_vm2, %v3801_v47, %v3733_v60  ;;  %v9272_v47 = vld [vmem:[#allocation2 + $0x188] sm:$0xff] }
 0x3e9   : > { %4754 = vrot.lane.b32.xlu1 %v4561_v0, %s7343_s20  ;;  %v3800_v28 = vsel %vm408_vm0, %v9234_v37, %v3603_v43  ;;  %v4565_v43 = vld [vmem:[#allocation2 + $0x6a] sm:$0xff]  ;;  %v2991_v0 = vld [vmem:[#allocation2] sm:$0xff] }
 0x3ea   : > { %4752 = vrot.lane.b32.xlu0 %v4560_v57, %s7343_s20  ;;  %v4564_v57 = vld [vmem:[#allocation2 + $0x62] sm:$0xff] }
 0x3eb   : > { %v3609_v44 = vpop.permute.xlu1 %3608 }
 0x3ec   : > { %v3731_v62 = vpop.permute.xlu0 %3730  ;;  %v3803_v36 = vsel %vm408_vm0, %v9252_v3, %v3609_v44  ;;  %v9266_v44 = vld [vmem:[#allocation2 + $0x180] sm:$0xff] }
 0x3ed   : > { %v3832_v49 = vsel %vm913_vm2, %v3800_v28, %v3731_v62  ;;  %4630 = vrot.lane.b32.xlu1 %v4531_v9, %s7344_s22  ;;  %v3343_v62 = vsel %vm408_vm0, %v2991_v0, %v8849_v30  ;;  %v2992_v9 = vld [vmem:[#allocation2 + $0x8] sm:$0xff]  ;;  %v4915_v30 = vld [vmem:[#allocation9 + $0x100] sm:$0xff]  ;;  %v10127_v0 = vld [vmem:[#allocation19_spill] sm:$0xff] }
 0x3ee   : > { %6607 = vmatprep.mubr.msk.f32.mxu1 %vm1393_vm3, %v3832_v49  ;;  %4628 = vrot.lane.b32.xlu0 %v4530_v19, %s7344_s22 }
 0x3ef   : > { %6608 = vmatmul.mubr.msk.f32.gmra.mrb[26].mxu1 %vm1393_vm3, %v3833_v5  ;;  %v3737_v38 = vpop.permute.xlu1 %3736  ;;  %v4535_v5 = vld [vmem:[#allocation2 + $0x81] sm:$0xff] }
 0x3f0   : > { %v3607_v31 = vpop.permute.xlu0 %3606  ;;  %v3835_v21 = vsel %vm913_vm2, %v3803_v36, %v3737_v38 }
 0x3f1   : > { %4758 = vrot.lane.b32.xlu1 %v4563_v32, %s7343_s20  ;;  %v3802_v13 = vsel %vm408_vm0, %v9250_v6, %v3607_v31  ;;  %v4534_v32 = vld [vmem:[#allocation2 + $0x79] sm:$0xff] }
 0x3f2   : > { %4756 = vrot.lane.b32.xlu0 %v4562_v52, %s7343_s20 }
 0x3f3   : > { %v3613_v61 = vpop.permute.xlu1 %3612 }
 0x3f4   : > { %v3735_v54 = vpop.permute.xlu0 %3734  ;;  %v3805_v38 = vsel %vm408_vm0, %v9272_v47, %v3613_v61 }
 0x3f5   : > { %v3834_v50 = vsel %vm913_vm2, %v3802_v13, %v3735_v54  ;;  %4634 = vrot.lane.b32.xlu1 %v4533_v23, %s7344_s22  ;;  %v4916_v13 = vld [vmem:[#allocation9 + $0x108] sm:$0xff]  ;;  %v3344_v54 = vsel %vm408_vm0, %v2992_v9, %v8839_v45  ;;  %v3375_v23 = vsel %vm913_vm2, %v3343_v62, %v8867_v58 }
 0x3f6   : > { %6610 = vmatprep.mubr.msk.f32.mxu1 %vm1393_vm3, %v3834_v50  ;;  %4632 = vrot.lane.b32.xlu0 %v4532_v53, %s7344_s22  ;;  %v4567_v50 = vld [vmem:[#allocation2 + $0x82] sm:$0xff]  ;;  %v4566_v53 = vld [vmem:[#allocation2 + $0x7a] sm:$0xff] }
 0x3f7   : > { %6611 = vmatmul.mubr.msk.f32.gmra.mrb[28].mxu1 %vm1393_vm3, %v3835_v21  ;;  %v3741_v48 = vpop.permute.xlu1 %3740  ;;  %v6936_v21 = vpack.c.bf16 %v4916_v13, %v4915_v30  ;;  %v10126_v45 = vld [vmem:[#allocation15_spill] sm:$0xff]  ;;  %v10132_v30 = vld [vmem:[#allocation21_spill] sm:$0xff] }
 0x3f8   : > { %v3611_v60 = vpop.permute.xlu0 %3610  ;;  %v3837_v52 = vsel %vm913_vm2, %v3805_v38, %v3741_v48  ;;  %v3376_v48 = vsel %vm913_vm2, %v3344_v54, %v8859_v20  ;;  %v3345_v58 = vsel %vm408_vm0, %v10126_v45, %v8909_v42  ;;  %v4537_v20 = vld [vmem:[#allocation2 + $0x99] sm:$0xff]  ;;  %v10129_v42 = vld [vmem:[#allocation16_spill] sm:$0xff] }
 0x3f9   : > { %4762 = vrot.lane.b32.xlu1 %v4565_v43, %s7343_s20  ;;  %v3804_v49 = vsel %vm408_vm0, %v9266_v44, %v3611_v60  ;;  %v4917_v60 = vld [vmem:[#allocation9 + $0x110] sm:$0xff]  ;;  %v4918_v43 = vld [vmem:[#allocation9 + $0x118] sm:$0xff]  ;;  %v4919_v54 = vld [vmem:[#allocation9 + $0x120] sm:$0xff] }
 0x3fa   : > { %4760 = vrot.lane.b32.xlu0 %v4564_v57, %s7343_s20  ;;  %v3377_v57 = vsel %vm913_vm2, %v3345_v58, %v10127_v0  ;;  %v6940_v38 = vpack.c.bf16 %v4918_v43, %v4917_v60  ;;  %v4569_v45 = vld [vmem:[#allocation2 + $0x9a] sm:$0xff]  ;;  %v10135_v60 = vld [vmem:[#allocation20_spill] sm:$0xff]  ;;  %v4568_v0 = vld [vmem:[#allocation2 + $0x92] sm:$0xff] }
 0x3fb   : > { %v9268_v28 = vpop.permute.xlu1 %3265  ;;  %v10134_v58 = vld [vmem:[#allocation22_spill] sm:$0xff] }
 0x3fc   : > { %v3739_v19 = vpop.permute.xlu0 %3738  ;;  %v3348_v43 = vsel %vm408_vm0, %v10135_v60, %v10134_v58  ;;  %v4926_v58 = vld [vmem:[#allocation9 + $0x158] sm:$0xff] }
 0x3fd   : > { %v3836_v31 = vsel %vm913_vm2, %v3804_v49, %v3739_v19  ;;  %4638 = vrot.lane.b32.xlu1 %v4535_v5, %s7344_s22  ;;  %v10128_v49 = vld [vmem:[#allocation17_spill] sm:$0xff] }
 0x3fe   : > { %4636 = vrot.lane.b32.xlu0 %v4534_v32, %s7344_s22  ;;  %6613 = vmatprep.mubr.msk.f32.mxu1 %vm1393_vm3, %v3836_v31  ;;  %v3346_v19 = vsel %vm408_vm0, %v10129_v42, %v10128_v49  ;;  %v4536_v5 = vld [vmem:[#allocation2 + $0x91] sm:$0xff]  ;;  %v3349_v42 = vsel %vm408_vm0, %v8988_v40, %v9004_v2  ;;  %v4538_v40 = vld [vmem:[#allocation2 + $0xa9] sm:$0xff] }
 0x3ff   : > { %v9287_v61 = vpop.permute.xlu1 %3141  ;;  %6614 = vmatmul.mubr.msk.f32.gmra.mrb[30].mxu1 %vm1393_vm3, %v3837_v52  ;;  %v10130_v31 = vld [vmem:[#allocation18_spill] sm:$0xff]  ;;  %v10131_v52 = vld [vmem:[#allocation23_spill] sm:$0xff] }
 0x400   : > { %v9290_v36 = vpop.permute.xlu0 %3139  ;;  %6646 = vmatprep.mubr.msk.f32.mxu1 %vm1393_vm3, %v3375_v23  ;;  %v3378_v32 = vsel %vm913_vm2, %v3346_v19, %v10130_v31  ;;  %v3347_v13 = vsel %vm408_vm0, %v10132_v30, %v10131_v52  ;;  %v10133_v23 = vld [vmem:[#allocation25_spill] sm:$0xff]  ;;  %v4921_v19 = vld [vmem:[#allocation9 + $0x130] sm:$0xff]  ;;  %v3350_v30 = vsel %vm408_vm0, %v8990_v51, %v9001_v35 }
 0x401   : > { %4766 = vrot.lane.b32.xlu1 %v4567_v50, %s7343_s20  ;;  %v3379_v50 = vsel %vm913_vm2, %v3347_v13, %v10133_v23  ;;  %v4539_v52 = vld [vmem:[#allocation2 + $0xb1] sm:$0xff]  ;;  %v3351_v13 = vsel %vm408_vm0, %v9021_v15, %v9039_v16 }
 0x402   : > { %4764 = vrot.lane.b32.xlu0 %v4566_v53, %s7343_s20  ;;  %v4571_v23 = vld [vmem:[#allocation2 + $0xb2] sm:$0xff]  ;;  %v4570_v15 = vld [vmem:[#allocation2 + $0xaa] sm:$0xff] }
 0x403   : > { %v9302_v62 = vpop.permute.xlu1 %3269  ;;  %6647 = vmatmul.mubr.msk.f32.vlgmr.msra.gmra.mrb[0].mxu1 %vm1393_vm3, %v3376_v48 }
 0x404   : > { %v9305_v9 = vpop.permute.xlu0 %3267  ;;  %6649 = vmatprep.mubr.msk.f32.mxu1 %vm1393_vm3, %v3377_v57  ;;  %6935 = vmatpush3.bf16.msra.mxu1 %v9133_v39  ;;  %v4920_v39 = vld [vmem:[#allocation9 + $0x128] sm:$0xff] }
 0x405   : > { %4642 = vrot.lane.b32.xlu1 %v4537_v20, %s7344_s22  ;;  %6937 = vmatprep.subr.bf16.mxu1 %v6936_v21  ;;  %v6944_v57 = vpack.c.bf16 %v4920_v39, %v4919_v54  ;;  %v10136_v20 = vld [vmem:[#allocation24_spill] sm:$0xff]  ;;  %v4923_v54 = vld [vmem:[#allocation9 + $0x140] sm:$0xff]  ;;  %v3383_v39 = vsel %vm913_vm2, %v3351_v13, %v9045_v1 }
 0x406   : > { %4640 = vrot.lane.b32.xlu0 %v4536_v5, %s7344_s22  ;;  %v3380_v49 = vsel %vm913_vm2, %v3348_v43, %v10136_v20  ;;  %v3381_v5 = vsel %vm913_vm2, %v3349_v42, %v9011_v46  ;;  %v3382_v46 = vsel %vm913_vm2, %v3350_v30, %v9009_v11  ;;  %v3352_v11 = vsel %vm408_vm0, %v9023_v14, %v9036_v33  ;;  %v4541_v43 = vld [vmem:[#allocation2 + $0xc9] sm:$0xff]  ;;  %v4927_v42 = vld [vmem:[#allocation9 + $0x160] sm:$0xff] }
 0x407   : > { %v9321_v53 = vpop.permute.xlu1 %3145  ;;  %6650 = vmatmul.mubr.msk.f32.gmra.mrb[2].mxu1 %vm1393_vm3, %v3378_v32  ;;  %v3384_v1 = vsel %vm913_vm2, %v3352_v11, %v9268_v28  ;;  %v3354_v28 = vsel %vm408_vm0, %v9057_v10, %v9287_v61  ;;  %v4573_v10 = vld [vmem:[#allocation2 + $0xca] sm:$0xff] }
 0x408   : > { %v3144_v48 = vpop.permute.xlu0 %3143  ;;  %6652 = vmatprep.mubr.msk.f32.mxu1 %vm1393_vm3, %v3379_v50  ;;  %6939 = vmatpush3.bf16.msra.mxu1 %v6936_v21  ;;  %v4922_v21 = vld [vmem:[#allocation9 + $0x138] sm:$0xff]  ;;  %v3353_v50 = vsel %vm408_vm0, %v9055_v56, %v9290_v36  ;;  %v4540_v56 = vld [vmem:[#allocation2 + $0xc1] sm:$0xff]  ;;  %v3356_v61 = vsel %vm408_vm0, %v9077_v22, %v9321_v53 }
 0x409   : > { %4770 = vrot.lane.b32.xlu1 %v4569_v45, %s7343_s20  ;;  %6941 = vmatprep.subr.bf16.mxu1 %v6940_v38  ;;  %v6948_v2 = vpack.c.bf16 %v4922_v21, %v4921_v19  ;;  %v4925_v45 = vld [vmem:[#allocation9 + $0x150] sm:$0xff]  ;;  %v3385_v60 = vsel %vm913_vm2, %v3353_v50, %v9305_v9  ;;  %v3386_v9 = vsel %vm913_vm2, %v3354_v28, %v9302_v62  ;;  %v4579_v28 = vld [vmem:[#allocation2 + $0x112] sm:$0xff] }
 0x40a   : > { %4768 = vrot.lane.b32.xlu0 %v4568_v0, %s7343_s20  ;;  %v6956_v36 = vpack.c.bf16 %v4926_v58, %v4925_v45  ;;  %v3355_v0 = vsel %vm408_vm0, %v9075_v17, %v3144_v48  ;;  %v4572_v62 = vld [vmem:[#allocation2 + $0xc2] sm:$0xff]  ;;  %v4547_v45 = vld [vmem:[#allocation2 + $0x111] sm:$0xff] }
 0x40b   : > { %v3274_v31 = vpop.permute.xlu1 %3273  ;;  %6653 = vmatmul.mubr.msk.f32.gmra.mrb[4].mxu1 %vm1393_vm3, %v3380_v49  ;;  %v4543_v22 = vld [vmem:[#allocation2 + $0xe1] sm:$0xff] }
 0x40c   : > { %v3272_v32 = vpop.permute.xlu0 %3271  ;;  %6655 = vmatprep.mubr.msk.f32.mxu1 %vm1393_vm3, %v3381_v5  ;;  %6943 = vmatpush3.bf16.msra.mxu1 %v6940_v38  ;;  %v4924_v38 = vld [vmem:[#allocation9 + $0x148] sm:$0xff]  ;;  %v3388_v17 = vsel %vm913_vm2, %v3356_v61, %v3274_v31 }
 0x40d   : > { %4646 = vrot.lane.b32.xlu1 %v4539_v52, %s7344_s22  ;;  %6945 = vmatprep.subr.bf16.mxu1 %v6944_v57  ;;  %v6952_v16 = vpack.c.bf16 %v4924_v38, %v4923_v54  ;;  %v4542_v31 = vld [vmem:[#allocation2 + $0xd9] sm:$0xff] }
 0x40e   : > { %4644 = vrot.lane.b32.xlu0 %v4538_v40, %s7344_s22 }
 0x40f   : > { %v3150_v35 = vpop.permute.xlu1 %3149  ;;  %6656 = vmatmul.mubr.msk.f32.gmra.mrb[6].mxu1 %vm1393_vm3, %v3382_v46  ;;  %v4574_v46 = vld [vmem:[#allocation2 + $0xda] sm:$0xff] }
 0x410   : > { %v3148_v51 = vpop.permute.xlu0 %3147  ;;  %6658 = vmatprep.mubr.msk.f32.mxu1 %vm1393_vm3, %v3383_v39  ;;  %6947 = vmatpush3.bf16.msra.mxu1 %v6944_v57  ;;  %v3387_v57 = vsel %vm913_vm2, %v3355_v0, %v3272_v32  ;;  %v3358_v53 = vsel %vm408_vm0, %v9097_v4, %v3150_v35  ;;  %v4575_v4 = vld [vmem:[#allocation2 + $0xe2] sm:$0xff]  ;;  %v4545_v39 = vld [vmem:[#allocation2 + $0xf9] sm:$0xff] }
 0x411   : > { %4774 = vrot.lane.b32.xlu1 %v4571_v23, %s7343_s20  ;;  %6949 = vmatprep.subr.bf16.mxu1 %v6948_v2  ;;  %v3357_v48 = vsel %vm408_vm0, %v9095_v63, %v3148_v51  ;;  %v4544_v51 = vld [vmem:[#allocation2 + $0xf1] sm:$0xff]  ;;  %v4549_v0 = vld [vmem:[#allocation2 + $0x129] sm:$0xff] }
 0x412   : > { %4772 = vrot.lane.b32.xlu0 %v4570_v15, %s7343_s20  ;;  %v4577_v15 = vld [vmem:[#allocation2 + $0xfa] sm:$0xff] }
 0x413   : > { %v3278_v14 = vpop.permute.xlu1 %3277  ;;  %6659 = vmatmul.mubr.msk.f32.gmra.mrb[8].mxu1 %vm1393_vm3, %v3384_v1 }
 0x414   : > { %v3276_v33 = vpop.permute.xlu0 %3275  ;;  %6661 = vmatprep.mubr.msk.f32.mxu1 %vm1393_vm3, %v3385_v60  ;;  %6951 = vmatpush3.bf16.msra.mxu1 %v6948_v2  ;;  %v3390_v63 = vsel %vm913_vm2, %v3358_v53, %v3278_v14  ;;  %v4546_v14 = vld [vmem:[#allocation2 + $0x109] sm:$0xff] }
 0x415   : > { %4650 = vrot.lane.b32.xlu1 %v4541_v43, %s7344_s22  ;;  %6953 = vmatprep.subr.bf16.mxu1 %v6952_v16  ;;  %v3389_v19 = vsel %vm913_vm2, %v3357_v48, %v3276_v33 }
 0x416   : > { %4648 = vrot.lane.b32.xlu0 %v4540_v56, %s7344_s22  ;;  %v4578_v56 = vld [vmem:[#allocation2 + $0x10a] sm:$0xff] }
 0x417   : > { %v3154_v20 = vpop.permute.xlu1 %3153  ;;  %6662 = vmatmul.mubr.msk.f32.gmra.mrb[10].mxu1 %vm1393_vm3, %v3386_v9 }
 0x418   : > { %v3152_v49 = vpop.permute.xlu0 %3151  ;;  %6664 = vmatprep.mubr.msk.f32.mxu1 %vm1393_vm3, %v3387_v57  ;;  %6955 = vmatpush3.bf16.msra.mxu1 %v6952_v16  ;;  %v3360_v2 = vsel %vm408_vm0, %v9117_v41, %v3154_v20  ;;  %v4576_v16 = vld [vmem:[#allocation2 + $0xf2] sm:$0xff] }
 0x419   : > { %4778 = vrot.lane.b32.xlu1 %v4573_v10, %s7343_s20  ;;  %6957 = vmatprep.subr.bf16.mxu1 %v6956_v36  ;;  %v3359_v32 = vsel %vm408_vm0, %v9115_v27, %v3152_v49  ;;  %v4548_v49 = vld [vmem:[#allocation2 + $0x121] sm:$0xff] }
 0x41a   : > { %4776 = vrot.lane.b32.xlu0 %v4572_v62, %s7343_s20  ;;  %v4581_v62 = vld [vmem:[#allocation2 + $0x12a] sm:$0xff] }
 0x41b   : > { %v3282_v21 = vpop.permute.xlu1 %3281  ;;  %6665 = vmatmul.mubr.msk.f32.gmra.mrb[12].mxu1 %vm1393_vm3, %v3388_v17  ;;  %v4580_v17 = vld [vmem:[#allocation2 + $0x122] sm:$0xff] }
 0x41c   : > { %v3280_v5 = vpop.permute.xlu0 %3279  ;;  %6667 = vmatprep.mubr.msk.f32.mxu1 %vm1393_vm3, %v3389_v19  ;;  %6959 = vmatpush3.bf16.msra.mxu1 %v6956_v36  ;;  %v3392_v27 = vsel %vm913_vm2, %v3360_v2, %v3282_v21  ;;  %v4551_v19 = vld [vmem:[#allocation2 + $0x141] sm:$0xff] }
 0x41d   : > { %4654 = vrot.lane.b32.xlu1 %v4543_v22, %s7344_s22  ;;  %6722 = vmatprep.subr.mxu1 %v4927_v42  ;;  %v3391_v52 = vsel %vm913_vm2, %v3359_v32, %v3280_v5  ;;  %v4550_v22 = vld [vmem:[#allocation2 + $0x139] sm:$0xff] }
 0x41e   : > { %4652 = vrot.lane.b32.xlu0 %v4542_v31, %s7344_s22  ;;  %v4582_v32 = vld [vmem:[#allocation2 + $0x13a] sm:$0xff] }
 0x41f   : > { %v3158_v30 = vpop.permute.xlu1 %3157  ;;  %6668 = vmatmul.mubr.msk.f32.gmra.mrb[14].mxu1 %vm1393_vm3, %v3390_v63  ;;  %v4583_v63 = vld [vmem:[#allocation2 + $0x142] sm:$0xff] }
 0x420   : > { %v3156_v40 = vpop.permute.xlu0 %3155  ;;  %6670 = vmatprep.mubr.msk.f32.mxu1 %vm1393_vm3, %v3391_v52  ;;  %6723 = vmatpush3.msra.mxu1 %v4927_v42  ;;  %v3362_v35 = vsel %vm408_vm0, %v9140_v25, %v3158_v30 }
 0x421   : > { %4782 = vrot.lane.b32.xlu1 %v4575_v4, %s7343_s20  ;;  %v3361_v54 = vsel %vm408_vm0, %v9137_v18, %v3156_v40  ;;  %v4553_v40 = vld [vmem:[#allocation2 + $0x159] sm:$0xff] }
 0x422   : > { %4780 = vrot.lane.b32.xlu0 %v4574_v46, %s7343_s20  ;;  %v4552_v46 = vld [vmem:[#allocation2 + $0x151] sm:$0xff] }
 0x423   : > { %v3286_v13 = vpop.permute.xlu1 %3285  ;;  %6671 = vmatmul.mubr.msk.f32.gmra.mrb[16].mxu1 %vm1393_vm3, %v3392_v27 }
 0x424   : > { %v3284_v38 = vpop.permute.xlu0 %3283  ;;  %v3394_v23 = vsel %vm913_vm2, %v3362_v35, %v3286_v13 }
 0x425   : > { %v3393_v41 = vsel %vm913_vm2, %v3361_v54, %v3284_v38  ;;  %4658 = vrot.lane.b32.xlu1 %v4545_v39, %s7344_s22  ;;  %v4585_v54 = vld [vmem:[#allocation2 + $0x15a] sm:$0xff]  ;;  %v4584_v38 = vld [vmem:[#allocation2 + $0x152] sm:$0xff] }
 0x426   : > { %4656 = vrot.lane.b32.xlu0 %v4544_v51, %s7344_s22  ;;  %6673 = vmatprep.mubr.msk.f32.mxu1 %vm1393_vm3, %v3393_v41  ;;  %v4555_v41 = vld [vmem:[#allocation2 + $0x171] sm:$0xff] }
 0x427   : > { %v3162_v11 = vpop.permute.xlu1 %3161  ;;  %6674 = vmatmul.mubr.msk.f32.gmra.mrb[18].mxu1 %vm1393_vm3, %v3394_v23 }
 0x428   : > { %v3160_v18 = vpop.permute.xlu0 %3159  ;;  %v3364_v58 = vsel %vm408_vm0, %v9160_v7, %v3162_v11  ;;  %v4554_v11 = vld [vmem:[#allocation2 + $0x169] sm:$0xff] }
 0x429   : > { %4786 = vrot.lane.b32.xlu1 %v4577_v15, %s7343_s20  ;;  %v3363_v1 = vsel %vm408_vm0, %v9158_v34, %v3160_v18 }
 0x42a   : > { %4784 = vrot.lane.b32.xlu0 %v4576_v16, %s7343_s20  ;;  %v4587_v16 = vld [vmem:[#allocation2 + $0x172] sm:$0xff] }
 0x42b   : > { %v3290_v25 = vpop.permute.xlu1 %3289 }
 0x42c   : > { %v3288_v50 = vpop.permute.xlu0 %3287  ;;  %v3396_v33 = vsel %vm913_vm2, %v3364_v58, %v3290_v25  ;;  %v4586_v25 = vld [vmem:[#allocation2 + $0x16a] sm:$0xff] }
 0x42d   : > { %v3395_v60 = vsel %vm913_vm2, %v3363_v1, %v3288_v50  ;;  %4662 = vrot.lane.b32.xlu1 %v4547_v45, %s7344_s22  ;;  %v4557_v45 = vld [vmem:[#allocation2 + $0x189] sm:$0xff] }
 0x42e   : > { %4660 = vrot.lane.b32.xlu0 %v4546_v14, %s7344_s22  ;;  %6676 = vmatprep.mubr.msk.f32.mxu1 %vm1393_vm3, %v3395_v60  ;;  %v4556_v14 = vld [vmem:[#allocation2 + $0x181] sm:$0xff] }
 0x42f   : > { %v3166_v43 = vpop.permute.xlu1 %3165  ;;  %6677 = vmatmul.mubr.msk.f32.gmra.mrb[20].mxu1 %vm1393_vm3, %v3396_v33 }
 0x430   : > { %v3164_v34 = vpop.permute.xlu0 %3163  ;;  %v3366_v57 = vsel %vm408_vm0, %v9180_v55, %v3166_v43 }
 0x431   : > { %4790 = vrot.lane.b32.xlu1 %v4579_v28, %s7343_s20  ;;  %v3365_v36 = vsel %vm408_vm0, %v9178_v12, %v3164_v34  ;;  %v4589_v28 = vld [vmem:[#allocation2 + $0x18a] sm:$0xff] }
 0x432   : > { %4788 = vrot.lane.b32.xlu0 %v4578_v56, %s7343_s20  ;;  %v4588_v56 = vld [vmem:[#allocation2 + $0x182] sm:$0xff] }
 0x433   : > { %v3294_v7 = vpop.permute.xlu1 %3293 }
 0x434   : > { %v3292_v9 = vpop.permute.xlu0 %3291  ;;  %v3398_v10 = vsel %vm913_vm2, %v3366_v57, %v3294_v7  ;;  %v4559_v7 = vld [vmem:[#allocation2 + $0x1a1] sm:$0xff]  ;;  %v4497_v57 = vld [vmem:[#allocation2 + $0x38] sm:$0xff] }
 0x435   : > { %v3397_v20 = vsel %vm913_vm2, %v3365_v36, %v3292_v9  ;;  %4666 = vrot.lane.b32.xlu1 %v4549_v0, %s7344_s22  ;;  %v4496_v36 = vld [vmem:[#allocation2 + $0x30] sm:$0xff]  ;;  %v4558_v0 = vld [vmem:[#allocation2 + $0x199] sm:$0xff] }
 0x436   : > { %4664 = vrot.lane.b32.xlu0 %v4548_v49, %s7344_s22  ;;  %6679 = vmatprep.mubr.msk.f32.mxu1 %vm1393_vm3, %v3397_v20 }
 0x437   : > { %v3170_v61 = vpop.permute.xlu1 %3169  ;;  %6680 = vmatmul.mubr.msk.f32.gmra.mrb[22].mxu1 %vm1393_vm3, %v3398_v10 }
 0x438   : > { %v3168_v12 = vpop.permute.xlu0 %3167  ;;  %v3368_v21 = vsel %vm408_vm0, %v9200_v26, %v3170_v61 }
 0x439   : > { %4794 = vrot.lane.b32.xlu1 %v4581_v62, %s7343_s20  ;;  %v3367_v48 = vsel %vm408_vm0, %v9198_v8, %v3168_v12  ;;  %v4591_v62 = vld [vmem:[#allocation2 + $0x1a2] sm:$0xff] }
 0x43a   : > { %4792 = vrot.lane.b32.xlu0 %v4580_v17, %s7343_s20 }
 0x43b   : > { %v3298_v55 = vpop.permute.xlu1 %3297 }
 0x43c   : > { %v3296_v42 = vpop.permute.xlu0 %3295  ;;  %v3400_v53 = vsel %vm913_vm2, %v3368_v21, %v3298_v55  ;;  %v4590_v55 = vld [vmem:[#allocation2 + $0x19a] sm:$0xff]  ;;  %v4499_v21 = vld [vmem:[#allocation2 + $0x50] sm:$0xff] }
 0x43d   : > { %v3399_v5 = vsel %vm913_vm2, %v3367_v48, %v3296_v42  ;;  %4670 = vrot.lane.b32.xlu1 %v4551_v19, %s7344_s22  ;;  %v4498_v42 = vld [vmem:[#allocation2 + $0x48] sm:$0xff] }
 0x43e   : > { %4668 = vrot.lane.b32.xlu0 %v4550_v22, %s7344_s22  ;;  %6682 = vmatprep.mubr.msk.f32.mxu1 %vm1393_vm3, %v3399_v5 }
 0x43f   : > { %v3174_v31 = vpop.permute.xlu1 %3173  ;;  %6683 = vmatmul.mubr.msk.f32.gmra.mrb[24].mxu1 %vm1393_vm3, %v3400_v53 }
 0x440   : > { %v3172_v8 = vpop.permute.xlu0 %3171  ;;  %v3370_v4 = vsel %vm408_vm0, %v9220_v59, %v3174_v31 }
 0x441   : > { %4798 = vrot.lane.b32.xlu1 %v4583_v63, %s7343_s20  ;;  %v3369_v52 = vsel %vm408_vm0, %v9218_v24, %v3172_v8 }
 0x442   : > { %4796 = vrot.lane.b32.xlu0 %v4582_v32, %s7343_s20 }
 0x443   : > { %v3302_v26 = vpop.permute.xlu1 %3301 }
 0x444   : > { %v3300_v30 = vpop.permute.xlu0 %3299  ;;  %v3402_v27 = vsel %vm913_vm2, %v3370_v4, %v3302_v26  ;;  %v4500_v26 = vld [vmem:[#allocation2 + $0x60] sm:$0xff] }
 0x445   : > { %v3401_v2 = vsel %vm913_vm2, %v3369_v52, %v3300_v30  ;;  %4674 = vrot.lane.b32.xlu1 %v4553_v40, %s7344_s22  ;;  %v4501_v30 = vld [vmem:[#allocation2 + $0x68] sm:$0xff] }
 0x446   : > { %4672 = vrot.lane.b32.xlu0 %v4552_v46, %s7344_s22  ;;  %6685 = vmatprep.mubr.msk.f32.mxu1 %vm1393_vm3, %v3401_v2 }
 0x447   : > { %v3178_v13 = vpop.permute.xlu1 %3177  ;;  %6686 = vmatmul.mubr.msk.f32.gmra.mrb[26].mxu1 %vm1393_vm3, %v3402_v27 }
 0x448   : > { %v3176_v24 = vpop.permute.xlu0 %3175  ;;  %v3372_v51 = vsel %vm408_vm0, %v9236_v29, %v3178_v13 }
 0x449   : > { %4802 = vrot.lane.b32.xlu1 %v4585_v54, %s7343_s20  ;;  %v3371_v39 = vsel %vm408_vm0, %v9234_v37, %v3176_v24  ;;  %v4502_v54 = vld [vmem:[#allocation2 + $0x78] sm:$0xff] }
 0x44a   : > { %4800 = vrot.lane.b32.xlu0 %v4584_v38, %s7343_s20 }
 0x44b   : > { %v3306_v59 = vpop.permute.xlu1 %3305 }
 0x44c   : > { %v3304_v35 = vpop.permute.xlu0 %3303  ;;  %v3404_v18 = vsel %vm913_vm2, %v3372_v51, %v3306_v59  ;;  %v4503_v59 = vld [vmem:[#allocation2 + $0x80] sm:$0xff] }
 0x44d   : > { %v3403_v23 = vsel %vm913_vm2, %v3371_v39, %v3304_v35  ;;  %4678 = vrot.lane.b32.xlu1 %v4555_v41, %s7344_s22 }
 0x44e   : > { %4676 = vrot.lane.b32.xlu0 %v4554_v11, %s7344_s22  ;;  %6688 = vmatprep.mubr.msk.f32.mxu1 %vm1393_vm3, %v3403_v23 }
 0x44f   : > { %v3182_v15 = vpop.permute.xlu1 %3181  ;;  %6689 = vmatmul.mubr.msk.f32.gmra.mrb[28].mxu1 %vm1393_vm3, %v3404_v18 }
 0x450   : > { %v3180_v37 = vpop.permute.xlu0 %3179  ;;  %v3374_v58 = vsel %vm408_vm0, %v9252_v3, %v3182_v15  ;;  %v4504_v15 = vld [vmem:[#allocation2 + $0x90] sm:$0xff] }
 0x451   : > { %4806 = vrot.lane.b32.xlu1 %v4587_v16, %s7343_s20  ;;  %v3373_v1 = vsel %vm408_vm0, %v9250_v6, %v3180_v37  ;;  %v4505_v16 = vld [vmem:[#allocation2 + $0x98] sm:$0xff] }
 0x452   : > { %4804 = vrot.lane.b32.xlu0 %v4586_v25, %s7343_s20 }
 0x453   : > { %v3310_v29 = vpop.permute.xlu1 %3309 }
 0x454   : > { %v3308_v50 = vpop.permute.xlu0 %3307  ;;  %v3406_v33 = vsel %vm913_vm2, %v3374_v58, %v3310_v29 }
 0x455   : > { %v3405_v60 = vsel %vm913_vm2, %v3373_v1, %v3308_v50  ;;  %4682 = vrot.lane.b32.xlu1 %v4557_v45, %s7344_s22 }
 0x456   : > { %4680 = vrot.lane.b32.xlu0 %v4556_v14, %s7344_s22  ;;  %6691 = vmatprep.mubr.msk.f32.mxu1 %vm1393_vm3, %v3405_v60  ;;  %v4506_v14 = vld [vmem:[#allocation2 + $0xa8] sm:$0xff] }
 0x457   : > { %v4627_v43 = vpop.permute.xlu1 %4626  ;;  %6692 = vmatmul.mubr.msk.f32.gmra.mrb[30].mxu1 %vm1393_vm3, %v3406_v33 }
 0x458   : > { %v4625_v34 = vpop.permute.xlu0 %4624  ;;  %v4849_v10 = vsel %vm408_vm0, %v4497_v57, %v4627_v43  ;;  %v4507_v43 = vld [vmem:[#allocation2 + $0xb0] sm:$0xff]  ;;  %v4508_v57 = vld [vmem:[#allocation2 + $0xc0] sm:$0xff] }
 0x459   : > { %4810 = vrot.lane.b32.xlu1 %v4589_v28, %s7343_s20  ;;  %v4848_v20 = vsel %vm408_vm0, %v4496_v36, %v4625_v34 }
 0x45a   : > { %4808 = vrot.lane.b32.xlu0 %v4588_v56, %s7343_s20 }
 0x45b   : > { %v4755_v9 = vpop.permute.xlu1 %4754 }
 0x45c   : > { %v4753_v49 = vpop.permute.xlu0 %4752  ;;  %v4881_v12 = vsel %vm913_vm2, %v4849_v10, %v4755_v9 }
 0x45d   : > { %v4880_v61 = vsel %vm913_vm2, %v4848_v20, %v4753_v49  ;;  %4686 = vrot.lane.b32.xlu1 %v4559_v7, %s7344_s22  ;;  %v4509_v49 = vld [vmem:[#allocation2 + $0xc8] sm:$0xff] }
 0x45e   : > { %4684 = vrot.lane.b32.xlu0 %v4558_v0, %s7344_s22  ;;  %6724 = vmatprep.mubr.msk.f32.mxu1 %vm1393_vm3, %v4880_v61 }
 0x45f   : > { %v4631_v17 = vpop.permute.xlu1 %4630  ;;  %6725 = vmatmul.mubr.msk.f32.vlgmr.msra.gmra.mrb[0].mxu1 %vm1393_vm3, %v4881_v12 }
 0x460   : > { %v4629_v48 = vpop.permute.xlu0 %4628  ;;  %v4851_v53 = vsel %vm408_vm0, %v4499_v21, %v4631_v17  ;;  %v4511_v21 = vld [vmem:[#allocation2 + $0xe0] sm:$0xff] }
 0x461   : > { %4814 = vrot.lane.b32.xlu1 %v4591_v62, %s7343_s20  ;;  %v4850_v5 = vsel %vm408_vm0, %v4498_v42, %v4629_v48  ;;  %v4510_v42 = vld [vmem:[#allocation2 + $0xd8] sm:$0xff] }
 0x462   : > { %4812 = vrot.lane.b32.xlu0 %v4590_v55, %s7343_s20  ;;  %s7348_s20 = smov [#allocation10]  }
 0x463   : > { %v4759_v19 = vpop.permute.xlu1 %4758  ;;  %s7269_s22 = sshll.u32 %s7348_s20, 4  ;;  %s7270_s22 = int_to_ptr.vmem [resolvable:$false] %s7269_s22 }
 0x464   : > { %v4757_v22 = vpop.permute.xlu0 %4756  ;;  %v4883_v8 = vsel %vm913_vm2, %v4851_v53, %v4759_v19  ;;  %s7271_s23 = scalar_lea.vmem %s7270_s22, 8192  ;;  %p7272_p7 = scmp.lt.s32.totalorder %s9953_s24, %s7270_s22 }
 0x465   : > { %v4882_v31 = vsel %vm913_vm2, %v4850_v5, %v4757_v22  ;;  %p7273_p9 = scmp.lt.s32.totalorder %s7271_s23, %s7265_s14 }
 0x466   : > { %6727 = vmatprep.mubr.msk.f32.mxu1 %vm1393_vm3, %v4882_v31 }
 0x467   : > { %v4635_v63 = vpop.permute.xlu1 %4634  ;;  %6728 = vmatmul.mubr.msk.f32.gmra.mrb[2].mxu1 %vm1393_vm3, %v4883_v8  ;;  %p7274_p12 = por %p7273_p9, %p7272_p7 }
 0x468   : > { %v4633_v32 = vpop.permute.xlu0 %4632  ;;  %v4853_v2 = vsel %vm408_vm0, %v4501_v30, %v4635_v63  ;;  %v4513_v30 = vld [vmem:[#allocation2 + $0xf8] sm:$0xff] }
 0x469   : > { %v4852_v40 = vsel %vm408_vm0, %v4500_v26, %v4633_v32  ;;  %v4512_v26 = vld [vmem:[#allocation2 + $0xf0] sm:$0xff]  ;;  %p7275_p1 = pnand %p7274_p12, %p7268_p3 }
 0x46b   : > { %v4763_v52 = vpop.permute.xlu1 %4762 }
 0x46c   : > { %v4761_v4 = vpop.permute.xlu0 %4760  ;;  %v4885_v27 = vsel %vm913_vm2, %v4853_v2, %v4763_v52 }
 0x46d   : > { %v4884_v46 = vsel %vm913_vm2, %v4852_v40, %v4761_v4 }
 0x46e   : > { %6730 = vmatprep.mubr.msk.f32.mxu1 %vm1393_vm3, %v4884_v46 }
 0x46f   : > { %v4639_v13 = vpop.permute.xlu1 %4638  ;;  %6731 = vmatmul.mubr.msk.f32.gmra.mrb[4].mxu1 %vm1393_vm3, %v4885_v27 }
 0x470   : > { %v4637_v24 = vpop.permute.xlu0 %4636  ;;  %v4855_v41 = vsel %vm408_vm0, %v4503_v59, %v4639_v13  ;;  %v4515_v59 = vld [vmem:[#allocation2 + $0x110] sm:$0xff] }
 0x471   : > { %v4854_v39 = vsel %vm408_vm0, %v4502_v54, %v4637_v24  ;;  %v4514_v54 = vld [vmem:[#allocation2 + $0x108] sm:$0xff] }
 0x473   : > { %v4767_v38 = vpop.permute.xlu1 %4766 }
 0x474   : > { %v4765_v35 = vpop.permute.xlu0 %4764  ;;  %v4887_v23 = vsel %vm913_vm2, %v4855_v41, %v4767_v38 }
 0x475   : > { %v4886_v51 = vsel %vm913_vm2, %v4854_v39, %v4765_v35 }
 0x476   : > { %6733 = vmatprep.mubr.msk.f32.mxu1 %vm1393_vm3, %v4886_v51 }
 0x477   : > { %v4643_v11 = vpop.permute.xlu1 %4642  ;;  %6734 = vmatmul.mubr.msk.f32.gmra.mrb[6].mxu1 %vm1393_vm3, %v4887_v23 }
 0x478   : > { %v4641_v18 = vpop.permute.xlu0 %4640  ;;  %v4857_v1 = vsel %vm408_vm0, %v4505_v16, %v4643_v11  ;;  %v4517_v16 = vld [vmem:[#allocation2 + $0x128] sm:$0xff] }
 0x479   : > { %v4856_v25 = vsel %vm408_vm0, %v4504_v15, %v4641_v18  ;;  %v4516_v15 = vld [vmem:[#allocation2 + $0x120] sm:$0xff] }
 0x47b   : > { %v4771_v37 = vpop.permute.xlu1 %4770 }
 0x47c   : > { %v4769_v29 = vpop.permute.xlu0 %4768  ;;  %v4889_v45 = vsel %vm913_vm2, %v4857_v1, %v4771_v37 }
 0x47d   : > { %v4888_v50 = vsel %vm913_vm2, %v4856_v25, %v4769_v29 }
 0x47e   : > { %6736 = vmatprep.mubr.msk.f32.mxu1 %vm1393_vm3, %v4888_v50 }
 0x47f   : > { %v4647_v58 = vpop.permute.xlu1 %4646  ;;  %6737 = vmatmul.mubr.msk.f32.gmra.mrb[8].mxu1 %vm1393_vm3, %v4889_v45 }
 0x480   : > { %v4645_v60 = vpop.permute.xlu0 %4644  ;;  %v4859_v56 = vsel %vm408_vm0, %v4507_v43, %v4647_v58  ;;  %v4519_v43 = vld [vmem:[#allocation2 + $0x140] sm:$0xff] }
 0x481   : > { %v4858_v34 = vsel %vm408_vm0, %v4506_v14, %v4645_v60  ;;  %v4518_v14 = vld [vmem:[#allocation2 + $0x138] sm:$0xff] }
 0x483   : > { %v4775_v33 = vpop.permute.xlu1 %4774 }
 0x484   : > { %v4773_v28 = vpop.permute.xlu0 %4772  ;;  %v4891_v36 = vsel %vm913_vm2, %v4859_v56, %v4775_v33 }
 0x485   : > { %v4890_v7 = vsel %vm913_vm2, %v4858_v34, %v4773_v28 }
 0x486   : > { %6739 = vmatprep.mubr.msk.f32.mxu1 %vm1393_vm3, %v4890_v7 }
 0x487   : > { %v4651_v9 = vpop.permute.xlu1 %4650  ;;  %6740 = vmatmul.mubr.msk.f32.gmra.mrb[10].mxu1 %vm1393_vm3, %v4891_v36 }
 0x488   : > { %v4649_v0 = vpop.permute.xlu0 %4648  ;;  %v4861_v12 = vsel %vm408_vm0, %v4509_v49, %v4651_v9  ;;  %v4521_v49 = vld [vmem:[#allocation2 + $0x158] sm:$0xff] }
 0x489   : > { %v4860_v10 = vsel %vm408_vm0, %v4508_v57, %v4649_v0  ;;  %v4520_v57 = vld [vmem:[#allocation2 + $0x150] sm:$0xff] }
 0x48b   : > { %v4779_v20 = vpop.permute.xlu1 %4778 }
 0x48c   : > { %v4777_v61 = vpop.permute.xlu0 %4776  ;;  %v4893_v17 = vsel %vm913_vm2, %v4861_v12, %v4779_v20 }
 0x48d   : > { %v4892_v62 = vsel %vm913_vm2, %v4860_v10, %v4777_v61 }
 0x48e   : > { %6742 = vmatprep.mubr.msk.f32.mxu1 %vm1393_vm3, %v4892_v62 }
 0x48f   : > { %v4655_v55 = vpop.permute.xlu1 %4654  ;;  %6743 = vmatmul.mubr.msk.f32.gmra.mrb[12].mxu1 %vm1393_vm3, %v4893_v17 }
 0x490   : > { %v4653_v48 = vpop.permute.xlu0 %4652  ;;  %v4863_v53 = vsel %vm408_vm0, %v4511_v21, %v4655_v55 }
 0x491   : > { %v4862_v5 = vsel %vm408_vm0, %v4510_v42, %v4653_v48 }
 0x493   : > { %v4783_v19 = vpop.permute.xlu1 %4782 }
 0x494   : > { %v4781_v22 = vpop.permute.xlu0 %4780  ;;  %v4895_v8 = vsel %vm913_vm2, %v4863_v53, %v4783_v19 }
 0x495   : > { %v4894_v31 = vsel %vm913_vm2, %v4862_v5, %v4781_v22 }
 0x496   : > { %6745 = vmatprep.mubr.msk.f32.mxu1 %vm1393_vm3, %v4894_v31 }
 0x497   : > { %v4659_v63 = vpop.permute.xlu1 %4658  ;;  %6746 = vmatmul.mubr.msk.f32.gmra.mrb[14].mxu1 %vm1393_vm3, %v4895_v8 }
 0x498   : > { %v4657_v32 = vpop.permute.xlu0 %4656  ;;  %v4865_v2 = vsel %vm408_vm0, %v4513_v30, %v4659_v63 }
 0x499   : > { %v4864_v40 = vsel %vm408_vm0, %v4512_v26, %v4657_v32 }
 0x49b   : > { %v4787_v52 = vpop.permute.xlu1 %4786 }
 0x49c   : > { %v4785_v4 = vpop.permute.xlu0 %4784  ;;  %v4897_v27 = vsel %vm913_vm2, %v4865_v2, %v4787_v52  ;;  %v4526_v2 = vld [vmem:[#allocation2 + $0x198] sm:$0xff] }
 0x49d   : > { %v4896_v46 = vsel %vm913_vm2, %v4864_v40, %v4785_v4  ;;  %v4527_v40 = vld [vmem:[#allocation2 + $0x1a0] sm:$0xff] }
 0x49e   : > { %6748 = vmatprep.mubr.msk.f32.mxu1 %vm1393_vm3, %v4896_v46 }
 0x49f   : > { %v4663_v13 = vpop.permute.xlu1 %4662  ;;  %6749 = vmatmul.mubr.msk.f32.gmra.mrb[16].mxu1 %vm1393_vm3, %v4897_v27 }
 0x4a0   : > { %v4661_v24 = vpop.permute.xlu0 %4660  ;;  %v4867_v41 = vsel %vm408_vm0, %v4515_v59, %v4663_v13  ;;  %v7345_v59 = vmov 0.0|0.0  }
 0x4a1   : > { %v4866_v39 = vsel %vm408_vm0, %v4514_v54, %v4661_v24  ;;  %v5391_v54 = vld [vmem:[%s10030_s5] sm:$0xff]  ;;  %6960 = vmatprep.subr.bf16.mxu0 %v7345_v59  ;;  %6966 = vmatprep.subr.bf16.mxu1 %v7345_v59 }
 0x4a3   : > { %v4791_v38 = vpop.permute.xlu1 %4790 }
 0x4a4   : > { %v4789_v35 = vpop.permute.xlu0 %4788  ;;  %v4899_v23 = vsel %vm913_vm2, %v4867_v41, %v4791_v38  ;;  %v5392_v38 = vld [vmem:[%s10030_s5 + $0x8] sm:$0xff]  ;;  %v5394_v41 = vld [vmem:[%s10030_s5 + $0x18] sm:$0xff] }
 0x4a5   : > { %v4898_v51 = vsel %vm913_vm2, %v4866_v39, %v4789_v35  ;;  %v6961_v39 = vpack.c.bf16 %v5392_v38, %v5391_v54  ;;  %v5393_v35 = vld [vmem:[%s10030_s5 + $0x10] sm:$0xff] }
 0x4a6   : > { %6751 = vmatprep.mubr.msk.f32.mxu1 %vm1393_vm3, %v4898_v51  ;;  %v6964_v51 = vpack.c.bf16 %v5394_v41, %v5393_v35 }
 0x4a7   : > { %v4667_v11 = vpop.permute.xlu1 %4666  ;;  %6752 = vmatmul.mubr.msk.f32.gmra.mrb[18].mxu1 %vm1393_vm3, %v4899_v23  ;;  %6962 = vmatpush3.bf16.msra.mxu0 %v6961_v39  ;;  %v10137_v23 = vmov 0.0  }
 0x4a8   : > { %v4665_v18 = vpop.permute.xlu0 %4664  ;;  %v4869_v1 = vsel %vm408_vm0, %v4517_v16, %v4667_v11  ;;  %6963 = vmatprep.subr.bf16.mxu0 %v7345_v59  ;;  %v5395_v16 = vld [vmem:[%s10030_s5 + $0x20] sm:$0xff] }
 0x4a9   : > { %v4868_v25 = vsel %vm408_vm0, %v4516_v15, %v4665_v18 }
 0x4ab   : > { %v4795_v37 = vpop.permute.xlu1 %4794  ;;  %6965 = vmatpush3.bf16.msra.mxu0 %v6964_v51 }
 0x4ac   : > { %v4793_v29 = vpop.permute.xlu0 %4792  ;;  %v4901_v45 = vsel %vm913_vm2, %v4869_v1, %v4795_v37  ;;  %6780 = vmatprep.subr.mxu0 %v10137_v23 }
 0x4ad   : > { %v4900_v50 = vsel %vm913_vm2, %v4868_v25, %v4793_v29  ;;  %v5471_v25 = vld [vmem:[%s10032_s7] sm:$0xff]  ;;  %v5472_v29 = vld [vmem:[%s10032_s7 + $0x8] sm:$0x3] }
 0x4ae   : > { %6754 = vmatprep.mubr.msk.f32.mxu1 %vm1393_vm3, %v4900_v50  ;;  %v6967_v50 = vpack.c.bf16 %v5472_v29, %v5471_v25 }
 0x4af   : > { %v4671_v58 = vpop.permute.xlu1 %4670  ;;  %6755 = vmatmul.mubr.msk.f32.gmra.mrb[20].mxu1 %vm1393_vm3, %v4901_v45  ;;  %6781 = vmatpush3.msra.mxu0 %v5395_v16 }
 0x4b0   : > { %v4669_v60 = vpop.permute.xlu0 %4668  ;;  %v4871_v56 = vsel %vm408_vm0, %v4519_v43, %v4671_v58 }
 0x4b1   : > { %v4870_v34 = vsel %vm408_vm0, %v4518_v14, %v4669_v60  ;;  %v9621_v14 = vld [vmem:[%s10029_s4] ss:$0 sm:$0xff] }
 0x4b3   : > { %v4799_v33 = vpop.permute.xlu1 %4798 }
 0x4b4   : > { %v4797_v28 = vpop.permute.xlu0 %4796  ;;  %v4903_v36 = vsel %vm913_vm2, %v4871_v56, %v4799_v33 }
 0x4b5   : > { %v4902_v7 = vsel %vm913_vm2, %v4870_v34, %v4797_v28 }
 0x4b6   : > { %6757 = vmatprep.mubr.msk.f32.mxu1 %vm1393_vm3, %v4902_v7 }
 0x4b7   : > { %v4675_v9 = vpop.permute.xlu1 %4674  ;;  %6758 = vmatmul.mubr.msk.f32.gmra.mrb[22].mxu1 %vm1393_vm3, %v4903_v36 }
 0x4b8   : > { %v4673_v0 = vpop.permute.xlu0 %4672  ;;  %v4873_v12 = vsel %vm408_vm0, %v4521_v49, %v4675_v9 }
 0x4b9   : > { %v4872_v10 = vsel %vm408_vm0, %v4520_v57, %v4673_v0 }
 0x4bb   : > { %v4803_v20 = vpop.permute.xlu1 %4802 }
 0x4bc   : > { %v4801_v61 = vpop.permute.xlu0 %4800  ;;  %v4905_v17 = vsel %vm913_vm2, %v4873_v12, %v4803_v20 }
 0x4bd   : > { %v4904_v62 = vsel %vm913_vm2, %v4872_v10, %v4801_v61 }
 0x4be   : > { %6760 = vmatprep.mubr.msk.f32.mxu1 %vm1393_vm3, %v4904_v62 }
 0x4bf   : > { %v4679_v55 = vpop.permute.xlu1 %4678  ;;  %6761 = vmatmul.mubr.msk.f32.gmra.mrb[24].mxu1 %vm1393_vm3, %v4905_v17 }
 0x4c0   : > { %v4677_v48 = vpop.permute.xlu0 %4676  ;;  %v4875_v5 = vsel %vm408_vm0, %v9252_v3, %v4679_v55 }
 0x4c1   : > { %v4874_v19 = vsel %vm408_vm0, %v9250_v6, %v4677_v48 }
 0x4c3   : > { %v4807_v42 = vpop.permute.xlu1 %4806 }
 0x4c4   : > { %v4805_v21 = vpop.permute.xlu0 %4804  ;;  %v4907_v53 = vsel %vm913_vm2, %v4875_v5, %v4807_v42 }
 0x4c5   : > { %v4906_v22 = vsel %vm913_vm2, %v4874_v19, %v4805_v21 }
 0x4c6   : > { %6763 = vmatprep.mubr.msk.f32.mxu1 %vm1393_vm3, %v4906_v22 }
 0x4c7   : > { %v4683_v31 = vpop.permute.xlu1 %4682  ;;  %6764 = vmatmul.mubr.msk.f32.gmra.mrb[26].mxu1 %vm1393_vm3, %v4907_v53 }
 0x4c8   : > { %v4681_v8 = vpop.permute.xlu0 %4680  ;;  %v4877_v6 = vsel %vm408_vm0, %v9272_v47, %v4683_v31 }
 0x4c9   : > { %v4876_v32 = vsel %vm408_vm0, %v9266_v44, %v4681_v8 }
 0x4cb   : > { %v4811_v63 = vpop.permute.xlu1 %4810 }
 0x4cc   : > { %v4809_v26 = vpop.permute.xlu0 %4808  ;;  %v4909_v52 = vsel %vm913_vm2, %v4877_v6, %v4811_v63 }
 0x4cd   : > { %v4908_v3 = vsel %vm913_vm2, %v4876_v32, %v4809_v26 }
 0x4ce   : > { %6766 = vmatprep.mubr.msk.f32.mxu1 %vm1393_vm3, %v4908_v3 }
 0x4cf   : > { %v4687_v30 = vpop.permute.xlu1 %4686  ;;  %6767 = vmatmul.mubr.msk.f32.gmra.mrb[28].mxu1 %vm1393_vm3, %v4909_v52 }
 0x4d0   : > { %v4685_v4 = vpop.permute.xlu0 %4684  ;;  %v4879_v46 = vsel %vm408_vm0, %v4527_v40, %v4687_v30 }
 0x4d1   : > { %v4878_v44 = vsel %vm408_vm0, %v4526_v2, %v4685_v4 }
 0x4d3   : > { %v4815_v27 = vpop.permute.xlu1 %4814 }
 0x4d4   : > { %v4813_v13 = vpop.permute.xlu0 %4812  ;;  %v4911_v24 = vsel %vm913_vm2, %v4879_v46, %v4815_v27 }
 0x4d5   : > { %v4910_v47 = vsel %vm913_vm2, %v4878_v44, %v4813_v13  ;;  %vm7346_vm2 = vmmov 0  }
 0x4d6   : > { %6769 = vmatprep.mubr.msk.f32.mxu1 %vm1393_vm3, %v4910_v47  ;;  %6782 = vmatprep.mubr.msk.f32.mxu0 %vm7346_vm2, %v10137_v23 }
 0x4d7   : > { %6770 = vmatmul.mubr.msk.f32.gmra.mrb[30].mxu1 %vm1393_vm3, %v4911_v24  ;;  %vm5478_vm3 = vcmask 1041408  }
 0x4d8   : > { %6789 = vmatprep.mubr.msk.f32.mxu1 %vm7346_vm2, %v10137_v23  ;;  %vm6968_vm11 = vmpackc.low %vm5478_vm3, %vm7347_vm10 }
 0x4d9   : > { %6969 = vmatpush3.bf16.msk.msra.mxu1 %vm6968_vm11, %v6967_v50 }
 0x532   : > { %v6726_v11 = vpop.f32.mrb[0].mxu1 }
 0x533   : > { %v5090_v18 = vpop.f32.mrb[1].mxu1  ;;  %v9624_v33 = vadd.f32 %v6726_v11, %v9621_v14 }
 0x534   : > { %v9627_v43 = vadd.f32 %v9621_v14, %v5090_v18 }
 0x535   : > { %v5321_v7 = vsel %vm408_vm0, %v9624_v33, 0.0 }
 0x536   : > { %v5320_v36 = vsel %vm408_vm0, %v9627_v43, 0.0 }
 0x537   : > { %v5322_v0 = vadd.f32 %v5321_v7, %v5320_v36 }
 0x53a   : > { %v6729_v15 = vpop.f32.mrb[2].mxu1 }
 0x53b   : > { %v5100_v37 = vpop.f32.mrb[3].mxu1  ;;  %v9639_v57 = vadd.f32 %v6729_v15, %v9621_v14 }
 0x53c   : > { %v9630_v56 = vadd.f32 %v9621_v14, %v5100_v37 }
 0x53d   : > { %v5325_v12 = vsel %vm408_vm0, %v9639_v57, 0.0 }
 0x53e   : > { %v5323_v9 = vsel %vm408_vm0, %v9630_v56, 0.0 }
 0x53f   : > { %v5324_v10 = vadd.f32 %v5323_v9, %v5322_v0 }
 0x541   : > { %v5326_v17 = vadd.f32 %v5325_v12, %v5324_v10 }
 0x542   : > { %v6732_v1 = vpop.f32.mrb[4].mxu1 }
 0x543   : > { %v5110_v45 = vpop.f32.mrb[5].mxu1  ;;  %v9649_v55 = vadd.f32 %v6732_v1, %v9621_v14 }
 0x544   : > { %v9642_v20 = vadd.f32 %v9621_v14, %v5110_v45 }
 0x545   : > { %v5329_v5 = vsel %vm408_vm0, %v9649_v55, 0.0 }
 0x546   : > { %v5327_v62 = vsel %vm408_vm0, %v9642_v20, 0.0 }
 0x547   : > { %v5328_v42 = vadd.f32 %v5327_v62, %v5326_v17 }
 0x549   : > { %v5330_v53 = vadd.f32 %v5329_v5, %v5328_v42 }
 0x54a   : > { %v6735_v58 = vpop.f32.mrb[6].mxu1 }
 0x54b   : > { %v5120_v60 = vpop.f32.mrb[7].mxu1  ;;  %v9659_v31 = vadd.f32 %v6735_v58, %v9621_v14 }
 0x54c   : > { %v9652_v48 = vadd.f32 %v9621_v14, %v5120_v60 }
 0x54d   : > { %v5333_v32 = vsel %vm408_vm0, %v9659_v31, 0.0 }
 0x54e   : > { %v5331_v22 = vsel %vm408_vm0, %v9652_v48, 0.0 }
 0x54f   : > { %v5332_v63 = vadd.f32 %v5331_v22, %v5330_v53 }
 0x551   : > { %v5334_v3 = vadd.f32 %v5333_v32, %v5332_v63 }
 0x552   : > { %v6738_v34 = vpop.f32.mrb[8].mxu1 }
 0x553   : > { %v5130_v28 = vpop.f32.mrb[9].mxu1  ;;  %v9669_v30 = vadd.f32 %v6738_v34, %v9621_v14 }
 0x554   : > { %v9662_v8 = vadd.f32 %v9621_v14, %v5130_v28 }
 0x555   : > { %v5337_v2 = vsel %vm408_vm0, %v9669_v30, 0.0 }
 0x556   : > { %v5335_v26 = vsel %vm408_vm0, %v9662_v8, 0.0 }
 0x557   : > { %v5336_v4 = vadd.f32 %v5335_v26, %v5334_v3 }
 0x559   : > { %v5338_v27 = vadd.f32 %v5337_v2, %v5336_v4 }
 0x55a   : > { %v6741_v49 = vpop.f32.mrb[10].mxu1 }
 0x55b   : > { %v5140_v61 = vpop.f32.mrb[11].mxu1  ;;  %v9679_v44 = vadd.f32 %v6741_v49, %v9621_v14 }
 0x55c   : > { %v9672_v40 = vadd.f32 %v9621_v14, %v5140_v61 }
 0x55d   : > { %v5341_v38 = vsel %vm408_vm0, %v9679_v44, 0.0 }
 0x55e   : > { %v5339_v46 = vsel %vm408_vm0, %v9672_v40, 0.0 }
 0x55f   : > { %v5340_v24 = vadd.f32 %v5339_v46, %v5338_v27 }
 0x561   : > { %v5342_v39 = vadd.f32 %v5341_v38, %v5340_v24 }
 0x562   : > { %v6744_v19 = vpop.f32.mrb[12].mxu1 }
 0x563   : > { %v5150_v21 = vpop.f32.mrb[13].mxu1  ;;  %v9689_v35 = vadd.f32 %v6744_v19, %v9621_v14 }
 0x564   : > { %v9682_v13 = vadd.f32 %v9621_v14, %v5150_v21 }
 0x565   : > { %v5345_v18 = vsel %vm408_vm0, %v9689_v35, 0.0 }
 0x566   : > { %v5343_v59 = vsel %vm408_vm0, %v9682_v13, 0.0 }
 0x567   : > { %v5344_v51 = vadd.f32 %v5343_v59, %v5342_v39 }
 0x569   : > { %v5346_v37 = vadd.f32 %v5345_v18, %v5344_v51 }
 0x56a   : > { %v6747_v6 = vpop.f32.mrb[14].mxu1 }
 0x56b   : > { %v5160_v52 = vpop.f32.mrb[15].mxu1  ;;  %v9699_v16 = vadd.f32 %v6747_v6, %v9621_v14 }
 0x56c   : > { %v9692_v41 = vadd.f32 %v9621_v14, %v5160_v52 }
 0x56d   : > { %v5349_v1 = vsel %vm408_vm0, %v9699_v16, 0.0 }
 0x56e   : > { %v5347_v15 = vsel %vm408_vm0, %v9692_v41, 0.0 }
 0x56f   : > { %v5348_v29 = vadd.f32 %v5347_v15, %v5346_v37 }
 0x571   : > { %v5350_v58 = vadd.f32 %v5349_v1, %v5348_v29 }
 0x572   : > { %v6750_v47 = vpop.f32.mrb[16].mxu1 }
 0x573   : > { %v5170_v54 = vpop.f32.mrb[17].mxu1  ;;  %v9709_v34 = vadd.f32 %v6750_v47, %v9621_v14 }
 0x574   : > { %v9702_v25 = vadd.f32 %v9621_v14, %v5170_v54 }
 0x575   : > { %v5353_v36 = vsel %vm408_vm0, %v9709_v34, 0.0 }
 0x576   : > { %v5351_v50 = vsel %vm408_vm0, %v9702_v25, 0.0 }
 0x577   : > { %v5352_v7 = vadd.f32 %v5351_v50, %v5350_v58 }
 0x579   : > { %v5354_v0 = vadd.f32 %v5353_v36, %v5352_v7 }
 0x57a   : > { %v6753_v23 = vpop.f32.mrb[18].mxu1 }
 0x57b   : > { %v5180_v11 = vpop.f32.mrb[19].mxu1  ;;  %v9719_v49 = vadd.f32 %v6753_v23, %v9621_v14 }
 0x57c   : > { %v9712_v28 = vadd.f32 %v9621_v14, %v5180_v11 }
 0x57d   : > { %v5357_v17 = vsel %vm408_vm0, %v9719_v49, 0.0 }
 0x57e   : > { %v5355_v9 = vsel %vm408_vm0, %v9712_v28, 0.0 }
 0x57f   : > { %v5356_v12 = vadd.f32 %v5355_v9, %v5354_v0 }
 0x581   : > { %v5358_v19 = vadd.f32 %v5357_v17, %v5356_v12 }
 0x582   : > { %v6756_v45 = vpop.f32.mrb[20].mxu1 }
 0x583   : > { %v5190_v60 = vpop.f32.mrb[21].mxu1  ;;  %v9729_v21 = vadd.f32 %v6756_v45, %v9621_v14 }
 0x584   : > { %v9722_v10 = vadd.f32 %v9621_v14, %v5190_v60 }
 0x585   : > { %v5361_v32 = vsel %vm408_vm0, %v9729_v21, 0.0 }
 0x586   : > { %v5359_v42 = vsel %vm408_vm0, %v9722_v10, 0.0 }
 0x587   : > { %v5360_v22 = vadd.f32 %v5359_v42, %v5358_v19 }
 0x589   : > { %v5362_v6 = vadd.f32 %v5361_v32, %v5360_v22 }
 0x58a   : > { %v6759_v61 = vpop.f32.mrb[22].mxu1 }
 0x58b   : > { %v5200_v62 = vpop.f32.mrb[23].mxu1  ;;  %v9739_v3 = vadd.f32 %v6759_v61, %v9621_v14 }
 0x58c   : > { %v9732_v5 = vadd.f32 %v9621_v14, %v5200_v62 }
 0x58d   : > { %v5365_v2 = vsel %vm408_vm0, %v9739_v3, 0.0 }
 0x58e   : > { %v5363_v26 = vsel %vm408_vm0, %v9732_v5, 0.0 }
 0x58f   : > { %v5364_v4 = vadd.f32 %v5363_v26, %v5362_v6 }
 0x591   : > { %v5366_v47 = vadd.f32 %v5365_v2, %v5364_v4 }
 0x592   : > { %v6762_v53 = vpop.f32.mrb[24].mxu1 }
 0x593   : > { %v5210_v63 = vpop.f32.mrb[25].mxu1  ;;  %v9749_v54 = vadd.f32 %v6762_v53, %v9621_v14 }
 0x594   : > { %v9742_v52 = vadd.f32 %v9621_v14, %v5210_v63 }
 0x595   : > { %v5369_v39 = vsel %vm408_vm0, %v9749_v54, 0.0 }
 0x596   : > { %v5367_v46 = vsel %vm408_vm0, %v9742_v52, 0.0 }
 0x597   : > { %v5368_v59 = vadd.f32 %v5367_v46, %v5366_v47 }
 0x599   : > { %v5370_v23 = vadd.f32 %v5369_v39, %v5368_v59 }
 0x59a   : > { %v6765_v27 = vpop.f32.mrb[26].mxu1 }
 0x59b   : > { %v5220_v24 = vpop.f32.mrb[27].mxu1  ;;  %v9759_v11 = vadd.f32 %v6765_v27, %v9621_v14 }
 0x59c   : > { %v9752_v38 = vadd.f32 %v9621_v14, %v5220_v24  ;;  %v5473_v24 = vld [vmem:[%s10033_s8] sm:$0x1] }
 0x59d   : > { %v5373_v1 = vsel %vm408_vm0, %v9759_v11, 0.0 }
 0x59e   : > { %v5371_v51 = vsel %vm408_vm0, %v9752_v38, 0.0 }
 0x59f   : > { %v5372_v15 = vadd.f32 %v5371_v51, %v5370_v23 }
 0x5a1   : > { %v5374_v45 = vadd.f32 %v5373_v1, %v5372_v15  ;;  %v5558_v1 = vlaneseq }
 0x5a2   : > { %v6768_v18 = vpop.f32.mrb[28].mxu1 }
 0x5a3   : > { %v5230_v37 = vpop.f32.mrb[29].mxu1  ;;  %v9769_v58 = vadd.f32 %v6768_v18, %v9621_v14 }
 0x5a4   : > { %v9762_v29 = vadd.f32 %v9621_v14, %v5230_v37 }
 0x5a5   : > { %v5377_v9 = vsel %vm408_vm0, %v9769_v58, 0.0 }
 0x5a6   : > { %v5375_v50 = vsel %vm408_vm0, %v9762_v29, 0.0 }
 0x5a7   : > { %v5376_v60 = vadd.f32 %v5375_v50, %v5374_v45  ;;  %v5559_v50 = vshrl.u32 %v5558_v1, 7  ;;  %v5615_v1 = vld [vmem:[%s7596_s29 + $0xa8] sm:$0xff] }
 0x5a9   : > { %v5378_v12 = vadd.f32 %v5377_v9, %v5376_v60  ;;  %v5560_v45 = vsub.s32 0, %v5559_v50  ;;  %v5617_v50 = vld [vmem:[%s7596_s29 + $0xb8] sm:$0xff] }
 0x5aa   : > { %v6771_v7 = vpop.f32.mrb[30].mxu1 }
 0x5ab   : > { %v5240_v36 = vpop.f32.mrb[31].mxu1  ;;  %v9774_v0 = vadd.f32 %v6771_v7, %v9621_v14 }
 0x5ac   : > { %v9777_v61 = vadd.f32 %v9621_v14, %v5240_v36  ;;  %v5396_v14 = vld [vmem:[%s10031_s6] sm:$0x1] }
 0x5ad   : > { %v5381_v42 = vsel %vm408_vm0, %v9774_v0, 0.0 }
 0x5ae   : > { %v5379_v62 = vsel %vm408_vm0, %v9777_v61, 0.0 }
 0x5af   : > { %v5380_v17 = vadd.f32 %v5379_v62, %v5378_v12 }
 0x5b1   : > { %v5382_v19 = vadd.f32 %v5381_v42, %v5380_v17 }
 0x5b3   : > { %v5383_v22 = vrot.slane %v5382_v19, 4 }
 0x5b5   : > { %v5384_v53 = vadd.f32 %v5383_v22, %v5382_v19 }
 0x5b7   : > { %v5385_v63 = vrot.slane %v5384_v53, 2 }
 0x5b9   : > { %v5386_v32 = vadd.f32 %v5385_v63, %v5384_v53  ;;  %v5595_v53 = vld [vmem:[%s7596_s29 + $0x8] sm:$0xff]  ;;  %v5596_v63 = vld [vmem:[%s7596_s29 + $0x10] sm:$0xff] }
 0x5bb   : > { %v5387_v26 = vrot.slane %v5386_v32, 1 }
 0x5bd   : > { %v5388_v6 = vadd.f32 %v5387_v26, %v5386_v32  ;;  %v5600_v26 = vld [vmem:[%s7596_s29 + $0x30] sm:$0xff] }
 0x5bf   : > { %v5390_v4 = vmul.f32 0.00390625, %v5388_v6 }
 0x5c1   : > { %6783 = vmatmul.mubr.msk.f32.vlgmr.msra.gmra.mrb[32].mxu0 %vm408_vm0, %v5390_v4 }
 0x694   : > { %v5466_v2 = vpop.f32.mrb[32].mxu0 }
 0x695   : > { %v5467_v46 = vadd.f32 %v5466_v2, %v5396_v14  ;;  %v6784_v27 = vpop.f32.mrb[33].mxu0  ;;  %v5605_v14 = vld [vmem:[%s7596_s29 + $0x58] sm:$0xff] }
 0x696   : > { %v5606_v27 = vld [vmem:[%s7596_s29 + $0x60] sm:$0xff] }
 0x697   : > { %v5470_v47 = vmax.f32 %v5467_v46, 0.0  ;;  %v5607_v46 = vld [vmem:[%s7596_s29 + $0x68] sm:$0xff] }
 0x699   : > { %6790 = vmatmul.mubr.msk.f32.vlgmr.msra.gmra.mrb[32].mxu1 %vm5474_vm12, %v5470_v47 }
 0x76c   : > { %v5548_v59 = vpop.f32.mrb[32].mxu1 }
 0x76d   : > { %v5549_v39 = vadd.f32 %v5548_v59, %v5473_v24  ;;  %v6791_v51 = vpop.f32.mrb[33].mxu1  ;;  %v5608_v24 = vld [vmem:[%s7596_s29 + $0x70] sm:$0xff]  ;;  %v5611_v59 = vld [vmem:[%s7596_s29 + $0x88] sm:$0xff] }
 0x76e   : > { %v5613_v51 = vld [vmem:[%s7596_s29 + $0x98] sm:$0xff] }
 0x76f   : > { %v5552_v23 = vsub.f32 0.0, %v5549_v39 }
 0x771   : > { %v5553_v18 = vmul.f32 1.442695, %v5552_v23  ;;  %v5612_v23 = vld [vmem:[%s7596_s29 + $0x90] sm:$0xff] }
 0x773   : > { %7175 = vpow2.f32 %v5553_v18 }
 0x77d   : > { %v7176_v15 = vpop.eup %7175 }
 0x77e   : > { %v5555_v37 = vadd.f32 1.0, %v7176_v15 }
 0x780   : > { %7177 = vrcp.f32 %v5555_v37 }
 0x78a   : > { %v7178_v60 = vpop.eup %7177 }
 0x78b   : > { %v5561_v7 = vrot.slane %v7178_v60, %v5560_v45 }
 0x78d   : > { %v5562_v36 = vmul.f32 %v5561_v7, %v9627_v43  ;;  %v5563_v9 = vmul.f32 %v5561_v7, %v9624_v33  ;;  %v5564_v12 = vmul.f32 %v5561_v7, %v9630_v56  ;;  %v5565_v62 = vmul.f32 %v5561_v7, %v9639_v57 }
 0x78e   : > { %v5566_v17 = vmul.f32 %v5561_v7, %v9642_v20  ;;  %v5567_v42 = vmul.f32 %v5561_v7, %v9649_v55  ;;  %v5568_v19 = vmul.f32 %v5561_v7, %v9652_v48  ;;  %v5569_v22 = vmul.f32 %v5561_v7, %v9659_v31  ;;  %v5594_v20 = vld [vmem:[%s7596_s29] sm:$0xff]  ;;  %v5597_v55 = vld [vmem:[%s7596_s29 + $0x18] sm:$0xff] }
 0x78f   : > { %v5570_v43 = vmul.f32 %v5561_v7, %v9662_v8  ;;  %v5571_v33 = vmul.f32 %v5561_v7, %v9669_v30  ;;  %v5572_v56 = vmul.f32 %v5561_v7, %v9672_v40  ;;  %v5573_v57 = vmul.f32 %v5561_v7, %v9679_v44  ;;  %v5599_v30 = vld [vmem:[%s7596_s29 + $0x28] sm:$0xff]  ;;  %v5598_v40 = vld [vmem:[%s7596_s29 + $0x20] sm:$0xff]  ;;  %v5601_v44 = vld [vmem:[%s7596_s29 + $0x38] sm:$0xff] }
 0x790   : > { %v5574_v48 = vmul.f32 %v5561_v7, %v9682_v13  ;;  %v5575_v31 = vmul.f32 %v5561_v7, %v9689_v35  ;;  %v5576_v32 = vmul.f32 %v5561_v7, %v9692_v41  ;;  %v5577_v8 = vmul.f32 %v5561_v7, %v9699_v16  ;;  %v5603_v41 = vld [vmem:[%s7596_s29 + $0x48] sm:$0xff]  ;;  %v5602_v16 = vld [vmem:[%s7596_s29 + $0x40] sm:$0xff] }
 0x791   : > { %v9815_v6 = vmul.f32 %v5561_v7, %v9702_v25  ;;  %v9818_v4 = vmul.f32 %v5561_v7, %v9709_v34  ;;  %v9821_v13 = vmul.f32 %v5561_v7, %v9712_v28  ;;  %v9824_v35 = vmul.f32 %v5561_v7, %v9719_v49  ;;  %v5604_v49 = vld [vmem:[%s7596_s29 + $0x50] sm:$0xff] }
 0x792   : > { %v9830_v2 = vmul.f32 %v5561_v7, %v9722_v10  ;;  %v9833_v25 = vmul.f32 %v5561_v7, %v9729_v21  ;;  %v9836_v34 = vmul.f32 %v5561_v7, %v9732_v5  ;;  %v9839_v28 = vmul.f32 %v5561_v7, %v9739_v3  ;;  %v5609_v3 = vld [vmem:[%s7596_s29 + $0x78] sm:$0xff] }
 0x793   : > { %v9845_v47 = vmul.f32 %v5561_v7, %v9742_v52  ;;  %v9848_v10 = vmul.f32 %v5561_v7, %v9749_v54  ;;  %v9851_v21 = vmul.f32 %v5561_v7, %v9752_v38  ;;  %v9854_v5 = vmul.f32 %v5561_v7, %v9759_v11  ;;  %v5610_v11 = vld [vmem:[%s7596_s29 + $0x80] sm:$0xff] }
 0x794   : > { %v9860_v39 = vmul.f32 %v5561_v7, %v9762_v29  ;;  %v9863_v52 = vmul.f32 %v5561_v7, %v9769_v58  ;;  %v9866_v54 = vmul.f32 %v5561_v7, %v9777_v61  ;;  %v9869_v38 = vmul.f32 %v5561_v7, %v9774_v0  ;;  %v5614_v58 = vld [vmem:[%s7596_s29 + $0xa0] sm:$0xff]  ;;  %v5616_v7 = vld [vmem:[%s7596_s29 + $0xb0] sm:$0xff] }
 0x795   : > { %v5626_v18 = vadd.f32 %v5594_v20, %v5562_v36  ;;  %v5627_v15 = vadd.f32 %v5595_v53, %v5563_v9  ;;  %v5628_v37 = vadd.f32 %v5596_v63, %v5564_v12  ;;  %v5629_v29 = vadd.f32 %v5597_v55, %v5565_v62  ;;  %v5621_v12 = vld [vmem:[%s7596_s29 + $0xd8] sm:$0xff]  ;;  %v5620_v62 = vld [vmem:[%s7596_s29 + $0xd0] sm:$0xff] }
 0x796   : > { %10138 = vst [vmem:[#allocation26_spill] sm:$0xff] %v9860_v39  ;;  %10139 = vst [vmem:[#allocation27_spill] sm:$0xff] %v9863_v52  ;;  %v5630_v45 = vadd.f32 %v5598_v40, %v5566_v17  ;;  %v5631_v61 = vadd.f32 %v5599_v30, %v5567_v42  ;;  %v5632_v60 = vadd.f32 %v5600_v26, %v5568_v19  ;;  %v5623_v17 = vld [vmem:[%s7596_s29 + $0xe8] sm:$0xff] }
 0x797   : > { %10140 = vst [vmem:[#allocation29_spill] sm:$0xff] %v9866_v54  ;;  %10141 = vst [vmem:[#allocation30_spill] sm:$0xff] %v9869_v38  ;;  %v5633_v0 = vadd.f32 %v5601_v44, %v5569_v22  ;;  %v5619_v38 = vld [vmem:[%s7596_s29 + $0xc8] sm:$0xff]  ;;  %v5618_v54 = vld [vmem:[%s7596_s29 + $0xc0] sm:$0xff]  ;;  %v5634_v52 = vadd.f32 %v5602_v16, %v5570_v43  ;;  %v5635_v39 = vadd.f32 %v5603_v41, %v5571_v33 }
 0x798   : > { %v5636_v36 = vadd.f32 %v5604_v49, %v5572_v56  ;;  %v5637_v9 = vadd.f32 %v5605_v14, %v5573_v57  ;;  %5658 = vst.msk [vmem:[%s9882_s27] sm:$0xff] %vm408_vm0, %v5626_v18  ;;  %5659 = vst.msk [vmem:[%s9882_s27 + $0x8] sm:$0xff] %vm408_vm0, %v5627_v15  ;;  %v5638_v42 = vadd.f32 %v5606_v27, %v5574_v48  ;;  %v5622_v33 = vld [vmem:[%s7596_s29 + $0xe0] sm:$0xff]  ;;  %v5625_v56 = vld [vmem:[%s7596_s29 + $0xf8] sm:$0xff] }
 0x799   : > { %5660 = vst.msk [vmem:[%s9882_s27 + $0x10] sm:$0xff] %vm408_vm0, %v5628_v37  ;;  %5661 = vst.msk [vmem:[%s9882_s27 + $0x18] sm:$0xff] %vm408_vm0, %v5629_v29  ;;  %v5639_v19 = vadd.f32 %v5607_v46, %v5575_v31  ;;  %v5640_v22 = vadd.f32 %v5608_v24, %v5576_v32  ;;  %v5641_v43 = vadd.f32 %v5609_v3, %v5577_v8  ;;  %v5624_v57 = vld [vmem:[%s7596_s29 + $0xf0] sm:$0xff] }
 0x79a   : > { %5662 = vst.msk [vmem:[%s9882_s27 + $0x20] sm:$0xff] %vm408_vm0, %v5630_v45  ;;  %5663 = vst.msk [vmem:[%s9882_s27 + $0x28] sm:$0xff] %vm408_vm0, %v5631_v61  ;;  %v5642_v53 = vadd.f32 %v5610_v11, %v9815_v6  ;;  %v5643_v20 = vadd.f32 %v5611_v59, %v9818_v4  ;;  %v5644_v55 = vadd.f32 %v5612_v23, %v9821_v13 }
 0x79b   : > { %5664 = vst.msk [vmem:[%s9882_s27 + $0x30] sm:$0xff] %vm408_vm0, %v5632_v60  ;;  %5665 = vst.msk [vmem:[%s9882_s27 + $0x38] sm:$0xff] %vm408_vm0, %v5633_v0  ;;  %v5645_v63 = vadd.f32 %v5613_v51, %v9824_v35  ;;  %v5646_v48 = vadd.f32 %v5614_v58, %v9830_v2  ;;  %v5647_v31 = vadd.f32 %v5615_v1, %v9833_v25 }
 0x79c   : > { %5666 = vst.msk [vmem:[%s9882_s27 + $0x40] sm:$0xff] %vm408_vm0, %v5634_v52  ;;  %5667 = vst.msk [vmem:[%s9882_s27 + $0x48] sm:$0xff] %vm408_vm0, %v5635_v39  ;;  %v5648_v32 = vadd.f32 %v5616_v7, %v9836_v34  ;;  %v5649_v8 = vadd.f32 %v5617_v50, %v9839_v28  ;;  %v5650_v30 = vadd.f32 %v5618_v54, %v9845_v47 }
 0x79d   : > { %5668 = vst.msk [vmem:[%s9882_s27 + $0x50] sm:$0xff] %vm408_vm0, %v5636_v36  ;;  %5669 = vst.msk [vmem:[%s9882_s27 + $0x58] sm:$0xff] %vm408_vm0, %v5637_v9  ;;  %v5651_v40 = vadd.f32 %v5619_v38, %v9848_v10  ;;  %v5652_v44 = vadd.f32 %v5620_v62, %v9851_v21  ;;  %v5653_v26 = vadd.f32 %v5621_v12, %v9854_v5  ;;  %v10142_v6 = vld [vmem:[#allocation26_spill] sm:$0xff]  ;;  %v10143_v13 = vld [vmem:[#allocation27_spill] sm:$0xff] }
 0x79e   : > { %5670 = vst.msk [vmem:[%s9882_s27 + $0x60] sm:$0xff] %vm408_vm0, %v5638_v42  ;;  %5671 = vst.msk [vmem:[%s9882_s27 + $0x68] sm:$0xff] %vm408_vm0, %v5639_v19  ;;  %v5654_v4 = vadd.f32 %v5622_v33, %v10142_v6  ;;  %v5655_v35 = vadd.f32 %v5623_v17, %v10143_v13  ;;  %v10144_v41 = vld [vmem:[#allocation29_spill] sm:$0xff]  ;;  %v10145_v14 = vld [vmem:[#allocation30_spill] sm:$0xff] }
 0x79f   : > { %5672 = vst.msk [vmem:[%s9882_s27 + $0x70] sm:$0xff] %vm408_vm0, %v5640_v22  ;;  %5673 = vst.msk [vmem:[%s9882_s27 + $0x78] sm:$0xff] %vm408_vm0, %v5641_v43  ;;  %v5656_v16 = vadd.f32 %v5624_v57, %v10144_v41  ;;  %v5657_v2 = vadd.f32 %v5625_v56, %v10145_v14 }
 0x7a0   : > { %5674 = vst.msk [vmem:[%s9882_s27 + $0x80] sm:$0xff] %vm408_vm0, %v5642_v53  ;;  %5675 = vst.msk [vmem:[%s9882_s27 + $0x88] sm:$0xff] %vm408_vm0, %v5643_v20 }
 0x7a1   : > { %5676 = vst.msk [vmem:[%s9882_s27 + $0x90] sm:$0xff] %vm408_vm0, %v5644_v55  ;;  %5677 = vst.msk [vmem:[%s9882_s27 + $0x98] sm:$0xff] %vm408_vm0, %v5645_v63 }
 0x7a2   : > { %5678 = vst.msk [vmem:[%s9882_s27 + $0xa0] sm:$0xff] %vm408_vm0, %v5646_v48  ;;  %5679 = vst.msk [vmem:[%s9882_s27 + $0xa8] sm:$0xff] %vm408_vm0, %v5647_v31 }
 0x7a3   : > { %5680 = vst.msk [vmem:[%s9882_s27 + $0xb0] sm:$0xff] %vm408_vm0, %v5648_v32  ;;  %5681 = vst.msk [vmem:[%s9882_s27 + $0xb8] sm:$0xff] %vm408_vm0, %v5649_v8 }
 0x7a4   : > { %5682 = vst.msk [vmem:[%s9882_s27 + $0xc0] sm:$0xff] %vm408_vm0, %v5650_v30  ;;  %5683 = vst.msk [vmem:[%s9882_s27 + $0xc8] sm:$0xff] %vm408_vm0, %v5651_v40 }
 0x7a5   : > { %5684 = vst.msk [vmem:[%s9882_s27 + $0xd0] sm:$0xff] %vm408_vm0, %v5652_v44  ;;  %5685 = vst.msk [vmem:[%s9882_s27 + $0xd8] sm:$0xff] %vm408_vm0, %v5653_v26 }
 0x7a6   : > { %5686 = vst.msk [vmem:[%s9882_s27 + $0xe0] sm:$0xff] %vm408_vm0, %v5654_v4  ;;  %5687 = vst.msk [vmem:[%s9882_s27 + $0xe8] sm:$0xff] %vm408_vm0, %v5655_v35 }
 0x7a7   : > { %5688 = vst.msk [vmem:[%s9882_s27 + $0xf0] sm:$0xff] %vm408_vm0, %v5656_v16  ;;  %5689 = vst.msk [vmem:[%s9882_s27 + $0xf8] sm:$0xff] %vm408_vm0, %v5657_v2 }
 0x7a8   : > { %7278 = shalt.err (!%p7275_p1)
}
 0x7a9   : > { %s7279_s21 = scalar_lea.hbm %s9949_s19, 4096  ;;  %s7283_s13 = scalar_lea.hbm %s10035_s10, 8192 }
 0x7aa   : > { %p7280_p13 = scmp.ne.s32.totalorder %s9949_s19, %s7279_s21  ;;  %p7284_p4 = scmp.lt.u32.totalorder %s9949_s19, %s10035_s10 }
 0x7ab   : > { %p7285_p5 = scmp.lt.u32.totalorder %s7283_s13, %s7279_s21  ;;  %p7287_p11 = scmp.lt.u32.totalorder %s7279_s21, %s9949_s19 }
 0x7ac   : > { %p7281_p6 = pnand %p7280_p13, %p10146_p0 }
 0x7ad   : > { %p7286_p8 = por %p7285_p5, %p7284_p4 }
 0x7ae   : > { %p7282_p10 = pneg %p7281_p6 }
 0x7af   : > { %p7288_p2 = por %p7287_p11, %p7286_p8 }
 0x7b1   : > { %p7289_p3 = pnand %p7288_p2, %p7282_p10 }
 0x7b3   : > { %7292 = shalt.err (!%p7289_p3)
}
 0x7b4   : > { %s7349_s14 = smov 128   ;;  %s7350_s20 = smov 8  }
 0x7b5   : > { %7108 = dma.vmem_to_hbm [thread:$0]  (%p10146_p0), %s9953_s24, 4096, %s9949_s19, %s5691_s9, %s7349_s14, %s7349_s14, %s7350_s20  }
 0x7b6 PF: > { %s10147_s22 = sld [smem:[#allocation14_spill]]  ;;  %s5719_s23 = sand.u32 1, %s7323_s15  }
 0x7b7   : > { %p10149_p9 = scmp.ge.s32.totalorder %s7335_s18, 2  ;;  %s5720_s21 = scalar_lea.sflag [#allocation6], %s5719_s23 }
 0x7bc   : > { %p10148_p7 = scmp.ne.s32.totalorder %s10147_s22, 0 }
 0x7be   : > { %p7122_p12 = pnand %p10149_p9, %p10148_p7 }
 0x7c0   : > { %7318 = dma.done.wait (!%p7122_p12), %s5720_s21, 4096  }
 0x7c1   : > { %7320 = vsyncadd (!%p7122_p12), %s5720_s21, 4294963200  ;;  %p25_p1 = scmp.ge.s32.totalorder %s7525_s25, 4   ;;  %s10150_s15 = smov %s7327_s16 }
 0x7c2   : > { %s10151_s16 = smov %s7331_s17  ;;  %s10152_s17 = smov %s7541_s12 }
 0x7c3   : > { %s10153_s18 = smov %s7525_s25  ;;  %27 = sbr.rel (!%p25_p1) target bundleno = 8 (0x8), region = 119 }
 0x7ca   :  { %5725 = vsyncpa [#allocation5], 1 }
 0x7cb   :  { %5727 = vsyncpa [#allocation5 + $0x1], 1 }
 0x7cc   :  { %5728 = vsyncpa [#allocation8], 1 }
 0x7cd   :  { %5729 = vsyncpa [#allocation6], 1 }
 0x7ce   :  { %5731 = vsyncpa [#allocation6 + $0x1], 1 }

</bundles_post_ra>
